<compile_context>
chip_gen: v5e
topology: v5e:2x2
jax: 0.10.0
libtpu: 0.0.40
codegen_flags: <defaults>
</compile_context>

<pallas_src>
import math
from functools import partial

import jax
import jax.numpy as jnp
from jax.experimental import pallas as pl
from jax.experimental.pallas import tpu as pltpu

CFG = dict(
    in_dim=4,          # cfg.in_dim  (raw feature channels)
    d_model=32,        # cfg.out_dim == cfg.d_model
    n_heads=4,
    d_ff=64,
    freq="h",          # -> temporal marks [month, day, weekday, hour]
    dropout=0.0,
    activation="relu",
    attn="full",
    output_attention=False,
    distil=False,
    e_layers=(2, 1),
    inp_lens=(0, 1),
)

_CDT = jnp.bfloat16    # MXU operand dtype; accumulation stays f32 everywhere


# ----------------------------------------------------------------------------
# In-kernel helpers (plain jnp values already resident in VMEM)
# ----------------------------------------------------------------------------
def _layer_norm(x, gamma, beta, eps=1e-5):
    mu = jnp.mean(x, axis=-1, keepdims=True)
    var = jnp.mean((x - mu) ** 2, axis=-1, keepdims=True)
    return (x - mu) * jax.lax.rsqrt(var + eps) * gamma + beta


def _encoder_layer(xs, wqkv, bqkv, wo, bo, w1, b1, w2, b2, lnp, *, B, seg, D, n_heads):
    """One Informer EncoderLayer (FullAttention + FFN + 2 post-LayerNorms), dropout=0, relu."""
    E = D // n_heads
    scale = 1.0 / math.sqrt(E)

    # fused QKV projection: [B*seg, D] @ [D, 3D]   (bf16 operands, f32 accumulate)
    qkv = jnp.dot(xs.astype(_CDT), wqkv, preferred_element_type=jnp.float32) + bqkv

    # Per-head lane split done ONCE; heads folded into a single leading batch axis
    # (batch index = h*B + b), so attention is two batched einsums over B*H pairs.
    def head_stack(off):
        return jnp.stack(
            [qkv[:, off + h * E: off + (h + 1) * E] for h in range(n_heads)], axis=0
        ).reshape(n_heads * B, seg, E)

    q, k, v = head_stack(0), head_stack(D), head_stack(2 * D)

    s = jnp.einsum('bqe,bke->bqk', q.astype(_CDT), k.astype(_CDT),
                   preferred_element_type=jnp.float32) * scale          # [H*B, seg, seg]
    s = s - jnp.max(s, axis=-1, keepdims=True)
    p = jnp.exp(s)
    p = p * pl.reciprocal(jnp.sum(p, axis=-1, keepdims=True), approx=True)
    ctx = jnp.einsum('bqk,bke->bqe', p.astype(_CDT), v.astype(_CDT),
                     preferred_element_type=jnp.float32)                # [H*B, seg, E]

    # recombine heads -> [B*seg, D], then ONE fat output projection (K=D)
    ctx = ctx.reshape(n_heads, B * seg, E)
    ctx = jnp.concatenate([ctx[h] for h in range(n_heads)], axis=-1)    # [B*seg, D]
    attn_out = jnp.dot(ctx.astype(_CDT), wo, preferred_element_type=jnp.float32) + bo

    x1 = xs + attn_out                                   # residual (dropout p=0)
    x2 = _layer_norm(x1, lnp[0:1], lnp[1:2])             # norm1

    # feed-forward (conv1d k=1 == linear), relu, conv1d k=1
    hfc = jnp.maximum(jnp.dot(x2.astype(_CDT), w1, preferred_element_type=jnp.float32) + b1, 0.0)
    ff = jnp.dot(hfc.astype(_CDT), w2, preferred_element_type=jnp.float32) + b2

    return _layer_norm(x2 + ff, lnp[2:3], lnp[3:4])      # norm2


# ----------------------------------------------------------------------------
# Single fused kernel for the whole forward pass
# ----------------------------------------------------------------------------
def _fused_forward_kernel(xcat_ref, add_ref, wtok_ref, wmh_ref,
                          wqkv_ref, bqkv_ref, wo_ref, bo_ref,
                          w1_ref, b1_ref, w2_ref, b2_ref,
                          ln_ref, encnorm_ref, out_ref,
                          *, B, L, D, n_heads, e_layers, inp_lens):
    f32 = jnp.float32

    # ---- DataEmbedding: token circular conv (im2col matmul) + positional + fixed temporal ----
    h = jnp.dot(xcat_ref[...], wtok_ref[...], preferred_element_type=f32) + add_ref[...]
    # h: [B*L, D]  (f32)

    # ---- Multihead_Conv: circular Conv1d(D, D, k=3, bias=False) ----
    # TODO(synk): Multihead_Conv source not provided; assumed circular Conv1d(d_model, d_model, k=3, bias=False).
    # Pre-split weight -> three accumulated [B*L,D]@[D,D] matmuls on rolled views (no lane concat).
    h3 = h.reshape(B, L, D)
    hm1 = jnp.roll(h3, 1, axis=1).reshape(B * L, D)      # token l-1 (circular, per batch)
    hp1 = jnp.roll(h3, -1, axis=1).reshape(B * L, D)     # token l+1
    h = (jnp.dot(hm1.astype(_CDT), wmh_ref[0], preferred_element_type=f32)
         + jnp.dot(h.astype(_CDT), wmh_ref[1], preferred_element_type=f32)
         + jnp.dot(hp1.astype(_CDT), wmh_ref[2], preferred_element_type=f32))

    # ---- EncoderStack: each encoder sees the last L // 2**inp_len tokens ----
    enc_outs = []
    li = 0                                               # flat layer index across encoders
    for ei, (el, il) in enumerate(zip(e_layers, inp_lens)):
        seg = L // (2 ** il)
        if seg == L:
            xs = h
        else:
            xs = h.reshape(B, L, D)[:, L - seg:, :].reshape(B * seg, D)
        for _ in range(el):
            xs = _encoder_layer(xs, wqkv_ref[li], bqkv_ref[li], wo_ref[li], bo_ref[li],
                                w1_ref[li], b1_ref[li], w2_ref[li], b2_ref[li],
                                ln_ref[li], B=B, seg=seg, D=D, n_heads=n_heads)
            li += 1
        enp = encnorm_ref[ei]                            # [2, D]
        enc_outs.append((_layer_norm(xs, enp[0:1], enp[1:2]), seg))

    # ---- assemble [B*out_L, D] (per batch: enc0 | enc1 | ...) and store once ----
    pieces = []
    for b in range(B):
        for xs, seg in enc_outs:
            pieces.append(xs[b * seg:(b + 1) * seg])
    out_ref[...] = jnp.concatenate(pieces, axis=0).astype(out_ref.dtype)


# ----------------------------------------------------------------------------
# Parameter setup (packed layout) + embedding tables (constants, built once)
# ----------------------------------------------------------------------------
def sinusoid_table(n, d):
    pos = jnp.arange(n, dtype=jnp.float32)[:, None]
    div = jnp.exp(jnp.arange(0, d, 2, dtype=jnp.float32) * (-math.log(10000.0) / d))
    ang = pos * div                                                  # [n, d//2]
    return jnp.stack([jnp.sin(ang), jnp.cos(ang)], axis=-1).reshape(n, d)


def init_params(key, cfg, max_len=5000):
    D, Cin, Dff = cfg["d_model"], cfg["in_dim"], cfg["d_ff"]
    nl = sum(cfg["e_layers"])       # total encoder layers across the stack
    ne = len(cfg["e_layers"])       # number of encoders
    keys = iter(jax.random.split(key, 64))

    def dense(shape, fan_in, dtype=_CDT):
        return (jax.random.normal(next(keys), shape, jnp.float32) / math.sqrt(fan_in)).astype(dtype)

    ones, zeros = jnp.ones((D,), jnp.float32), jnp.zeros((D,), jnp.float32)
    return dict(
        # im2col-packed conv weights (bf16 MXU operands)
        wtok=dense((3 * Cin, D), 3 * Cin),               # TokenEmbedding conv, rows = [k0;k1;k2]
        wmh=dense((3, D, D), 3 * D),                     # Multihead_Conv, pre-split per tap
        # per-layer packed weights, stacked across all encoder layers
        wqkv=dense((nl, D, 3 * D), D), bqkv=dense((nl, 1, 3 * D), D, jnp.float32),
        wo=dense((nl, D, D), D),       bo=dense((nl, 1, D), D, jnp.float32),
        w1=dense((nl, D, Dff), D),     b1=dense((nl, 1, Dff), D, jnp.float32),
        w2=dense((nl, Dff, D), Dff),   b2=dense((nl, 1, D), Dff, jnp.float32),
        ln=jnp.tile(jnp.stack([ones, zeros, ones, zeros])[None], (nl, 1, 1)),   # [nl,4,D]
        enc_norm=jnp.tile(jnp.stack([ones, zeros])[None], (ne, 1, 1)),          # [ne,2,D]
        # fixed (non-learned) tables: positional + temporal (freq='h')
        pos_t=sinusoid_table(max_len, D),
        month_t=sinusoid_table(13, D), day_t=sinusoid_table(32, D),
        weekday_t=sinusoid_table(7, D), hour_t=sinusoid_table(24, D),
    )


# ----------------------------------------------------------------------------
# Forward wrapper: tiny XLA-side prep (table gathers + im2col of the raw input),
# then the single fused Pallas call.
# ----------------------------------------------------------------------------
@jax.jit
def forward(params, x, x_mark):
    cfg = CFG
    B, L, Cin = x.shape
    D, H = cfg["d_model"], cfg["n_heads"]
    e_layers, inp_lens = tuple(cfg["e_layers"]), tuple(cfg["inp_lens"])
    out_L = sum(L // (2 ** il) for il in inp_lens)

    # positional + fixed temporal embeddings (constant-table gathers stay in XLA)
    pos = params["pos_t"][:L]                                            # [L, D]
    temp = (jnp.take(params["month_t"], x_mark[..., 0], axis=0)
            + jnp.take(params["day_t"], x_mark[..., 1], axis=0)
            + jnp.take(params["weekday_t"], x_mark[..., 2], axis=0)
            + jnp.take(params["hour_t"], x_mark[..., 3], axis=0))        # [B, L, D]
    add_flat = (pos[None, :, :] + temp).reshape(B * L, D)                # f32

    # im2col of the raw input for the circular k=3 token conv: [B*L, 3*Cin], bf16 operand
    xm1 = jnp.roll(x, 1, axis=1)
    xp1 = jnp.roll(x, -1, axis=1)
    xcat = jnp.concatenate([xm1, x, xp1], axis=-1).reshape(B * L, 3 * Cin).astype(_CDT)

    kernel = partial(_fused_forward_kernel, B=B, L=L, D=D, n_heads=H,
                     e_layers=e_layers, inp_lens=inp_lens)
    vmem = pl.BlockSpec(memory_space=pltpu.MemorySpace.VMEM)
    out_flat = pl.pallas_call(
        kernel,
        out_shape=jax.ShapeDtypeStruct((B * out_L, D), jnp.float32),
        in_specs=[vmem] * 14,
        out_specs=vmem,
    )(xcat, add_flat, params["wtok"], params["wmh"],
      params["wqkv"], params["bqkv"], params["wo"], params["bo"],
      params["w1"], params["b1"], params["w2"], params["b2"],
      params["ln"], params["enc_norm"])

    return out_flat.reshape(B, out_L, D)


if __name__ == "__main__":
    cfg = CFG
    B, L = 2, 16
    key = jax.random.PRNGKey(0)
    k_x, k_m, k_p = jax.random.split(key, 3)

    x = jax.random.normal(k_x, (B, L, cfg["in_dim"]), jnp.float32)
    x_mark = jnp.stack([
        jax.random.randint(jax.random.fold_in(k_m, 0), (B, L), 1, 13),   # month
        jax.random.randint(jax.random.fold_in(k_m, 1), (B, L), 1, 32),   # day
        jax.random.randint(jax.random.fold_in(k_m, 2), (B, L), 0, 7),    # weekday
        jax.random.randint(jax.random.fold_in(k_m, 3), (B, L), 0, 24),   # hour
    ], axis=-1)

    params = init_params(k_p, cfg)
    out = forward(params, x, x_mark)
    out = jax.block_until_ready(out)

    expected_len = sum(L // (2 ** i) for i in cfg["inp_lens"])
    assert out.shape == (B, expected_len, cfg["d_model"]), out.shape
    assert bool(jnp.all(jnp.isfinite(out)))
    print("KERNEL_OK")
</pallas_src>

<mosaic_0001>
module attributes {stable_mosaic.version = 11 : i64} {
  func.func @_fused_forward_kernel(%arg0: memref<32x12xbf16, #tpu.memory_space<vmem>>, %arg1: memref<32x32xf32, #tpu.memory_space<vmem>>, %arg2: memref<12x32xbf16, #tpu.memory_space<vmem>>, %arg3: memref<3x32x32xbf16, #tpu.memory_space<vmem>>, %arg4: memref<3x32x96xbf16, #tpu.memory_space<vmem>>, %arg5: memref<3x1x96xf32, #tpu.memory_space<vmem>>, %arg6: memref<3x32x32xbf16, #tpu.memory_space<vmem>>, %arg7: memref<3x1x32xf32, #tpu.memory_space<vmem>>, %arg8: memref<3x32x64xbf16, #tpu.memory_space<vmem>>, %arg9: memref<3x1x64xf32, #tpu.memory_space<vmem>>, %arg10: memref<3x64x32xbf16, #tpu.memory_space<vmem>>, %arg11: memref<3x1x32xf32, #tpu.memory_space<vmem>>, %arg12: memref<3x4x32xf32, #tpu.memory_space<vmem>>, %arg13: memref<2x2x32xf32, #tpu.memory_space<vmem>>, %arg14: memref<48x32xf32, #tpu.memory_space<vmem>>) attributes {dimension_semantics = [], scalar_prefetch = 0 : i64, scratch_operands = 0 : i64, tpu.core_type = #tpu.core_type<tc>} {
    %c0 = arith.constant 0 : index
    %c0_0 = arith.constant 0 : index
    %0 = vector.load %arg0[%c0, %c0_0] : memref<32x12xbf16, #tpu.memory_space<vmem>>, vector<32x12xbf16>
    %c0_1 = arith.constant 0 : index
    %c0_2 = arith.constant 0 : index
    %1 = vector.load %arg2[%c0_1, %c0_2] : memref<12x32xbf16, #tpu.memory_space<vmem>>, vector<12x32xbf16>
    %cst = arith.constant dense<0.000000e+00> : vector<32x32xf32>
    %2 = tpu.matmul %0, %1, %cst {dimension_numbers = #tpu.dot_dimension_numbers<[1], [0], [0], [1], [0, 0, 1, 1], [], []>} : vector<32x12xbf16>, vector<12x32xbf16>, vector<32x32xf32> -> vector<32x32xf32>
    %c0_3 = arith.constant 0 : index
    %c0_4 = arith.constant 0 : index
    %3 = vector.load %arg1[%c0_3, %c0_4] : memref<32x32xf32, #tpu.memory_space<vmem>>, vector<32x32xf32>
    %4 = arith.addf %2, %3 : vector<32x32xf32>
    %5 = vector.shape_cast %4 : vector<32x32xf32> to vector<2x16x32xf32>
    %6 = vector.extract_strided_slice %5 {offsets = [0, 15, 0], sizes = [2, 1, 32], strides = [1, 1, 1]} : vector<2x16x32xf32> to vector<2x1x32xf32>
    %7 = vector.extract_strided_slice %5 {offsets = [0, 0, 0], sizes = [2, 15, 32], strides = [1, 1, 1]} : vector<2x16x32xf32> to vector<2x15x32xf32>
    %8 = tpu.concatenate %6, %7 in 1 : vector<2x1x32xf32>, vector<2x15x32xf32> -> vector<2x16x32xf32>
    %9 = vector.shape_cast %8 : vector<2x16x32xf32> to vector<32x32xf32>
    %10 = vector.extract_strided_slice %5 {offsets = [0, 1, 0], sizes = [2, 15, 32], strides = [1, 1, 1]} : vector<2x16x32xf32> to vector<2x15x32xf32>
    %11 = vector.extract_strided_slice %5 {offsets = [0, 0, 0], sizes = [2, 1, 32], strides = [1, 1, 1]} : vector<2x16x32xf32> to vector<2x1x32xf32>
    %12 = tpu.concatenate %10, %11 in 1 : vector<2x15x32xf32>, vector<2x1x32xf32> -> vector<2x16x32xf32>
    %13 = vector.shape_cast %12 : vector<2x16x32xf32> to vector<32x32xf32>
    %14 = arith.truncf %9 : vector<32x32xf32> to vector<32x32xbf16>
    %c0_5 = arith.constant 0 : index
    %c0_6 = arith.constant 0 : index
    %c0_7 = arith.constant 0 : index
    %15 = vector.load %arg3[%c0_5, %c0_6, %c0_7] : memref<3x32x32xbf16, #tpu.memory_space<vmem>>, vector<1x32x32xbf16>
    %16 = vector.shape_cast %15 : vector<1x32x32xbf16> to vector<32x32xbf16>
    %cst_8 = arith.constant dense<0.000000e+00> : vector<32x32xf32>
    %17 = tpu.matmul %14, %16, %cst_8 {dimension_numbers = #tpu.dot_dimension_numbers<[1], [0], [0], [1], [0, 0, 1, 1], [], []>} : vector<32x32xbf16>, vector<32x32xbf16>, vector<32x32xf32> -> vector<32x32xf32>
    %18 = arith.truncf %4 : vector<32x32xf32> to vector<32x32xbf16>
    %c1 = arith.constant 1 : index
    %c0_9 = arith.constant 0 : index
    %c0_10 = arith.constant 0 : index
    %19 = vector.load %arg3[%c1, %c0_9, %c0_10] : memref<3x32x32xbf16, #tpu.memory_space<vmem>>, vector<1x32x32xbf16>
    %20 = vector.shape_cast %19 : vector<1x32x32xbf16> to vector<32x32xbf16>
    %cst_11 = arith.constant dense<0.000000e+00> : vector<32x32xf32>
    %21 = tpu.matmul %18, %20, %cst_11 {dimension_numbers = #tpu.dot_dimension_numbers<[1], [0], [0], [1], [0, 0, 1, 1], [], []>} : vector<32x32xbf16>, vector<32x32xbf16>, vector<32x32xf32> -> vector<32x32xf32>
    %22 = arith.addf %17, %21 : vector<32x32xf32>
    %23 = arith.truncf %13 : vector<32x32xf32> to vector<32x32xbf16>
    %c2 = arith.constant 2 : index
    %c0_12 = arith.constant 0 : index
    %c0_13 = arith.constant 0 : index
    %24 = vector.load %arg3[%c2, %c0_12, %c0_13] : memref<3x32x32xbf16, #tpu.memory_space<vmem>>, vector<1x32x32xbf16>
    %25 = vector.shape_cast %24 : vector<1x32x32xbf16> to vector<32x32xbf16>
    %cst_14 = arith.constant dense<0.000000e+00> : vector<32x32xf32>
    %26 = tpu.matmul %23, %25, %cst_14 {dimension_numbers = #tpu.dot_dimension_numbers<[1], [0], [0], [1], [0, 0, 1, 1], [], []>} : vector<32x32xbf16>, vector<32x32xbf16>, vector<32x32xf32> -> vector<32x32xf32>
    %27 = arith.addf %22, %26 : vector<32x32xf32>
    %c0_15 = arith.constant 0 : index
    %c0_16 = arith.constant 0 : index
    %c0_17 = arith.constant 0 : index
    %28 = vector.load %arg4[%c0_15, %c0_16, %c0_17] : memref<3x32x96xbf16, #tpu.memory_space<vmem>>, vector<1x32x96xbf16>
    %29 = vector.shape_cast %28 : vector<1x32x96xbf16> to vector<32x96xbf16>
    %c0_18 = arith.constant 0 : index
    %c0_19 = arith.constant 0 : index
    %c0_20 = arith.constant 0 : index
    %30 = vector.load %arg5[%c0_18, %c0_19, %c0_20] : memref<3x1x96xf32, #tpu.memory_space<vmem>>, vector<1x1x96xf32>
    %31 = vector.shape_cast %30 : vector<1x1x96xf32> to vector<1x96xf32>
    %c0_21 = arith.constant 0 : index
    %c0_22 = arith.constant 0 : index
    %c0_23 = arith.constant 0 : index
    %32 = vector.load %arg6[%c0_21, %c0_22, %c0_23] : memref<3x32x32xbf16, #tpu.memory_space<vmem>>, vector<1x32x32xbf16>
    %33 = vector.shape_cast %32 : vector<1x32x32xbf16> to vector<32x32xbf16>
    %c0_24 = arith.constant 0 : index
    %c0_25 = arith.constant 0 : index
    %c0_26 = arith.constant 0 : index
    %34 = vector.load %arg7[%c0_24, %c0_25, %c0_26] : memref<3x1x32xf32, #tpu.memory_space<vmem>>, vector<1x1x32xf32>
    %35 = vector.shape_cast %34 : vector<1x1x32xf32> to vector<1x32xf32>
    %c0_27 = arith.constant 0 : index
    %c0_28 = arith.constant 0 : index
    %c0_29 = arith.constant 0 : index
    %36 = vector.load %arg8[%c0_27, %c0_28, %c0_29] : memref<3x32x64xbf16, #tpu.memory_space<vmem>>, vector<1x32x64xbf16>
    %37 = vector.shape_cast %36 : vector<1x32x64xbf16> to vector<32x64xbf16>
    %c0_30 = arith.constant 0 : index
    %c0_31 = arith.constant 0 : index
    %c0_32 = arith.constant 0 : index
    %38 = vector.load %arg9[%c0_30, %c0_31, %c0_32] : memref<3x1x64xf32, #tpu.memory_space<vmem>>, vector<1x1x64xf32>
    %39 = vector.shape_cast %38 : vector<1x1x64xf32> to vector<1x64xf32>
    %c0_33 = arith.constant 0 : index
    %c0_34 = arith.constant 0 : index
    %c0_35 = arith.constant 0 : index
    %40 = vector.load %arg10[%c0_33, %c0_34, %c0_35] : memref<3x64x32xbf16, #tpu.memory_space<vmem>>, vector<1x64x32xbf16>
    %41 = vector.shape_cast %40 : vector<1x64x32xbf16> to vector<64x32xbf16>
    %c0_36 = arith.constant 0 : index
    %c0_37 = arith.constant 0 : index
    %c0_38 = arith.constant 0 : index
    %42 = vector.load %arg11[%c0_36, %c0_37, %c0_38] : memref<3x1x32xf32, #tpu.memory_space<vmem>>, vector<1x1x32xf32>
    %43 = vector.shape_cast %42 : vector<1x1x32xf32> to vector<1x32xf32>
    %c0_39 = arith.constant 0 : index
    %c0_40 = arith.constant 0 : index
    %c0_41 = arith.constant 0 : index
    %44 = vector.load %arg12[%c0_39, %c0_40, %c0_41] : memref<3x4x32xf32, #tpu.memory_space<vmem>>, vector<1x4x32xf32>
    %45 = vector.shape_cast %44 : vector<1x4x32xf32> to vector<4x32xf32>
    %46 = arith.truncf %27 : vector<32x32xf32> to vector<32x32xbf16>
    %cst_42 = arith.constant dense<0.000000e+00> : vector<32x96xf32>
    %47 = tpu.matmul %46, %29, %cst_42 {dimension_numbers = #tpu.dot_dimension_numbers<[1], [0], [0], [1], [0, 0, 1, 1], [], []>} : vector<32x32xbf16>, vector<32x96xbf16>, vector<32x96xf32> -> vector<32x96xf32>
    %48 = vector.broadcast %31 : vector<1x96xf32> to vector<32x96xf32>
    %49 = arith.addf %47, %48 : vector<32x96xf32>
    %50 = vector.extract_strided_slice %49 {offsets = [0, 0], sizes = [32, 8], strides = [1, 1]} : vector<32x96xf32> to vector<32x8xf32>
    %51 = vector.extract_strided_slice %49 {offsets = [0, 8], sizes = [32, 8], strides = [1, 1]} : vector<32x96xf32> to vector<32x8xf32>
    %52 = vector.extract_strided_slice %49 {offsets = [0, 16], sizes = [32, 8], strides = [1, 1]} : vector<32x96xf32> to vector<32x8xf32>
    %53 = vector.extract_strided_slice %49 {offsets = [0, 24], sizes = [32, 8], strides = [1, 1]} : vector<32x96xf32> to vector<32x8xf32>
    %54 = vector.shape_cast %50 : vector<32x8xf32> to vector<1x32x8xf32>
    %55 = vector.shape_cast %51 : vector<32x8xf32> to vector<1x32x8xf32>
    %56 = vector.shape_cast %52 : vector<32x8xf32> to vector<1x32x8xf32>
    %57 = vector.shape_cast %53 : vector<32x8xf32> to vector<1x32x8xf32>
    %58 = tpu.concatenate %54, %55, %56, %57 in 0 : vector<1x32x8xf32>, vector<1x32x8xf32>, vector<1x32x8xf32>, vector<1x32x8xf32> -> vector<4x32x8xf32>
    %59 = vector.shape_cast %58 : vector<4x32x8xf32> to vector<8x16x8xf32>
    %60 = vector.extract_strided_slice %49 {offsets = [0, 32], sizes = [32, 8], strides = [1, 1]} : vector<32x96xf32> to vector<32x8xf32>
    %61 = vector.extract_strided_slice %49 {offsets = [0, 40], sizes = [32, 8], strides = [1, 1]} : vector<32x96xf32> to vector<32x8xf32>
    %62 = vector.extract_strided_slice %49 {offsets = [0, 48], sizes = [32, 8], strides = [1, 1]} : vector<32x96xf32> to vector<32x8xf32>
    %63 = vector.extract_strided_slice %49 {offsets = [0, 56], sizes = [32, 8], strides = [1, 1]} : vector<32x96xf32> to vector<32x8xf32>
    %64 = vector.shape_cast %60 : vector<32x8xf32> to vector<1x32x8xf32>
    %65 = vector.shape_cast %61 : vector<32x8xf32> to vector<1x32x8xf32>
    %66 = vector.shape_cast %62 : vector<32x8xf32> to vector<1x32x8xf32>
    %67 = vector.shape_cast %63 : vector<32x8xf32> to vector<1x32x8xf32>
    %68 = tpu.concatenate %64, %65, %66, %67 in 0 : vector<1x32x8xf32>, vector<1x32x8xf32>, vector<1x32x8xf32>, vector<1x32x8xf32> -> vector<4x32x8xf32>
    %69 = vector.shape_cast %68 : vector<4x32x8xf32> to vector<8x16x8xf32>
    %70 = vector.extract_strided_slice %49 {offsets = [0, 64], sizes = [32, 8], strides = [1, 1]} : vector<32x96xf32> to vector<32x8xf32>
    %71 = vector.extract_strided_slice %49 {offsets = [0, 72], sizes = [32, 8], strides = [1, 1]} : vector<32x96xf32> to vector<32x8xf32>
    %72 = vector.extract_strided_slice %49 {offsets = [0, 80], sizes = [32, 8], strides = [1, 1]} : vector<32x96xf32> to vector<32x8xf32>
    %73 = vector.extract_strided_slice %49 {offsets = [0, 88], sizes = [32, 8], strides = [1, 1]} : vector<32x96xf32> to vector<32x8xf32>
    %74 = vector.shape_cast %70 : vector<32x8xf32> to vector<1x32x8xf32>
    %75 = vector.shape_cast %71 : vector<32x8xf32> to vector<1x32x8xf32>
    %76 = vector.shape_cast %72 : vector<32x8xf32> to vector<1x32x8xf32>
    %77 = vector.shape_cast %73 : vector<32x8xf32> to vector<1x32x8xf32>
    %78 = tpu.concatenate %74, %75, %76, %77 in 0 : vector<1x32x8xf32>, vector<1x32x8xf32>, vector<1x32x8xf32>, vector<1x32x8xf32> -> vector<4x32x8xf32>
    %79 = vector.shape_cast %78 : vector<4x32x8xf32> to vector<8x16x8xf32>
    %80 = arith.truncf %59 : vector<8x16x8xf32> to vector<8x16x8xbf16>
    %81 = arith.truncf %69 : vector<8x16x8xf32> to vector<8x16x8xbf16>
    "tpu.trace_start"() <{level = 10 : i32, message = "bqe,bke->bqk"}> : () -> ()
    %cst_43 = arith.constant dense<0.000000e+00> : vector<8x16x16xf32>
    %82 = tpu.matmul %80, %81, %cst_43 {dimension_numbers = #tpu.dot_dimension_numbers<[2], [2], [1], [1], [0, 0, 0, 1, 1, 1], [0], [0]>} : vector<8x16x8xbf16>, vector<8x16x8xbf16>, vector<8x16x16xf32> -> vector<8x16x16xf32>
    "tpu.trace_stop"() : () -> ()
    %cst_44 = arith.constant 0.353553385 : f32
    %83 = vector.broadcast %cst_44 : f32 to vector<8x16x16xf32>
    %84 = arith.mulf %82, %83 : vector<8x16x16xf32>
    %cst_45 = arith.constant dense<0xFF800000> : vector<8x16xf32>
    %85 = vector.multi_reduction <maximumf>, %84, %cst_45 [2] : vector<8x16x16xf32> to vector<8x16xf32>
    %86 = vector.shape_cast %85 : vector<8x16xf32> to vector<8x16x1xf32>
    %87 = vector.broadcast %86 : vector<8x16x1xf32> to vector<8x16x16xf32>
    %88 = arith.subf %84, %87 : vector<8x16x16xf32>
    %89 = math.exp %88 : vector<8x16x16xf32>
    %cst_46 = arith.constant dense<0.000000e+00> : vector<8x16xf32>
    %90 = vector.multi_reduction <add>, %89, %cst_46 [2] : vector<8x16x16xf32> to vector<8x16xf32>
    %91 = vector.shape_cast %90 : vector<8x16xf32> to vector<8x16x1xf32>
    %92 = tpu.reciprocal %91 {approx = true} : vector<8x16x1xf32> -> vector<8x16x1xf32>
    %93 = vector.broadcast %92 : vector<8x16x1xf32> to vector<8x16x16xf32>
    %94 = arith.mulf %89, %93 : vector<8x16x16xf32>
    %95 = arith.truncf %94 : vector<8x16x16xf32> to vector<8x16x16xbf16>
    %96 = arith.truncf %79 : vector<8x16x8xf32> to vector<8x16x8xbf16>
    "tpu.trace_start"() <{level = 10 : i32, message = "bqk,bke->bqe"}> : () -> ()
    %cst_47 = arith.constant dense<0.000000e+00> : vector<8x16x8xf32>
    %97 = tpu.matmul %95, %96, %cst_47 {dimension_numbers = #tpu.dot_dimension_numbers<[2], [1], [1], [2], [0, 0, 0, 1, 1, 2], [0], [0]>} : vector<8x16x16xbf16>, vector<8x16x8xbf16>, vector<8x16x8xf32> -> vector<8x16x8xf32>
    "tpu.trace_stop"() : () -> ()
    %98 = vector.shape_cast %97 : vector<8x16x8xf32> to vector<4x32x8xf32>
    %99 = vector.extract_strided_slice %98 {offsets = [0, 0, 0], sizes = [1, 32, 8], strides = [1, 1, 1]} : vector<4x32x8xf32> to vector<1x32x8xf32>
    %100 = vector.shape_cast %99 : vector<1x32x8xf32> to vector<32x8xf32>
    %101 = vector.extract_strided_slice %98 {offsets = [1, 0, 0], sizes = [1, 32, 8], strides = [1, 1, 1]} : vector<4x32x8xf32> to vector<1x32x8xf32>
    %102 = vector.shape_cast %101 : vector<1x32x8xf32> to vector<32x8xf32>
    %103 = vector.extract_strided_slice %98 {offsets = [2, 0, 0], sizes = [1, 32, 8], strides = [1, 1, 1]} : vector<4x32x8xf32> to vector<1x32x8xf32>
    %104 = vector.shape_cast %103 : vector<1x32x8xf32> to vector<32x8xf32>
    %105 = vector.extract_strided_slice %98 {offsets = [3, 0, 0], sizes = [1, 32, 8], strides = [1, 1, 1]} : vector<4x32x8xf32> to vector<1x32x8xf32>
    %106 = vector.shape_cast %105 : vector<1x32x8xf32> to vector<32x8xf32>
    %107 = tpu.concatenate %100, %102, %104, %106 in 1 : vector<32x8xf32>, vector<32x8xf32>, vector<32x8xf32>, vector<32x8xf32> -> vector<32x32xf32>
    %108 = arith.truncf %107 : vector<32x32xf32> to vector<32x32xbf16>
    %cst_48 = arith.constant dense<0.000000e+00> : vector<32x32xf32>
    %109 = tpu.matmul %108, %33, %cst_48 {dimension_numbers = #tpu.dot_dimension_numbers<[1], [0], [0], [1], [0, 0, 1, 1], [], []>} : vector<32x32xbf16>, vector<32x32xbf16>, vector<32x32xf32> -> vector<32x32xf32>
    %110 = vector.broadcast %35 : vector<1x32xf32> to vector<32x32xf32>
    %111 = arith.addf %109, %110 : vector<32x32xf32>
    %112 = arith.addf %27, %111 : vector<32x32xf32>
    %113 = vector.extract_strided_slice %45 {offsets = [0, 0], sizes = [1, 32], strides = [1, 1]} : vector<4x32xf32> to vector<1x32xf32>
    %114 = vector.extract_strided_slice %45 {offsets = [1, 0], sizes = [1, 32], strides = [1, 1]} : vector<4x32xf32> to vector<1x32xf32>
    %cst_49 = arith.constant dense<0.000000e+00> : vector<32xf32>
    %115 = vector.multi_reduction <add>, %112, %cst_49 [1] : vector<32x32xf32> to vector<32xf32>
    %116 = vector.shape_cast %115 : vector<32xf32> to vector<32x1xf32>
    %cst_50 = arith.constant 3.200000e+01 : f32
    %117 = vector.broadcast %cst_50 : f32 to vector<32x1xf32>
    %118 = arith.divf %116, %117 : vector<32x1xf32>
    %119 = vector.broadcast %118 : vector<32x1xf32> to vector<32x32xf32>
    %120 = arith.subf %112, %119 : vector<32x32xf32>
    %121 = arith.mulf %120, %120 : vector<32x32xf32>
    %cst_51 = arith.constant dense<0.000000e+00> : vector<32xf32>
    %122 = vector.multi_reduction <add>, %121, %cst_51 [1] : vector<32x32xf32> to vector<32xf32>
    %123 = vector.shape_cast %122 : vector<32xf32> to vector<32x1xf32>
    %cst_52 = arith.constant 3.200000e+01 : f32
    %124 = vector.broadcast %cst_52 : f32 to vector<32x1xf32>
    %125 = arith.divf %123, %124 : vector<32x1xf32>
    %126 = vector.broadcast %118 : vector<32x1xf32> to vector<32x32xf32>
    %127 = arith.subf %112, %126 : vector<32x32xf32>
    %cst_53 = arith.constant 9.99999974E-6 : f32
    %128 = vector.broadcast %cst_53 : f32 to vector<32x1xf32>
    %129 = arith.addf %125, %128 : vector<32x1xf32>
    %130 = math.rsqrt %129 : vector<32x1xf32>
    %131 = vector.broadcast %130 : vector<32x1xf32> to vector<32x32xf32>
    %132 = arith.mulf %127, %131 : vector<32x32xf32>
    %133 = vector.broadcast %113 : vector<1x32xf32> to vector<32x32xf32>
    %134 = arith.mulf %132, %133 : vector<32x32xf32>
    %135 = vector.broadcast %114 : vector<1x32xf32> to vector<32x32xf32>
    %136 = arith.addf %134, %135 : vector<32x32xf32>
    %137 = arith.truncf %136 : vector<32x32xf32> to vector<32x32xbf16>
    %cst_54 = arith.constant dense<0.000000e+00> : vector<32x64xf32>
    %138 = tpu.matmul %137, %37, %cst_54 {dimension_numbers = #tpu.dot_dimension_numbers<[1], [0], [0], [1], [0, 0, 1, 1], [], []>} : vector<32x32xbf16>, vector<32x64xbf16>, vector<32x64xf32> -> vector<32x64xf32>
    %139 = vector.broadcast %39 : vector<1x64xf32> to vector<32x64xf32>
    %140 = arith.addf %138, %139 : vector<32x64xf32>
    %cst_55 = arith.constant 0.000000e+00 : f32
    %141 = vector.broadcast %cst_55 : f32 to vector<32x64xf32>
    %142 = arith.maximumf %140, %141 : vector<32x64xf32>
    %143 = arith.truncf %142 : vector<32x64xf32> to vector<32x64xbf16>
    %cst_56 = arith.constant dense<0.000000e+00> : vector<32x32xf32>
    %144 = tpu.matmul %143, %41, %cst_56 {dimension_numbers = #tpu.dot_dimension_numbers<[1], [0], [0], [1], [0, 0, 1, 1], [], []>} : vector<32x64xbf16>, vector<64x32xbf16>, vector<32x32xf32> -> vector<32x32xf32>
    %145 = vector.broadcast %43 : vector<1x32xf32> to vector<32x32xf32>
    %146 = arith.addf %144, %145 : vector<32x32xf32>
    %147 = arith.addf %136, %146 : vector<32x32xf32>
    %148 = vector.extract_strided_slice %45 {offsets = [2, 0], sizes = [1, 32], strides = [1, 1]} : vector<4x32xf32> to vector<1x32xf32>
    %149 = vector.extract_strided_slice %45 {offsets = [3, 0], sizes = [1, 32], strides = [1, 1]} : vector<4x32xf32> to vector<1x32xf32>
    %cst_57 = arith.constant dense<0.000000e+00> : vector<32xf32>
    %150 = vector.multi_reduction <add>, %147, %cst_57 [1] : vector<32x32xf32> to vector<32xf32>
    %151 = vector.shape_cast %150 : vector<32xf32> to vector<32x1xf32>
    %cst_58 = arith.constant 3.200000e+01 : f32
    %152 = vector.broadcast %cst_58 : f32 to vector<32x1xf32>
    %153 = arith.divf %151, %152 : vector<32x1xf32>
    %154 = vector.broadcast %153 : vector<32x1xf32> to vector<32x32xf32>
    %155 = arith.subf %147, %154 : vector<32x32xf32>
    %156 = arith.mulf %155, %155 : vector<32x32xf32>
    %cst_59 = arith.constant dense<0.000000e+00> : vector<32xf32>
    %157 = vector.multi_reduction <add>, %156, %cst_59 [1] : vector<32x32xf32> to vector<32xf32>
    %158 = vector.shape_cast %157 : vector<32xf32> to vector<32x1xf32>
    %cst_60 = arith.constant 3.200000e+01 : f32
    %159 = vector.broadcast %cst_60 : f32 to vector<32x1xf32>
    %160 = arith.divf %158, %159 : vector<32x1xf32>
    %161 = vector.broadcast %153 : vector<32x1xf32> to vector<32x32xf32>
    %162 = arith.subf %147, %161 : vector<32x32xf32>
    %cst_61 = arith.constant 9.99999974E-6 : f32
    %163 = vector.broadcast %cst_61 : f32 to vector<32x1xf32>
    %164 = arith.addf %160, %163 : vector<32x1xf32>
    %165 = math.rsqrt %164 : vector<32x1xf32>
    %166 = vector.broadcast %165 : vector<32x1xf32> to vector<32x32xf32>
    %167 = arith.mulf %162, %166 : vector<32x32xf32>
    %168 = vector.broadcast %148 : vector<1x32xf32> to vector<32x32xf32>
    %169 = arith.mulf %167, %168 : vector<32x32xf32>
    %170 = vector.broadcast %149 : vector<1x32xf32> to vector<32x32xf32>
    %171 = arith.addf %169, %170 : vector<32x32xf32>
    %c1_62 = arith.constant 1 : index
    %c0_63 = arith.constant 0 : index
    %c0_64 = arith.constant 0 : index
    %172 = vector.load %arg4[%c1_62, %c0_63, %c0_64] : memref<3x32x96xbf16, #tpu.memory_space<vmem>>, vector<1x32x96xbf16>
    %173 = vector.shape_cast %172 : vector<1x32x96xbf16> to vector<32x96xbf16>
    %c1_65 = arith.constant 1 : index
    %c0_66 = arith.constant 0 : index
    %c0_67 = arith.constant 0 : index
    %174 = vector.load %arg5[%c1_65, %c0_66, %c0_67] : memref<3x1x96xf32, #tpu.memory_space<vmem>>, vector<1x1x96xf32>
    %175 = vector.shape_cast %174 : vector<1x1x96xf32> to vector<1x96xf32>
    %c1_68 = arith.constant 1 : index
    %c0_69 = arith.constant 0 : index
    %c0_70 = arith.constant 0 : index
    %176 = vector.load %arg6[%c1_68, %c0_69, %c0_70] : memref<3x32x32xbf16, #tpu.memory_space<vmem>>, vector<1x32x32xbf16>
    %177 = vector.shape_cast %176 : vector<1x32x32xbf16> to vector<32x32xbf16>
    %c1_71 = arith.constant 1 : index
    %c0_72 = arith.constant 0 : index
    %c0_73 = arith.constant 0 : index
    %178 = vector.load %arg7[%c1_71, %c0_72, %c0_73] : memref<3x1x32xf32, #tpu.memory_space<vmem>>, vector<1x1x32xf32>
    %179 = vector.shape_cast %178 : vector<1x1x32xf32> to vector<1x32xf32>
    %c1_74 = arith.constant 1 : index
    %c0_75 = arith.constant 0 : index
    %c0_76 = arith.constant 0 : index
    %180 = vector.load %arg8[%c1_74, %c0_75, %c0_76] : memref<3x32x64xbf16, #tpu.memory_space<vmem>>, vector<1x32x64xbf16>
    %181 = vector.shape_cast %180 : vector<1x32x64xbf16> to vector<32x64xbf16>
    %c1_77 = arith.constant 1 : index
    %c0_78 = arith.constant 0 : index
    %c0_79 = arith.constant 0 : index
    %182 = vector.load %arg9[%c1_77, %c0_78, %c0_79] : memref<3x1x64xf32, #tpu.memory_space<vmem>>, vector<1x1x64xf32>
    %183 = vector.shape_cast %182 : vector<1x1x64xf32> to vector<1x64xf32>
    %c1_80 = arith.constant 1 : index
    %c0_81 = arith.constant 0 : index
    %c0_82 = arith.constant 0 : index
    %184 = vector.load %arg10[%c1_80, %c0_81, %c0_82] : memref<3x64x32xbf16, #tpu.memory_space<vmem>>, vector<1x64x32xbf16>
    %185 = vector.shape_cast %184 : vector<1x64x32xbf16> to vector<64x32xbf16>
    %c1_83 = arith.constant 1 : index
    %c0_84 = arith.constant 0 : index
    %c0_85 = arith.constant 0 : index
    %186 = vector.load %arg11[%c1_83, %c0_84, %c0_85] : memref<3x1x32xf32, #tpu.memory_space<vmem>>, vector<1x1x32xf32>
    %187 = vector.shape_cast %186 : vector<1x1x32xf32> to vector<1x32xf32>
    %c1_86 = arith.constant 1 : index
    %c0_87 = arith.constant 0 : index
    %c0_88 = arith.constant 0 : index
    %188 = vector.load %arg12[%c1_86, %c0_87, %c0_88] : memref<3x4x32xf32, #tpu.memory_space<vmem>>, vector<1x4x32xf32>
    %189 = vector.shape_cast %188 : vector<1x4x32xf32> to vector<4x32xf32>
    %190 = arith.truncf %171 : vector<32x32xf32> to vector<32x32xbf16>
    %cst_89 = arith.constant dense<0.000000e+00> : vector<32x96xf32>
    %191 = tpu.matmul %190, %173, %cst_89 {dimension_numbers = #tpu.dot_dimension_numbers<[1], [0], [0], [1], [0, 0, 1, 1], [], []>} : vector<32x32xbf16>, vector<32x96xbf16>, vector<32x96xf32> -> vector<32x96xf32>
    %192 = vector.broadcast %175 : vector<1x96xf32> to vector<32x96xf32>
    %193 = arith.addf %191, %192 : vector<32x96xf32>
    %194 = vector.extract_strided_slice %193 {offsets = [0, 0], sizes = [32, 8], strides = [1, 1]} : vector<32x96xf32> to vector<32x8xf32>
    %195 = vector.extract_strided_slice %193 {offsets = [0, 8], sizes = [32, 8], strides = [1, 1]} : vector<32x96xf32> to vector<32x8xf32>
    %196 = vector.extract_strided_slice %193 {offsets = [0, 16], sizes = [32, 8], strides = [1, 1]} : vector<32x96xf32> to vector<32x8xf32>
    %197 = vector.extract_strided_slice %193 {offsets = [0, 24], sizes = [32, 8], strides = [1, 1]} : vector<32x96xf32> to vector<32x8xf32>
    %198 = vector.shape_cast %194 : vector<32x8xf32> to vector<1x32x8xf32>
    %199 = vector.shape_cast %195 : vector<32x8xf32> to vector<1x32x8xf32>
    %200 = vector.shape_cast %196 : vector<32x8xf32> to vector<1x32x8xf32>
    %201 = vector.shape_cast %197 : vector<32x8xf32> to vector<1x32x8xf32>
    %202 = tpu.concatenate %198, %199, %200, %201 in 0 : vector<1x32x8xf32>, vector<1x32x8xf32>, vector<1x32x8xf32>, vector<1x32x8xf32> -> vector<4x32x8xf32>
    %203 = vector.shape_cast %202 : vector<4x32x8xf32> to vector<8x16x8xf32>
    %204 = vector.extract_strided_slice %193 {offsets = [0, 32], sizes = [32, 8], strides = [1, 1]} : vector<32x96xf32> to vector<32x8xf32>
    %205 = vector.extract_strided_slice %193 {offsets = [0, 40], sizes = [32, 8], strides = [1, 1]} : vector<32x96xf32> to vector<32x8xf32>
    %206 = vector.extract_strided_slice %193 {offsets = [0, 48], sizes = [32, 8], strides = [1, 1]} : vector<32x96xf32> to vector<32x8xf32>
    %207 = vector.extract_strided_slice %193 {offsets = [0, 56], sizes = [32, 8], strides = [1, 1]} : vector<32x96xf32> to vector<32x8xf32>
    %208 = vector.shape_cast %204 : vector<32x8xf32> to vector<1x32x8xf32>
    %209 = vector.shape_cast %205 : vector<32x8xf32> to vector<1x32x8xf32>
    %210 = vector.shape_cast %206 : vector<32x8xf32> to vector<1x32x8xf32>
    %211 = vector.shape_cast %207 : vector<32x8xf32> to vector<1x32x8xf32>
    %212 = tpu.concatenate %208, %209, %210, %211 in 0 : vector<1x32x8xf32>, vector<1x32x8xf32>, vector<1x32x8xf32>, vector<1x32x8xf32> -> vector<4x32x8xf32>
    %213 = vector.shape_cast %212 : vector<4x32x8xf32> to vector<8x16x8xf32>
    %214 = vector.extract_strided_slice %193 {offsets = [0, 64], sizes = [32, 8], strides = [1, 1]} : vector<32x96xf32> to vector<32x8xf32>
    %215 = vector.extract_strided_slice %193 {offsets = [0, 72], sizes = [32, 8], strides = [1, 1]} : vector<32x96xf32> to vector<32x8xf32>
    %216 = vector.extract_strided_slice %193 {offsets = [0, 80], sizes = [32, 8], strides = [1, 1]} : vector<32x96xf32> to vector<32x8xf32>
    %217 = vector.extract_strided_slice %193 {offsets = [0, 88], sizes = [32, 8], strides = [1, 1]} : vector<32x96xf32> to vector<32x8xf32>
    %218 = vector.shape_cast %214 : vector<32x8xf32> to vector<1x32x8xf32>
    %219 = vector.shape_cast %215 : vector<32x8xf32> to vector<1x32x8xf32>
    %220 = vector.shape_cast %216 : vector<32x8xf32> to vector<1x32x8xf32>
    %221 = vector.shape_cast %217 : vector<32x8xf32> to vector<1x32x8xf32>
    %222 = tpu.concatenate %218, %219, %220, %221 in 0 : vector<1x32x8xf32>, vector<1x32x8xf32>, vector<1x32x8xf32>, vector<1x32x8xf32> -> vector<4x32x8xf32>
    %223 = vector.shape_cast %222 : vector<4x32x8xf32> to vector<8x16x8xf32>
    %224 = arith.truncf %203 : vector<8x16x8xf32> to vector<8x16x8xbf16>
    %225 = arith.truncf %213 : vector<8x16x8xf32> to vector<8x16x8xbf16>
    "tpu.trace_start"() <{level = 10 : i32, message = "bqe,bke->bqk"}> : () -> ()
    %cst_90 = arith.constant dense<0.000000e+00> : vector<8x16x16xf32>
    %226 = tpu.matmul %224, %225, %cst_90 {dimension_numbers = #tpu.dot_dimension_numbers<[2], [2], [1], [1], [0, 0, 0, 1, 1, 1], [0], [0]>} : vector<8x16x8xbf16>, vector<8x16x8xbf16>, vector<8x16x16xf32> -> vector<8x16x16xf32>
    "tpu.trace_stop"() : () -> ()
    %cst_91 = arith.constant 0.353553385 : f32
    %227 = vector.broadcast %cst_91 : f32 to vector<8x16x16xf32>
    %228 = arith.mulf %226, %227 : vector<8x16x16xf32>
    %cst_92 = arith.constant dense<0xFF800000> : vector<8x16xf32>
    %229 = vector.multi_reduction <maximumf>, %228, %cst_92 [2] : vector<8x16x16xf32> to vector<8x16xf32>
    %230 = vector.shape_cast %229 : vector<8x16xf32> to vector<8x16x1xf32>
    %231 = vector.broadcast %230 : vector<8x16x1xf32> to vector<8x16x16xf32>
    %232 = arith.subf %228, %231 : vector<8x16x16xf32>
    %233 = math.exp %232 : vector<8x16x16xf32>
    %cst_93 = arith.constant dense<0.000000e+00> : vector<8x16xf32>
    %234 = vector.multi_reduction <add>, %233, %cst_93 [2] : vector<8x16x16xf32> to vector<8x16xf32>
    %235 = vector.shape_cast %234 : vector<8x16xf32> to vector<8x16x1xf32>
    %236 = tpu.reciprocal %235 {approx = true} : vector<8x16x1xf32> -> vector<8x16x1xf32>
    %237 = vector.broadcast %236 : vector<8x16x1xf32> to vector<8x16x16xf32>
    %238 = arith.mulf %233, %237 : vector<8x16x16xf32>
    %239 = arith.truncf %238 : vector<8x16x16xf32> to vector<8x16x16xbf16>
    %240 = arith.truncf %223 : vector<8x16x8xf32> to vector<8x16x8xbf16>
    "tpu.trace_start"() <{level = 10 : i32, message = "bqk,bke->bqe"}> : () -> ()
    %cst_94 = arith.constant dense<0.000000e+00> : vector<8x16x8xf32>
    %241 = tpu.matmul %239, %240, %cst_94 {dimension_numbers = #tpu.dot_dimension_numbers<[2], [1], [1], [2], [0, 0, 0, 1, 1, 2], [0], [0]>} : vector<8x16x16xbf16>, vector<8x16x8xbf16>, vector<8x16x8xf32> -> vector<8x16x8xf32>
    "tpu.trace_stop"() : () -> ()
    %242 = vector.shape_cast %241 : vector<8x16x8xf32> to vector<4x32x8xf32>
    %243 = vector.extract_strided_slice %242 {offsets = [0, 0, 0], sizes = [1, 32, 8], strides = [1, 1, 1]} : vector<4x32x8xf32> to vector<1x32x8xf32>
    %244 = vector.shape_cast %243 : vector<1x32x8xf32> to vector<32x8xf32>
    %245 = vector.extract_strided_slice %242 {offsets = [1, 0, 0], sizes = [1, 32, 8], strides = [1, 1, 1]} : vector<4x32x8xf32> to vector<1x32x8xf32>
    %246 = vector.shape_cast %245 : vector<1x32x8xf32> to vector<32x8xf32>
    %247 = vector.extract_strided_slice %242 {offsets = [2, 0, 0], sizes = [1, 32, 8], strides = [1, 1, 1]} : vector<4x32x8xf32> to vector<1x32x8xf32>
    %248 = vector.shape_cast %247 : vector<1x32x8xf32> to vector<32x8xf32>
    %249 = vector.extract_strided_slice %242 {offsets = [3, 0, 0], sizes = [1, 32, 8], strides = [1, 1, 1]} : vector<4x32x8xf32> to vector<1x32x8xf32>
    %250 = vector.shape_cast %249 : vector<1x32x8xf32> to vector<32x8xf32>
    %251 = tpu.concatenate %244, %246, %248, %250 in 1 : vector<32x8xf32>, vector<32x8xf32>, vector<32x8xf32>, vector<32x8xf32> -> vector<32x32xf32>
    %252 = arith.truncf %251 : vector<32x32xf32> to vector<32x32xbf16>
    %cst_95 = arith.constant dense<0.000000e+00> : vector<32x32xf32>
    %253 = tpu.matmul %252, %177, %cst_95 {dimension_numbers = #tpu.dot_dimension_numbers<[1], [0], [0], [1], [0, 0, 1, 1], [], []>} : vector<32x32xbf16>, vector<32x32xbf16>, vector<32x32xf32> -> vector<32x32xf32>
    %254 = vector.broadcast %179 : vector<1x32xf32> to vector<32x32xf32>
    %255 = arith.addf %253, %254 : vector<32x32xf32>
    %256 = arith.addf %171, %255 : vector<32x32xf32>
    %257 = vector.extract_strided_slice %189 {offsets = [0, 0], sizes = [1, 32], strides = [1, 1]} : vector<4x32xf32> to vector<1x32xf32>
    %258 = vector.extract_strided_slice %189 {offsets = [1, 0], sizes = [1, 32], strides = [1, 1]} : vector<4x32xf32> to vector<1x32xf32>
    %cst_96 = arith.constant dense<0.000000e+00> : vector<32xf32>
    %259 = vector.multi_reduction <add>, %256, %cst_96 [1] : vector<32x32xf32> to vector<32xf32>
    %260 = vector.shape_cast %259 : vector<32xf32> to vector<32x1xf32>
    %cst_97 = arith.constant 3.200000e+01 : f32
    %261 = vector.broadcast %cst_97 : f32 to vector<32x1xf32>
    %262 = arith.divf %260, %261 : vector<32x1xf32>
    %263 = vector.broadcast %262 : vector<32x1xf32> to vector<32x32xf32>
    %264 = arith.subf %256, %263 : vector<32x32xf32>
    %265 = arith.mulf %264, %264 : vector<32x32xf32>
    %cst_98 = arith.constant dense<0.000000e+00> : vector<32xf32>
    %266 = vector.multi_reduction <add>, %265, %cst_98 [1] : vector<32x32xf32> to vector<32xf32>
    %267 = vector.shape_cast %266 : vector<32xf32> to vector<32x1xf32>
    %cst_99 = arith.constant 3.200000e+01 : f32
    %268 = vector.broadcast %cst_99 : f32 to vector<32x1xf32>
    %269 = arith.divf %267, %268 : vector<32x1xf32>
    %270 = vector.broadcast %262 : vector<32x1xf32> to vector<32x32xf32>
    %271 = arith.subf %256, %270 : vector<32x32xf32>
    %cst_100 = arith.constant 9.99999974E-6 : f32
    %272 = vector.broadcast %cst_100 : f32 to vector<32x1xf32>
    %273 = arith.addf %269, %272 : vector<32x1xf32>
    %274 = math.rsqrt %273 : vector<32x1xf32>
    %275 = vector.broadcast %274 : vector<32x1xf32> to vector<32x32xf32>
    %276 = arith.mulf %271, %275 : vector<32x32xf32>
    %277 = vector.broadcast %257 : vector<1x32xf32> to vector<32x32xf32>
    %278 = arith.mulf %276, %277 : vector<32x32xf32>
    %279 = vector.broadcast %258 : vector<1x32xf32> to vector<32x32xf32>
    %280 = arith.addf %278, %279 : vector<32x32xf32>
    %281 = arith.truncf %280 : vector<32x32xf32> to vector<32x32xbf16>
    %cst_101 = arith.constant dense<0.000000e+00> : vector<32x64xf32>
    %282 = tpu.matmul %281, %181, %cst_101 {dimension_numbers = #tpu.dot_dimension_numbers<[1], [0], [0], [1], [0, 0, 1, 1], [], []>} : vector<32x32xbf16>, vector<32x64xbf16>, vector<32x64xf32> -> vector<32x64xf32>
    %283 = vector.broadcast %183 : vector<1x64xf32> to vector<32x64xf32>
    %284 = arith.addf %282, %283 : vector<32x64xf32>
    %cst_102 = arith.constant 0.000000e+00 : f32
    %285 = vector.broadcast %cst_102 : f32 to vector<32x64xf32>
    %286 = arith.maximumf %284, %285 : vector<32x64xf32>
    %287 = arith.truncf %286 : vector<32x64xf32> to vector<32x64xbf16>
    %cst_103 = arith.constant dense<0.000000e+00> : vector<32x32xf32>
    %288 = tpu.matmul %287, %185, %cst_103 {dimension_numbers = #tpu.dot_dimension_numbers<[1], [0], [0], [1], [0, 0, 1, 1], [], []>} : vector<32x64xbf16>, vector<64x32xbf16>, vector<32x32xf32> -> vector<32x32xf32>
    %289 = vector.broadcast %187 : vector<1x32xf32> to vector<32x32xf32>
    %290 = arith.addf %288, %289 : vector<32x32xf32>
    %291 = arith.addf %280, %290 : vector<32x32xf32>
    %292 = vector.extract_strided_slice %189 {offsets = [2, 0], sizes = [1, 32], strides = [1, 1]} : vector<4x32xf32> to vector<1x32xf32>
    %293 = vector.extract_strided_slice %189 {offsets = [3, 0], sizes = [1, 32], strides = [1, 1]} : vector<4x32xf32> to vector<1x32xf32>
    %cst_104 = arith.constant dense<0.000000e+00> : vector<32xf32>
    %294 = vector.multi_reduction <add>, %291, %cst_104 [1] : vector<32x32xf32> to vector<32xf32>
    %295 = vector.shape_cast %294 : vector<32xf32> to vector<32x1xf32>
    %cst_105 = arith.constant 3.200000e+01 : f32
    %296 = vector.broadcast %cst_105 : f32 to vector<32x1xf32>
    %297 = arith.divf %295, %296 : vector<32x1xf32>
    %298 = vector.broadcast %297 : vector<32x1xf32> to vector<32x32xf32>
    %299 = arith.subf %291, %298 : vector<32x32xf32>
    %300 = arith.mulf %299, %299 : vector<32x32xf32>
    %cst_106 = arith.constant dense<0.000000e+00> : vector<32xf32>
    %301 = vector.multi_reduction <add>, %300, %cst_106 [1] : vector<32x32xf32> to vector<32xf32>
    %302 = vector.shape_cast %301 : vector<32xf32> to vector<32x1xf32>
    %cst_107 = arith.constant 3.200000e+01 : f32
    %303 = vector.broadcast %cst_107 : f32 to vector<32x1xf32>
    %304 = arith.divf %302, %303 : vector<32x1xf32>
    %305 = vector.broadcast %297 : vector<32x1xf32> to vector<32x32xf32>
    %306 = arith.subf %291, %305 : vector<32x32xf32>
    %cst_108 = arith.constant 9.99999974E-6 : f32
    %307 = vector.broadcast %cst_108 : f32 to vector<32x1xf32>
    %308 = arith.addf %304, %307 : vector<32x1xf32>
    %309 = math.rsqrt %308 : vector<32x1xf32>
    %310 = vector.broadcast %309 : vector<32x1xf32> to vector<32x32xf32>
    %311 = arith.mulf %306, %310 : vector<32x32xf32>
    %312 = vector.broadcast %292 : vector<1x32xf32> to vector<32x32xf32>
    %313 = arith.mulf %311, %312 : vector<32x32xf32>
    %314 = vector.broadcast %293 : vector<1x32xf32> to vector<32x32xf32>
    %315 = arith.addf %313, %314 : vector<32x32xf32>
    %c0_109 = arith.constant 0 : index
    %c0_110 = arith.constant 0 : index
    %c0_111 = arith.constant 0 : index
    %316 = vector.load %arg13[%c0_109, %c0_110, %c0_111] : memref<2x2x32xf32, #tpu.memory_space<vmem>>, vector<1x2x32xf32>
    %317 = vector.shape_cast %316 : vector<1x2x32xf32> to vector<2x32xf32>
    %318 = vector.extract_strided_slice %317 {offsets = [0, 0], sizes = [1, 32], strides = [1, 1]} : vector<2x32xf32> to vector<1x32xf32>
    %319 = vector.extract_strided_slice %317 {offsets = [1, 0], sizes = [1, 32], strides = [1, 1]} : vector<2x32xf32> to vector<1x32xf32>
    %cst_112 = arith.constant dense<0.000000e+00> : vector<32xf32>
    %320 = vector.multi_reduction <add>, %315, %cst_112 [1] : vector<32x32xf32> to vector<32xf32>
    %321 = vector.shape_cast %320 : vector<32xf32> to vector<32x1xf32>
    %cst_113 = arith.constant 3.200000e+01 : f32
    %322 = vector.broadcast %cst_113 : f32 to vector<32x1xf32>
    %323 = arith.divf %321, %322 : vector<32x1xf32>
    %324 = vector.broadcast %323 : vector<32x1xf32> to vector<32x32xf32>
    %325 = arith.subf %315, %324 : vector<32x32xf32>
    %326 = arith.mulf %325, %325 : vector<32x32xf32>
    %cst_114 = arith.constant dense<0.000000e+00> : vector<32xf32>
    %327 = vector.multi_reduction <add>, %326, %cst_114 [1] : vector<32x32xf32> to vector<32xf32>
    %328 = vector.shape_cast %327 : vector<32xf32> to vector<32x1xf32>
    %cst_115 = arith.constant 3.200000e+01 : f32
    %329 = vector.broadcast %cst_115 : f32 to vector<32x1xf32>
    %330 = arith.divf %328, %329 : vector<32x1xf32>
    %331 = vector.broadcast %323 : vector<32x1xf32> to vector<32x32xf32>
    %332 = arith.subf %315, %331 : vector<32x32xf32>
    %cst_116 = arith.constant 9.99999974E-6 : f32
    %333 = vector.broadcast %cst_116 : f32 to vector<32x1xf32>
    %334 = arith.addf %330, %333 : vector<32x1xf32>
    %335 = math.rsqrt %334 : vector<32x1xf32>
    %336 = vector.broadcast %335 : vector<32x1xf32> to vector<32x32xf32>
    %337 = arith.mulf %332, %336 : vector<32x32xf32>
    %338 = vector.broadcast %318 : vector<1x32xf32> to vector<32x32xf32>
    %339 = arith.mulf %337, %338 : vector<32x32xf32>
    %340 = vector.broadcast %319 : vector<1x32xf32> to vector<32x32xf32>
    %341 = arith.addf %339, %340 : vector<32x32xf32>
    %342 = vector.shape_cast %27 : vector<32x32xf32> to vector<2x16x32xf32>
    %343 = vector.extract_strided_slice %342 {offsets = [0, 8, 0], sizes = [2, 8, 32], strides = [1, 1, 1]} : vector<2x16x32xf32> to vector<2x8x32xf32>
    %344 = vector.shape_cast %343 : vector<2x8x32xf32> to vector<16x32xf32>
    %c2_117 = arith.constant 2 : index
    %c0_118 = arith.constant 0 : index
    %c0_119 = arith.constant 0 : index
    %345 = vector.load %arg4[%c2_117, %c0_118, %c0_119] : memref<3x32x96xbf16, #tpu.memory_space<vmem>>, vector<1x32x96xbf16>
    %346 = vector.shape_cast %345 : vector<1x32x96xbf16> to vector<32x96xbf16>
    %c2_120 = arith.constant 2 : index
    %c0_121 = arith.constant 0 : index
    %c0_122 = arith.constant 0 : index
    %347 = vector.load %arg5[%c2_120, %c0_121, %c0_122] : memref<3x1x96xf32, #tpu.memory_space<vmem>>, vector<1x1x96xf32>
    %348 = vector.shape_cast %347 : vector<1x1x96xf32> to vector<1x96xf32>
    %c2_123 = arith.constant 2 : index
    %c0_124 = arith.constant 0 : index
    %c0_125 = arith.constant 0 : index
    %349 = vector.load %arg6[%c2_123, %c0_124, %c0_125] : memref<3x32x32xbf16, #tpu.memory_space<vmem>>, vector<1x32x32xbf16>
    %350 = vector.shape_cast %349 : vector<1x32x32xbf16> to vector<32x32xbf16>
    %c2_126 = arith.constant 2 : index
    %c0_127 = arith.constant 0 : index
    %c0_128 = arith.constant 0 : index
    %351 = vector.load %arg7[%c2_126, %c0_127, %c0_128] : memref<3x1x32xf32, #tpu.memory_space<vmem>>, vector<1x1x32xf32>
    %352 = vector.shape_cast %351 : vector<1x1x32xf32> to vector<1x32xf32>
    %c2_129 = arith.constant 2 : index
    %c0_130 = arith.constant 0 : index
    %c0_131 = arith.constant 0 : index
    %353 = vector.load %arg8[%c2_129, %c0_130, %c0_131] : memref<3x32x64xbf16, #tpu.memory_space<vmem>>, vector<1x32x64xbf16>
    %354 = vector.shape_cast %353 : vector<1x32x64xbf16> to vector<32x64xbf16>
    %c2_132 = arith.constant 2 : index
    %c0_133 = arith.constant 0 : index
    %c0_134 = arith.constant 0 : index
    %355 = vector.load %arg9[%c2_132, %c0_133, %c0_134] : memref<3x1x64xf32, #tpu.memory_space<vmem>>, vector<1x1x64xf32>
    %356 = vector.shape_cast %355 : vector<1x1x64xf32> to vector<1x64xf32>
    %c2_135 = arith.constant 2 : index
    %c0_136 = arith.constant 0 : index
    %c0_137 = arith.constant 0 : index
    %357 = vector.load %arg10[%c2_135, %c0_136, %c0_137] : memref<3x64x32xbf16, #tpu.memory_space<vmem>>, vector<1x64x32xbf16>
    %358 = vector.shape_cast %357 : vector<1x64x32xbf16> to vector<64x32xbf16>
    %c2_138 = arith.constant 2 : index
    %c0_139 = arith.constant 0 : index
    %c0_140 = arith.constant 0 : index
    %359 = vector.load %arg11[%c2_138, %c0_139, %c0_140] : memref<3x1x32xf32, #tpu.memory_space<vmem>>, vector<1x1x32xf32>
    %360 = vector.shape_cast %359 : vector<1x1x32xf32> to vector<1x32xf32>
    %c2_141 = arith.constant 2 : index
    %c0_142 = arith.constant 0 : index
    %c0_143 = arith.constant 0 : index
    %361 = vector.load %arg12[%c2_141, %c0_142, %c0_143] : memref<3x4x32xf32, #tpu.memory_space<vmem>>, vector<1x4x32xf32>
    %362 = vector.shape_cast %361 : vector<1x4x32xf32> to vector<4x32xf32>
    %363 = arith.truncf %344 : vector<16x32xf32> to vector<16x32xbf16>
    %cst_144 = arith.constant dense<0.000000e+00> : vector<16x96xf32>
    %364 = tpu.matmul %363, %346, %cst_144 {dimension_numbers = #tpu.dot_dimension_numbers<[1], [0], [0], [1], [0, 0, 1, 1], [], []>} : vector<16x32xbf16>, vector<32x96xbf16>, vector<16x96xf32> -> vector<16x96xf32>
    %365 = vector.broadcast %348 : vector<1x96xf32> to vector<16x96xf32>
    %366 = arith.addf %364, %365 : vector<16x96xf32>
    %367 = vector.extract_strided_slice %366 {offsets = [0, 0], sizes = [16, 8], strides = [1, 1]} : vector<16x96xf32> to vector<16x8xf32>
    %368 = vector.extract_strided_slice %366 {offsets = [0, 8], sizes = [16, 8], strides = [1, 1]} : vector<16x96xf32> to vector<16x8xf32>
    %369 = vector.extract_strided_slice %366 {offsets = [0, 16], sizes = [16, 8], strides = [1, 1]} : vector<16x96xf32> to vector<16x8xf32>
    %370 = vector.extract_strided_slice %366 {offsets = [0, 24], sizes = [16, 8], strides = [1, 1]} : vector<16x96xf32> to vector<16x8xf32>
    %371 = vector.shape_cast %367 : vector<16x8xf32> to vector<1x16x8xf32>
    %372 = vector.shape_cast %368 : vector<16x8xf32> to vector<1x16x8xf32>
    %373 = vector.shape_cast %369 : vector<16x8xf32> to vector<1x16x8xf32>
    %374 = vector.shape_cast %370 : vector<16x8xf32> to vector<1x16x8xf32>
    %375 = tpu.concatenate %371, %372, %373, %374 in 0 : vector<1x16x8xf32>, vector<1x16x8xf32>, vector<1x16x8xf32>, vector<1x16x8xf32> -> vector<4x16x8xf32>
    %376 = vector.shape_cast %375 : vector<4x16x8xf32> to vector<8x8x8xf32>
    %377 = vector.extract_strided_slice %366 {offsets = [0, 32], sizes = [16, 8], strides = [1, 1]} : vector<16x96xf32> to vector<16x8xf32>
    %378 = vector.extract_strided_slice %366 {offsets = [0, 40], sizes = [16, 8], strides = [1, 1]} : vector<16x96xf32> to vector<16x8xf32>
    %379 = vector.extract_strided_slice %366 {offsets = [0, 48], sizes = [16, 8], strides = [1, 1]} : vector<16x96xf32> to vector<16x8xf32>
    %380 = vector.extract_strided_slice %366 {offsets = [0, 56], sizes = [16, 8], strides = [1, 1]} : vector<16x96xf32> to vector<16x8xf32>
    %381 = vector.shape_cast %377 : vector<16x8xf32> to vector<1x16x8xf32>
    %382 = vector.shape_cast %378 : vector<16x8xf32> to vector<1x16x8xf32>
    %383 = vector.shape_cast %379 : vector<16x8xf32> to vector<1x16x8xf32>
    %384 = vector.shape_cast %380 : vector<16x8xf32> to vector<1x16x8xf32>
    %385 = tpu.concatenate %381, %382, %383, %384 in 0 : vector<1x16x8xf32>, vector<1x16x8xf32>, vector<1x16x8xf32>, vector<1x16x8xf32> -> vector<4x16x8xf32>
    %386 = vector.shape_cast %385 : vector<4x16x8xf32> to vector<8x8x8xf32>
    %387 = vector.extract_strided_slice %366 {offsets = [0, 64], sizes = [16, 8], strides = [1, 1]} : vector<16x96xf32> to vector<16x8xf32>
    %388 = vector.extract_strided_slice %366 {offsets = [0, 72], sizes = [16, 8], strides = [1, 1]} : vector<16x96xf32> to vector<16x8xf32>
    %389 = vector.extract_strided_slice %366 {offsets = [0, 80], sizes = [16, 8], strides = [1, 1]} : vector<16x96xf32> to vector<16x8xf32>
    %390 = vector.extract_strided_slice %366 {offsets = [0, 88], sizes = [16, 8], strides = [1, 1]} : vector<16x96xf32> to vector<16x8xf32>
    %391 = vector.shape_cast %387 : vector<16x8xf32> to vector<1x16x8xf32>
    %392 = vector.shape_cast %388 : vector<16x8xf32> to vector<1x16x8xf32>
    %393 = vector.shape_cast %389 : vector<16x8xf32> to vector<1x16x8xf32>
    %394 = vector.shape_cast %390 : vector<16x8xf32> to vector<1x16x8xf32>
    %395 = tpu.concatenate %391, %392, %393, %394 in 0 : vector<1x16x8xf32>, vector<1x16x8xf32>, vector<1x16x8xf32>, vector<1x16x8xf32> -> vector<4x16x8xf32>
    %396 = vector.shape_cast %395 : vector<4x16x8xf32> to vector<8x8x8xf32>
    %397 = arith.truncf %376 : vector<8x8x8xf32> to vector<8x8x8xbf16>
    %398 = arith.truncf %386 : vector<8x8x8xf32> to vector<8x8x8xbf16>
    "tpu.trace_start"() <{level = 10 : i32, message = "bqe,bke->bqk"}> : () -> ()
    %cst_145 = arith.constant dense<0.000000e+00> : vector<8x8x8xf32>
    %399 = tpu.matmul %397, %398, %cst_145 {dimension_numbers = #tpu.dot_dimension_numbers<[2], [2], [1], [1], [0, 0, 0, 1, 1, 1], [0], [0]>} : vector<8x8x8xbf16>, vector<8x8x8xbf16>, vector<8x8x8xf32> -> vector<8x8x8xf32>
    "tpu.trace_stop"() : () -> ()
    %cst_146 = arith.constant 0.353553385 : f32
    %400 = vector.broadcast %cst_146 : f32 to vector<8x8x8xf32>
    %401 = arith.mulf %399, %400 : vector<8x8x8xf32>
    %cst_147 = arith.constant dense<0xFF800000> : vector<8x8xf32>
    %402 = vector.multi_reduction <maximumf>, %401, %cst_147 [2] : vector<8x8x8xf32> to vector<8x8xf32>
    %403 = vector.shape_cast %402 : vector<8x8xf32> to vector<8x8x1xf32>
    %404 = vector.broadcast %403 : vector<8x8x1xf32> to vector<8x8x8xf32>
    %405 = arith.subf %401, %404 : vector<8x8x8xf32>
    %406 = math.exp %405 : vector<8x8x8xf32>
    %cst_148 = arith.constant dense<0.000000e+00> : vector<8x8xf32>
    %407 = vector.multi_reduction <add>, %406, %cst_148 [2] : vector<8x8x8xf32> to vector<8x8xf32>
    %408 = vector.shape_cast %407 : vector<8x8xf32> to vector<8x8x1xf32>
    %409 = tpu.reciprocal %408 {approx = true} : vector<8x8x1xf32> -> vector<8x8x1xf32>
    %410 = vector.broadcast %409 : vector<8x8x1xf32> to vector<8x8x8xf32>
    %411 = arith.mulf %406, %410 : vector<8x8x8xf32>
    %412 = arith.truncf %411 : vector<8x8x8xf32> to vector<8x8x8xbf16>
    %413 = arith.truncf %396 : vector<8x8x8xf32> to vector<8x8x8xbf16>
    "tpu.trace_start"() <{level = 10 : i32, message = "bqk,bke->bqe"}> : () -> ()
    %cst_149 = arith.constant dense<0.000000e+00> : vector<8x8x8xf32>
    %414 = tpu.matmul %412, %413, %cst_149 {dimension_numbers = #tpu.dot_dimension_numbers<[2], [1], [1], [2], [0, 0, 0, 1, 1, 2], [0], [0]>} : vector<8x8x8xbf16>, vector<8x8x8xbf16>, vector<8x8x8xf32> -> vector<8x8x8xf32>
    "tpu.trace_stop"() : () -> ()
    %415 = vector.shape_cast %414 : vector<8x8x8xf32> to vector<4x16x8xf32>
    %416 = vector.extract_strided_slice %415 {offsets = [0, 0, 0], sizes = [1, 16, 8], strides = [1, 1, 1]} : vector<4x16x8xf32> to vector<1x16x8xf32>
    %417 = vector.shape_cast %416 : vector<1x16x8xf32> to vector<16x8xf32>
    %418 = vector.extract_strided_slice %415 {offsets = [1, 0, 0], sizes = [1, 16, 8], strides = [1, 1, 1]} : vector<4x16x8xf32> to vector<1x16x8xf32>
    %419 = vector.shape_cast %418 : vector<1x16x8xf32> to vector<16x8xf32>
    %420 = vector.extract_strided_slice %415 {offsets = [2, 0, 0], sizes = [1, 16, 8], strides = [1, 1, 1]} : vector<4x16x8xf32> to vector<1x16x8xf32>
    %421 = vector.shape_cast %420 : vector<1x16x8xf32> to vector<16x8xf32>
    %422 = vector.extract_strided_slice %415 {offsets = [3, 0, 0], sizes = [1, 16, 8], strides = [1, 1, 1]} : vector<4x16x8xf32> to vector<1x16x8xf32>
    %423 = vector.shape_cast %422 : vector<1x16x8xf32> to vector<16x8xf32>
    %424 = tpu.concatenate %417, %419, %421, %423 in 1 : vector<16x8xf32>, vector<16x8xf32>, vector<16x8xf32>, vector<16x8xf32> -> vector<16x32xf32>
    %425 = arith.truncf %424 : vector<16x32xf32> to vector<16x32xbf16>
    %cst_150 = arith.constant dense<0.000000e+00> : vector<16x32xf32>
    %426 = tpu.matmul %425, %350, %cst_150 {dimension_numbers = #tpu.dot_dimension_numbers<[1], [0], [0], [1], [0, 0, 1, 1], [], []>} : vector<16x32xbf16>, vector<32x32xbf16>, vector<16x32xf32> -> vector<16x32xf32>
    %427 = vector.broadcast %352 : vector<1x32xf32> to vector<16x32xf32>
    %428 = arith.addf %426, %427 : vector<16x32xf32>
    %429 = arith.addf %344, %428 : vector<16x32xf32>
    %430 = vector.extract_strided_slice %362 {offsets = [0, 0], sizes = [1, 32], strides = [1, 1]} : vector<4x32xf32> to vector<1x32xf32>
    %431 = vector.extract_strided_slice %362 {offsets = [1, 0], sizes = [1, 32], strides = [1, 1]} : vector<4x32xf32> to vector<1x32xf32>
    %cst_151 = arith.constant dense<0.000000e+00> : vector<16xf32>
    %432 = vector.multi_reduction <add>, %429, %cst_151 [1] : vector<16x32xf32> to vector<16xf32>
    %433 = vector.shape_cast %432 : vector<16xf32> to vector<16x1xf32>
    %cst_152 = arith.constant 3.200000e+01 : f32
    %434 = vector.broadcast %cst_152 : f32 to vector<16x1xf32>
    %435 = arith.divf %433, %434 : vector<16x1xf32>
    %436 = vector.broadcast %435 : vector<16x1xf32> to vector<16x32xf32>
    %437 = arith.subf %429, %436 : vector<16x32xf32>
    %438 = arith.mulf %437, %437 : vector<16x32xf32>
    %cst_153 = arith.constant dense<0.000000e+00> : vector<16xf32>
    %439 = vector.multi_reduction <add>, %438, %cst_153 [1] : vector<16x32xf32> to vector<16xf32>
    %440 = vector.shape_cast %439 : vector<16xf32> to vector<16x1xf32>
    %cst_154 = arith.constant 3.200000e+01 : f32
    %441 = vector.broadcast %cst_154 : f32 to vector<16x1xf32>
    %442 = arith.divf %440, %441 : vector<16x1xf32>
    %443 = vector.broadcast %435 : vector<16x1xf32> to vector<16x32xf32>
    %444 = arith.subf %429, %443 : vector<16x32xf32>
    %cst_155 = arith.constant 9.99999974E-6 : f32
    %445 = vector.broadcast %cst_155 : f32 to vector<16x1xf32>
    %446 = arith.addf %442, %445 : vector<16x1xf32>
    %447 = math.rsqrt %446 : vector<16x1xf32>
    %448 = vector.broadcast %447 : vector<16x1xf32> to vector<16x32xf32>
    %449 = arith.mulf %444, %448 : vector<16x32xf32>
    %450 = vector.broadcast %430 : vector<1x32xf32> to vector<16x32xf32>
    %451 = arith.mulf %449, %450 : vector<16x32xf32>
    %452 = vector.broadcast %431 : vector<1x32xf32> to vector<16x32xf32>
    %453 = arith.addf %451, %452 : vector<16x32xf32>
    %454 = arith.truncf %453 : vector<16x32xf32> to vector<16x32xbf16>
    %cst_156 = arith.constant dense<0.000000e+00> : vector<16x64xf32>
    %455 = tpu.matmul %454, %354, %cst_156 {dimension_numbers = #tpu.dot_dimension_numbers<[1], [0], [0], [1], [0, 0, 1, 1], [], []>} : vector<16x32xbf16>, vector<32x64xbf16>, vector<16x64xf32> -> vector<16x64xf32>
    %456 = vector.broadcast %356 : vector<1x64xf32> to vector<16x64xf32>
    %457 = arith.addf %455, %456 : vector<16x64xf32>
    %cst_157 = arith.constant 0.000000e+00 : f32
    %458 = vector.broadcast %cst_157 : f32 to vector<16x64xf32>
    %459 = arith.maximumf %457, %458 : vector<16x64xf32>
    %460 = arith.truncf %459 : vector<16x64xf32> to vector<16x64xbf16>
    %cst_158 = arith.constant dense<0.000000e+00> : vector<16x32xf32>
    %461 = tpu.matmul %460, %358, %cst_158 {dimension_numbers = #tpu.dot_dimension_numbers<[1], [0], [0], [1], [0, 0, 1, 1], [], []>} : vector<16x64xbf16>, vector<64x32xbf16>, vector<16x32xf32> -> vector<16x32xf32>
    %462 = vector.broadcast %360 : vector<1x32xf32> to vector<16x32xf32>
    %463 = arith.addf %461, %462 : vector<16x32xf32>
    %464 = arith.addf %453, %463 : vector<16x32xf32>
    %465 = vector.extract_strided_slice %362 {offsets = [2, 0], sizes = [1, 32], strides = [1, 1]} : vector<4x32xf32> to vector<1x32xf32>
    %466 = vector.extract_strided_slice %362 {offsets = [3, 0], sizes = [1, 32], strides = [1, 1]} : vector<4x32xf32> to vector<1x32xf32>
    %cst_159 = arith.constant dense<0.000000e+00> : vector<16xf32>
    %467 = vector.multi_reduction <add>, %464, %cst_159 [1] : vector<16x32xf32> to vector<16xf32>
    %468 = vector.shape_cast %467 : vector<16xf32> to vector<16x1xf32>
    %cst_160 = arith.constant 3.200000e+01 : f32
    %469 = vector.broadcast %cst_160 : f32 to vector<16x1xf32>
    %470 = arith.divf %468, %469 : vector<16x1xf32>
    %471 = vector.broadcast %470 : vector<16x1xf32> to vector<16x32xf32>
    %472 = arith.subf %464, %471 : vector<16x32xf32>
    %473 = arith.mulf %472, %472 : vector<16x32xf32>
    %cst_161 = arith.constant dense<0.000000e+00> : vector<16xf32>
    %474 = vector.multi_reduction <add>, %473, %cst_161 [1] : vector<16x32xf32> to vector<16xf32>
    %475 = vector.shape_cast %474 : vector<16xf32> to vector<16x1xf32>
    %cst_162 = arith.constant 3.200000e+01 : f32
    %476 = vector.broadcast %cst_162 : f32 to vector<16x1xf32>
    %477 = arith.divf %475, %476 : vector<16x1xf32>
    %478 = vector.broadcast %470 : vector<16x1xf32> to vector<16x32xf32>
    %479 = arith.subf %464, %478 : vector<16x32xf32>
    %cst_163 = arith.constant 9.99999974E-6 : f32
    %480 = vector.broadcast %cst_163 : f32 to vector<16x1xf32>
    %481 = arith.addf %477, %480 : vector<16x1xf32>
    %482 = math.rsqrt %481 : vector<16x1xf32>
    %483 = vector.broadcast %482 : vector<16x1xf32> to vector<16x32xf32>
    %484 = arith.mulf %479, %483 : vector<16x32xf32>
    %485 = vector.broadcast %465 : vector<1x32xf32> to vector<16x32xf32>
    %486 = arith.mulf %484, %485 : vector<16x32xf32>
    %487 = vector.broadcast %466 : vector<1x32xf32> to vector<16x32xf32>
    %488 = arith.addf %486, %487 : vector<16x32xf32>
    %c1_164 = arith.constant 1 : index
    %c0_165 = arith.constant 0 : index
    %c0_166 = arith.constant 0 : index
    %489 = vector.load %arg13[%c1_164, %c0_165, %c0_166] : memref<2x2x32xf32, #tpu.memory_space<vmem>>, vector<1x2x32xf32>
    %490 = vector.shape_cast %489 : vector<1x2x32xf32> to vector<2x32xf32>
    %491 = vector.extract_strided_slice %490 {offsets = [0, 0], sizes = [1, 32], strides = [1, 1]} : vector<2x32xf32> to vector<1x32xf32>
    %492 = vector.extract_strided_slice %490 {offsets = [1, 0], sizes = [1, 32], strides = [1, 1]} : vector<2x32xf32> to vector<1x32xf32>
    %cst_167 = arith.constant dense<0.000000e+00> : vector<16xf32>
    %493 = vector.multi_reduction <add>, %488, %cst_167 [1] : vector<16x32xf32> to vector<16xf32>
    %494 = vector.shape_cast %493 : vector<16xf32> to vector<16x1xf32>
    %cst_168 = arith.constant 3.200000e+01 : f32
    %495 = vector.broadcast %cst_168 : f32 to vector<16x1xf32>
    %496 = arith.divf %494, %495 : vector<16x1xf32>
    %497 = vector.broadcast %496 : vector<16x1xf32> to vector<16x32xf32>
    %498 = arith.subf %488, %497 : vector<16x32xf32>
    %499 = arith.mulf %498, %498 : vector<16x32xf32>
    %cst_169 = arith.constant dense<0.000000e+00> : vector<16xf32>
    %500 = vector.multi_reduction <add>, %499, %cst_169 [1] : vector<16x32xf32> to vector<16xf32>
    %501 = vector.shape_cast %500 : vector<16xf32> to vector<16x1xf32>
    %cst_170 = arith.constant 3.200000e+01 : f32
    %502 = vector.broadcast %cst_170 : f32 to vector<16x1xf32>
    %503 = arith.divf %501, %502 : vector<16x1xf32>
    %504 = vector.broadcast %496 : vector<16x1xf32> to vector<16x32xf32>
    %505 = arith.subf %488, %504 : vector<16x32xf32>
    %cst_171 = arith.constant 9.99999974E-6 : f32
    %506 = vector.broadcast %cst_171 : f32 to vector<16x1xf32>
    %507 = arith.addf %503, %506 : vector<16x1xf32>
    %508 = math.rsqrt %507 : vector<16x1xf32>
    %509 = vector.broadcast %508 : vector<16x1xf32> to vector<16x32xf32>
    %510 = arith.mulf %505, %509 : vector<16x32xf32>
    %511 = vector.broadcast %491 : vector<1x32xf32> to vector<16x32xf32>
    %512 = arith.mulf %510, %511 : vector<16x32xf32>
    %513 = vector.broadcast %492 : vector<1x32xf32> to vector<16x32xf32>
    %514 = arith.addf %512, %513 : vector<16x32xf32>
    %515 = vector.extract_strided_slice %341 {offsets = [0, 0], sizes = [16, 32], strides = [1, 1]} : vector<32x32xf32> to vector<16x32xf32>
    %516 = vector.extract_strided_slice %514 {offsets = [0, 0], sizes = [8, 32], strides = [1, 1]} : vector<16x32xf32> to vector<8x32xf32>
    %517 = vector.extract_strided_slice %341 {offsets = [16, 0], sizes = [16, 32], strides = [1, 1]} : vector<32x32xf32> to vector<16x32xf32>
    %518 = vector.extract_strided_slice %514 {offsets = [8, 0], sizes = [8, 32], strides = [1, 1]} : vector<16x32xf32> to vector<8x32xf32>
    %519 = tpu.concatenate %515, %516, %517, %518 in 0 : vector<16x32xf32>, vector<8x32xf32>, vector<16x32xf32>, vector<8x32xf32> -> vector<48x32xf32>
    %c0_172 = arith.constant 0 : index
    %c0_173 = arith.constant 0 : index
    %520 = vector.load %arg14[%c0_172, %c0_173] : memref<48x32xf32, #tpu.memory_space<vmem>>, vector<48x32xf32>
    tpu.vector_store %arg14[%c0_172, %c0_173], %519 {strides = array<i32>} : memref<48x32xf32, #tpu.memory_space<vmem>>, vector<48x32xf32>,
    return
  }
}

</mosaic_0001>

<bundles_post_ra>
// kernel: forward.1
= control target key start
LH: loop header
LB: loop body
LE: loop exit
PB: predicated region body
PF: predicated region fallthrough
CT: control target
= control target key end

     0   :  { %vm81_vm0 = vcmask 1045504   ;;  %vm74_vm1 = vcmask 97280   ;;  %s5597_s0 = inlined_call_operand.vmem [shape: bf16[32,12], index: 0, kind: input, shape index: {}]   ;;  %s5598_s1 = inlined_call_operand.vmem [shape: f32[32,32], index: 1, kind: input, shape index: {}]   ;;  %s5599_s2 = inlined_call_operand.vmem [shape: bf16[12,32], index: 2, kind: input, shape index: {}]   ;;  %s5600_s3 = inlined_call_operand.vmem [shape: bf16[3,32,32], index: 3, kind: input, shape index: {}]   ;;  %s5601_s4 = inlined_call_operand.vmem [shape: bf16[3,32,96], index: 4, kind: input, shape index: {}]   ;;  %s5602_s5 = inlined_call_operand.vmem [shape: f32[3,1,96], index: 5, kind: input, shape index: {}]   ;;  %s5603_s6 = inlined_call_operand.vmem [shape: bf16[3,32,32], index: 6, kind: input, shape index: {}]   ;;  %s5604_s7 = inlined_call_operand.vmem [shape: f32[3,1,32], index: 7, kind: input, shape index: {}]   ;;  %s5605_s8 = inlined_call_operand.vmem [shape: bf16[3,32,64], index: 8, kind: input, shape index: {}]   ;;  %s5606_s9 = inlined_call_operand.vmem [shape: f32[3,1,64], index: 9, kind: input, shape index: {}]   ;;  %s5607_s10 = inlined_call_operand.vmem [shape: bf16[3,64,32], index: 10, kind: input, shape index: {}]   ;;  %s5608_s11 = inlined_call_operand.vmem [shape: f32[3,1,32], index: 11, kind: input, shape index: {}]   ;;  %s5609_s12 = inlined_call_operand.vmem [shape: f32[3,4,32], index: 12, kind: input, shape index: {}]   ;;  %s5610_s13 = inlined_call_operand.vmem [shape: f32[2,2,32], index: 13, kind: input, shape index: {}]   ;;  %s5611_s14 = inlined_call_operand.hbm [shape: f32[48,32], index: 14, kind: output, shape index: {}]  }
   0x1   :  { %v3592_v0 = vld [vmem:[%s5599_s2] sm:$0xf]  ;;  %v3875_v1 = vld [vmem:[%s5599_s2] sm:$0x30] }
   0x2   :  { %v3593_v2 = vor.u32 %v3875_v1, %v3592_v0  ;;  %v3873_v3 = vld [vmem:[%s5597_s0] sm:$0xff] }
   0x4   :  { %v83_v4 = vsel %vm81_vm0, %v3593_v2, 0 }
   0x5   :  { %92 = vmatpush.bf16.msra.mxu0 %v83_v4 }
   0x6   :  { %19 = vsyncpa [#allocation3], 0  ;;  %v3874_v5 = vld [vmem:[%s5597_s0 + $0x8] sm:$0xff]  ;;  %v3879_v6 = vld [vmem:[%s5600_s3 + $0x18] sm:$0xff]  ;;  %vm163_vm2 = vcmask 261120   ;;  %vm112_vm3 = vcmask 1040384  }
   0x7   :  { %176 = vmatpush.bf16.msra.mxu1 %v3879_v6  ;;  %v3877_v7 = vld [vmem:[%s5600_s3 + $0x8] sm:$0xff]  ;;  %v3878_v9 = vld [vmem:[%s5600_s3 + $0x10] sm:$0xff]  ;;  %v3876_v10 = vld [vmem:[%s5600_s3] sm:$0xff]  ;;  %vm123_vm4 = vcmask 1046528   ;;  %s4310_s26 = smov 120   ;;  %s4311_s27 = smov 112  }
   0x8   :  { %3594 = vmatmul.msk.bf16.vlgmr.msra.gmra.mxu0 %vm74_vm1, %v3873_v3  ;;  %v3881_v8 = vld [vmem:[%s5600_s3 + $0x28] sm:$0xff]  ;;  %213 = vmatpush.bf16.msra.mxu2 %v3877_v7  ;;  %v3880_v11 = vld [vmem:[%s5600_s3 + $0x20] sm:$0xff]  ;;  %v57_v30 = vld [vmem:[%s5598_s1 + $0x10] sm:$0xff]  ;;  %s4312_s0 = smov 96   ;;  %s4313_s28 = smov 104   ;;  %vm404_vm5 = vcmask 64512  }
   0x9   :  { %257 = vmatpush.bf16.msra.mxu3 %v3881_v8  ;;  %v55_v13 = vld [vmem:[%s5598_s1] sm:$0xff]  ;;  %v56_v15 = vld [vmem:[%s5598_s1 + $0x8] sm:$0xff]  ;;  %v58_v32 = vld [vmem:[%s5598_s1 + $0x18] sm:$0xff]  ;;  %s4314_s29 = smov 64   ;;  %vm630_vm6 = vcmask 130048   ;;  %s4315_s30 = smov 8  }
   0xa   :  { %v3883_v46 = vld [vmem:[%s5601_s4 + $0x8] sm:$0xff]  ;;  %v3882_v47 = vld [vmem:[%s5601_s4] sm:$0xff]  ;;  %s4316_s15 = smov 16   ;;  %s4317_s16 = smov 24   ;;  %vm1079_vm7 = vcmask 195584  }
   0xb   :  { %177 = vmatpush.bf16.msra.mxu1 %v3878_v9  ;;  %328 = vmatpush.bf16.msrb.mxu0 %v3883_v46  ;;  %v4058_v7 = vld [vmem:[%s5602_s5] ss:$0 sm:$0xff] }
   0xc   :  { %214 = vmatpush.bf16.msra.mxu2 %v3876_v10 }
   0xd   :  { %258 = vmatpush.bf16.msra.mxu3 %v3880_v11 }
   0xf   :  { %329 = vmatpush.bf16.msrb.mxu0 %v3882_v47 }
  0x18   :  { %3595 = vmatmul.msk.bf16.gmra.mxu0 %vm74_vm1, %v3874_v5 }
  0x85   :  { %v94_v12 = vpop.f32.mrf.mxu0 }
  0x86   :  { %v95_v14 = vadd.f32 %v94_v12, %v55_v13 }
  0x88   :  { %v113_v18 = vrot.slane %v95_v14, 7  ;;  %v124_v19 = vrot.slane %v95_v14, 1 }
  0x8d   :  { %v96_v16 = vpop.f32.mrf.mxu0 }
  0x8e   :  { %v97_v17 = vadd.f32 %v96_v16, %v56_v15 }
  0x90   :  { %v106_v20 = vrot.slane %v97_v17, 7  ;;  %v125_v21 = vrot.slane %v97_v17, 1  ;;  %v144_v22 = vpack.c.bf16 %v97_v17, %v95_v14 }
  0x92   :  { %3608 = vmatmul.msk.bf16.vlgmr.msra.gmra.mxu1 %vm163_vm2, %v144_v22  ;;  %v114_v23 = vsel %vm112_vm3, %v113_v18, %v106_v20  ;;  %v121_v24 = vsel %vm112_vm3, %v106_v20, %v113_v18  ;;  %v126_v25 = vsel %vm123_vm4, %v124_v19, %v125_v21  ;;  %v136_v26 = vsel %vm123_vm4, %v125_v21, %v124_v19 }
  0x93   :  { %v138_v27 = vpack.c.bf16 %v114_v23, %v121_v24  ;;  %v226_v28 = vpack.c.bf16 %v136_v26, %v126_v25 }
  0x95   :  { %v99_v29 = vpop.f32.mrf.mxu0  ;;  %3618 = vmatmul.msk.bf16.vlgmr.msra.gmra.mxu2 %vm163_vm2, %v138_v27  ;;  %3632 = vmatmul.msk.bf16.vlgmr.msra.gmra.mxu3 %vm163_vm2, %v226_v28 }
  0x96   :  { %v100_v31 = vadd.f32 %v99_v29, %v57_v30 }
  0x98   :  { %v115_v35 = vrot.slane %v100_v31, 7  ;;  %v127_v36 = vrot.slane %v100_v31, 1 }
  0x9d   :  { %v101_v33 = vpop.f32.mrf.mxu0 }
  0x9e   :  { %v102_v34 = vadd.f32 %v101_v33, %v58_v32 }
  0xa0   :  { %v107_v37 = vrot.slane %v102_v34, 7  ;;  %v128_v38 = vrot.slane %v102_v34, 1  ;;  %v145_v39 = vpack.c.bf16 %v102_v34, %v100_v31 }
  0xa2   :  { %3609 = vmatmul.msk.bf16.gmra.mxu1 %vm163_vm2, %v145_v39  ;;  %v116_v40 = vsel %vm112_vm3, %v115_v35, %v107_v37  ;;  %v122_v41 = vsel %vm112_vm3, %v107_v37, %v115_v35  ;;  %v129_v42 = vsel %vm123_vm4, %v127_v36, %v128_v38  ;;  %v137_v43 = vsel %vm123_vm4, %v128_v38, %v127_v36 }
  0xa3   :  { %v139_v44 = vpack.c.bf16 %v116_v40, %v122_v41  ;;  %v227_v45 = vpack.c.bf16 %v137_v43, %v129_v42 }
  0xa5   :  { %3619 = vmatmul.msk.bf16.gmra.mxu2 %vm163_vm2, %v139_v44  ;;  %3633 = vmatmul.msk.bf16.gmra.mxu3 %vm163_vm2, %v227_v45 }
 0x10f   :  { %v179_v48 = vpop.f32.mrf.mxu1 }
 0x117   :  { %v181_v51 = vpop.f32.mrf.mxu1 }
 0x118   :  { %v216_v49 = vpop.f32.mrf.mxu2  ;;  %v260_v50 = vpop.f32.mrf.mxu3 }
 0x119   :  { %v217_v52 = vadd.f32 %v216_v49, %v179_v48 }
 0x11b   :  { %v4458_v56 = vadd.f32 %v260_v50, %v217_v52 }
 0x11f   :  { %v184_v59 = vpop.f32.mrf.mxu1 }
 0x120   :  { %v218_v53 = vpop.f32.mrf.mxu2  ;;  %v262_v54 = vpop.f32.mrf.mxu3 }
 0x121   :  { %v219_v55 = vadd.f32 %v218_v53, %v181_v51 }
 0x123   :  { %v4460_v57 = vadd.f32 %v262_v54, %v219_v55 }
 0x125   :  { %v299_v58 = vpack.c.bf16 %v4460_v57, %v4458_v56 }
 0x127   :  { %3642 = vmatmul.msk.bf16.vlgmr.msrb.gmra.mxu0 %vm163_vm2, %v299_v58  ;;  %v186_v63 = vpop.f32.mrf.mxu1 }
 0x128   :  { %v221_v60 = vpop.f32.mrf.mxu2  ;;  %v265_v61 = vpop.f32.mrf.mxu3 }
 0x129   :  { %v222_v62 = vadd.f32 %v221_v60, %v184_v59 }
 0x12b   :  { %v4465_v3 = vadd.f32 %v265_v61, %v222_v62 }
 0x130   :  { %v223_v0 = vpop.f32.mrf.mxu2  ;;  %v267_v2 = vpop.f32.mrf.mxu3 }
 0x131   :  { %v224_v1 = vadd.f32 %v223_v0, %v186_v63 }
 0x133   :  { %v4467_v4 = vadd.f32 %v267_v2, %v224_v1 }
 0x135   :  { %v300_v5 = vpack.c.bf16 %v4467_v4, %v4465_v3 }
 0x137   :  { %3643 = vmatmul.msk.bf16.gmra.mxu0 %vm163_vm2, %v300_v5 }
 0x1a4   :  { %v331_v6 = vpop.f32.mrf.mxu0 }
 0x1a5   :  { %v332_v9 = vadd.f32 %v4058_v7, %v331_v6 }
 0x1a7   :  { %v381_v23 = vpack.c.bf16 %v332_v9, %v332_v9 }
 0x1a9   :  { %v399_v25 = vunpack.c.l.b16 %v381_v23 }
 0x1ac   :  { %v333_v8 = vpop.f32.mrf.mxu0 }
 0x1ad   :  { %v334_v10 = vadd.f32 %v4058_v7, %v333_v8 }
 0x1af   :  { %v3923_v11 = vpack.i.bf16 %v334_v10, %v332_v9  ;;  %v382_v22 = vpack.c.bf16 %v334_v10, %v334_v10 }
 0x1b1   :  { %3924 = vrot.lane.b32.xlu0 %v3923_v11, %s4310_s26  ;;  %v400_v24 = vunpack.c.l.b16 %v382_v22 }
 0x1b3   :  { %v4485_v26 = vpack.c.b16 %v400_v24, %v399_v25 }
 0x1b4   :  { %v336_v12 = vpop.f32.mrf.mxu0 }
 0x1b5   :  { %v337_v13 = vadd.f32 %v4058_v7, %v336_v12 }
 0x1b7   :  { %v383_v16 = vpack.c.bf16 %v337_v13, %v337_v13 }
 0x1b9   :  { %3929 = vrot.lane.b32.xlu0 %v3923_v11, %s4311_s27  ;;  %v427_v19 = vunpack.c.l.b16 %v383_v16 }
 0x1bc   :  { %v338_v14 = vpop.f32.mrf.mxu0 }
 0x1bd   :  { %v339_v15 = vadd.f32 %v4058_v7, %v338_v14 }
 0x1bf   :  { %v3943_v17 = vpack.i.bf16 %v339_v15, %v337_v13  ;;  %v384_v18 = vpack.c.bf16 %v339_v15, %v339_v15 }
 0x1c1   :  { %3944 = vrot.lane.b32.xlu2 %v3943_v17, %s4311_s27  ;;  %3934 = vrot.lane.b32.xlu1 %v3943_v17, %s4310_s26  ;;  %v428_v20 = vunpack.c.l.b16 %v384_v18 }
 0x1c3   :  { %v4479_v21 = vpack.c.b16 %v428_v20, %v427_v19 }
 0x1c5   :  { %430 = vrot.lane.b32.xlu0 %v4479_v21, %s4312_s0 }
 0x1c9   :  { %3949 = vrot.lane.b32.xlu2 %v3943_v17, %s4313_s28  ;;  %3939 = vrot.lane.b32.xlu1 %v3923_v11, %s4313_s28 }
 0x1d1   :  { %402 = vrot.lane.b32.xlu1 %v4485_v26, %s4312_s0 }
 0x21b   :  { %v3945_v34 = vpop.permute.xlu2 %3944 }
 0x21c   :  { %v3947_v39 = vunpack.i.h.bf16 %v3945_v34  ;;  %v3946_v40 = vunpack.i.l.bf16 %v3945_v34 }
 0x21e   :  { %v392_v45 = vpack.c.bf16 %v3947_v39, %v3947_v39  ;;  %v391_v46 = vpack.c.bf16 %v3946_v40, %v3946_v40 }
 0x220   :  { %v536_v52 = vunpack.c.l.b16 %v392_v45  ;;  %v535_v53 = vunpack.c.l.b16 %v391_v46 }
 0x222   :  { %v4495_v0 = vpack.c.b16 %v536_v52, %v535_v53 }
 0x223   :  { %v3925_v27 = vpop.permute.xlu0 %3924  ;;  %v3950_v49 = vpop.permute.xlu2 %3949 }
 0x224   :  { %v3927_v28 = vunpack.i.h.bf16 %v3925_v27  ;;  %v3926_v29 = vunpack.i.l.bf16 %v3925_v27  ;;  %v3952_v58 = vunpack.i.h.bf16 %v3950_v49  ;;  %v3951_v59 = vunpack.i.l.bf16 %v3950_v49 }
 0x226   :  { %v386_v30 = vpack.c.bf16 %v3927_v28, %v3927_v28  ;;  %v385_v31 = vpack.c.bf16 %v3926_v29, %v3926_v29  ;;  %v396_v2 = vpack.c.bf16 %v3952_v58, %v3952_v58  ;;  %v395_v5 = vpack.c.bf16 %v3951_v59, %v3951_v59 }
 0x228   :  { %v455_v32 = vunpack.c.l.b16 %v386_v30  ;;  %v454_v33 = vunpack.c.l.b16 %v385_v31  ;;  %v590_v11 = vunpack.c.l.b16 %v396_v2  ;;  %v589_v12 = vunpack.c.l.b16 %v395_v5 }
 0x22a   :  { %v4489_v35 = vpack.c.b16 %v455_v32, %v454_v33  ;;  %v4507_v17 = vpack.c.b16 %v590_v11, %v589_v12 }
 0x22b   :  { %v3930_v36 = vpop.permute.xlu0 %3929 }
 0x22c   :  { %v3932_v37 = vunpack.i.h.bf16 %v3930_v36  ;;  %v3931_v38 = vunpack.i.l.bf16 %v3930_v36  ;;  %457 = vrot.lane.b32.xlu2 %v4489_v35, %s4312_s0 }
 0x22e   :  { %v390_v41 = vpack.c.bf16 %v3932_v37, %v3932_v37  ;;  %v389_v42 = vpack.c.bf16 %v3931_v38, %v3931_v38 }
 0x230   :  { %v509_v43 = vunpack.c.l.b16 %v390_v41  ;;  %v508_v44 = vunpack.c.l.b16 %v389_v42 }
 0x232   :  { %v510_v47 = vpack.c.b16 %v509_v43, %v508_v44 }
 0x233   :  { %v3935_v48 = vpop.permute.xlu1 %3934 }
 0x234   :  { %v3937_v50 = vunpack.i.h.bf16 %v3935_v48  ;;  %v3936_v51 = vunpack.i.l.bf16 %v3935_v48  ;;  %511 = vrot.lane.b32.xlu0 %v510_v47, %s4312_s0 }
 0x236   :  { %v388_v54 = vpack.c.bf16 %v3937_v50, %v3937_v50  ;;  %v387_v55 = vpack.c.bf16 %v3936_v51, %v3936_v51 }
 0x237   :  { %v431_v60 = vpop.permute.xlu0 %430 }
 0x238   :  { %v482_v61 = vunpack.c.l.b16 %v388_v54  ;;  %v481_v62 = vunpack.c.l.b16 %v387_v55  ;;  %v436_v63 = vsel %vm404_vm5, %v431_v60, 0 }
 0x239   :  { %445 = vmatpush.bf16.xpose.msrb.mxu2 %v436_v63 }
 0x23a   :  { %v4497_v1 = vpack.c.b16 %v482_v61, %v481_v62 }
 0x23b   :  { %v3940_v6 = vpop.permute.xlu1 %3939 }
 0x23c   :  { %v3942_v7 = vunpack.i.h.bf16 %v3940_v6  ;;  %v3941_v8 = vunpack.i.l.bf16 %v3940_v6  ;;  %538 = vrot.lane.b32.xlu0 %v4495_v0, %s4312_s0  ;;  %484 = vrot.lane.b32.xlu1 %v4497_v1, %s4312_s0 }
 0x23e   :  { %v394_v9 = vpack.c.bf16 %v3942_v7, %v3942_v7  ;;  %v393_v10 = vpack.c.bf16 %v3941_v8, %v3941_v8 }
 0x240   :  { %v563_v13 = vunpack.c.l.b16 %v394_v9  ;;  %v562_v14 = vunpack.c.l.b16 %v393_v10  ;;  %3645 = vmatmul.msk.bf16.vlgmr.msrb.gmra.mxu2 %vm404_vm5, %v4479_v21 }
 0x242   :  { %v4505_v15 = vpack.c.b16 %v563_v13, %v562_v14 }
 0x243   :  { %v403_v16 = vpop.permute.xlu1 %402 }
 0x244   :  { %565 = vrot.lane.b32.xlu2 %v4505_v15, %s4312_s0  ;;  %828 = vrot.lane.b32.xlu0 %v4485_v26, %s4314_s29  ;;  %v409_v18 = vsel %vm404_vm5, %v403_v16, 0 }
 0x245   :  { %592 = vrot.lane.b32.xlu1 %v4507_v17, %s4312_s0  ;;  %418 = vmatpush.bf16.xpose.msrb.mxu1 %v409_v18 }
 0x24c   :  { %928 = vrot.lane.b32.xlu2 %v510_v47, %s4314_s29  ;;  %3644 = vmatmul.msk.bf16.vlgmr.msrb.gmra.mxu1 %vm404_vm5, %v4485_v26 }
 0x24d   :  { %878 = vrot.lane.b32.xlu1 %v4489_v35, %s4314_s29 }
 0x255   :  { %853 = vrot.lane.b32.xlu1 %v4479_v21, %s4314_s29 }
 0x286   :  { %v458_v19 = vpop.permute.xlu2 %457 }
 0x287   :  { %v463_v20 = vsel %vm404_vm5, %v458_v19, 0 }
 0x288   :  { %472 = vmatpush.bf16.xpose.msrb.mxu3 %v463_v20 }
 0x28f   :  { %3646 = vmatmul.msk.bf16.vlgmr.msrb.gmra.mxu3 %vm404_vm5, %v4489_v35 }
 0x29e   :  { %v566_v22 = vpop.permute.xlu2 %565 }
 0x29f   :  { %v571_v23 = vsel %vm404_vm5, %v566_v22, 0 }
 0x2a0   :  { %580 = vmatpush.bf16.xpose.msra.mxu0 %v571_v23 }
 0x2a6   :  { %v512_v24 = vpop.permute.xlu0 %511  ;;  %v929_v31 = vpop.permute.xlu2 %928 }
 0x2a7   :  { %v517_v25 = vsel %vm404_vm5, %v512_v24, 0  ;;  %3650 = vmatmul.msk.bf16.vlgmr.msra.gmra.mxu0 %vm404_vm5, %v4505_v15 }
 0x2a8   :  { %526 = vmatpush.bf16.xpose.msra.mxu2 %v517_v25 }
 0x2ae   :  { %v539_v26 = vpop.permute.xlu0 %538  ;;  %v485_v21 = vpop.permute.xlu1 %484 }
 0x2af   :  { %v544_v27 = vsel %vm404_vm5, %v539_v26, 0  ;;  %v490_v28 = vsel %vm404_vm5, %v485_v21, 0  ;;  %3648 = vmatmul.msk.bf16.vlgmr.msra.gmra.mxu2 %vm404_vm5, %v510_v47 }
 0x2b0   :  { %499 = vmatpush.bf16.xpose.msra.mxu1 %v490_v28  ;;  %553 = vmatpush.bf16.xpose.msra.mxu3 %v544_v27 }
 0x2b6   :  { %v829_v29 = vpop.permute.xlu0 %828 }
 0x2b7   :  { %v593_v30 = vpop.permute.xlu1 %592  ;;  %3647 = vmatmul.msk.bf16.vlgmr.msra.gmra.mxu1 %vm404_vm5, %v4497_v1  ;;  %3649 = vmatmul.msk.bf16.vlgmr.msra.gmra.mxu3 %vm404_vm5, %v4495_v0 }
 0x2b8   :  { %v598_v32 = vsel %vm404_vm5, %v593_v30, 0  ;;  %841 = vmatpush.bf16.msrb.mxu2 %v829_v29 }
 0x2b9   :  { %607 = vmatpush.bf16.xpose.msrb.mxu1 %v598_v32 }
 0x2bc   :  { %941 = vmatpush.bf16.msra.mxu2 %v929_v31 }
 0x2bf   :  { %v879_v33 = vpop.permute.xlu1 %878 }
 0x2c0   :  { %891 = vmatpush.bf16.msrb.mxu0 %v879_v33 }
 0x2c3   :  { %v447_v37 = vpop.f32.mrf.mxu2 }
 0x2c4   :  { %v616_v39 = vmul.f32 0.35355338, %v447_v37 }
 0x2c6   :  { %v637_v42 = vsel %vm630_vm6, %v616_v39, -inf }
 0x2c7   :  { %v854_v34 = vpop.permute.xlu1 %853  ;;  %3651 = vmatmul.msk.bf16.vlgmr.msrb.gmra.mxu1 %vm404_vm5, %v4507_v17 }
 0x2c8   :  { %866 = vmatpush.bf16.msrb.mxu3 %v854_v34 }
 0x2c9   :  { %v420_v35 = vpop.f32.mrf.mxu1 }
 0x2ca   :  { %v614_v36 = vmul.f32 0.35355338, %v420_v35 }
 0x2cb   :  { %v449_v44 = vpop.f32.mrf.mxu2 }
 0x2cc   :  { %v631_v38 = vsel %vm630_vm6, %v614_v36, -inf  ;;  %v4543_v45 = vmul.f32 0.35355338, %v449_v44 }
 0x2cd   :  { %632 = vmax.xlane.f32.xlu2 %v631_v38 }
 0x2ce   :  { %v640_v46 = vsel %vm630_vm6, %v4543_v45, -inf }
 0x2d1   :  { %v422_v40 = vpop.f32.mrf.mxu1 }
 0x2d2   :  { %v615_v41 = vmul.f32 0.35355338, %v422_v40 }
 0x2d4   :  { %v634_v43 = vsel %vm630_vm6, %v615_v41, -inf }
 0x2d5   :  { %638 = vmax.xlane.f32.xlu2 %v637_v42  ;;  %635 = vmax.xlane.f32.xlu0 %v634_v43 }
 0x2dd   :  { %641 = vmax.xlane.f32.xlu0 %v640_v46 }
 0x312   :  { %v474_v47 = vpop.f32.mrf.mxu3 }
 0x313   :  { %v4547_v48 = vmul.f32 0.35355338, %v474_v47 }
 0x315   :  { %v643_v49 = vsel %vm630_vm6, %v4547_v48, -inf }
 0x316   :  { %644 = vmax.xlane.f32.xlu1 %v643_v49 }
 0x31a   :  { %v476_v58 = vpop.f32.mrf.mxu3 }
 0x31b   :  { %v4579_v26 = vmul.f32 0.35355338, %v476_v58 }
 0x31d   :  { %v646_v28 = vsel %vm630_vm6, %v4579_v26, -inf }
 0x324   :  { %v582_v50 = vpop.f32.mrf.mxu0 }
 0x325   :  { %v4551_v51 = vmul.f32 0.35355338, %v582_v50 }
 0x327   :  { %v667_v52 = vsel %vm630_vm6, %v4551_v51, -inf }
 0x328   :  { %668 = vmax.xlane.f32.xlu2 %v667_v52 }
 0x32c   :  { %v584_v53 = vpop.f32.mrf.mxu0 }
 0x32d   :  { %v4555_v54 = vmul.f32 0.35355338, %v584_v53 }
 0x32f   :  { %v670_v55 = vsel %vm630_vm6, %v4555_v54, -inf }
 0x330   :  { %671 = vmax.xlane.f32.xlu0 %v670_v55 }
 0x332   :  { %v528_v59 = vpop.f32.mrf.mxu2 }
 0x333   :  { %v4559_v60 = vmul.f32 0.35355338, %v528_v59 }
 0x334   :  { %v501_v61 = vpop.f32.mrf.mxu1 }
 0x335   :  { %v4561_v62 = vmul.f32 0.35355338, %v501_v61  ;;  %v655_v63 = vsel %vm630_vm6, %v4559_v60, -inf }
 0x336   :  { %656 = vmax.xlane.f32.xlu1 %v655_v63 }
 0x337   :  { %v649_v2 = vsel %vm630_vm6, %v4561_v62, -inf }
 0x338   :  { %650 = vmax.xlane.f32.xlu0 %v649_v2 }
 0x33a   :  { %v555_v5 = vpop.f32.mrf.mxu3  ;;  %v530_v30 = vpop.f32.mrf.mxu2 }
 0x33b   :  { %v4567_v6 = vmul.f32 0.35355338, %v555_v5  ;;  %v4591_v33 = vmul.f32 0.35355338, %v530_v30 }
 0x33c   :  { %v503_v8 = vpop.f32.mrf.mxu1 }
 0x33d   :  { %v661_v7 = vsel %vm630_vm6, %v4567_v6, -inf  ;;  %v4571_v10 = vmul.f32 0.35355338, %v503_v8  ;;  %v658_v38 = vsel %vm630_vm6, %v4591_v33, -inf }
 0x33e   :  { %662 = vmax.xlane.f32.xlu1 %v661_v7 }
 0x33f   :  { %v652_v13 = vsel %vm630_vm6, %v4571_v10, -inf }
 0x340   :  { %v633_v9 = vpop.xlane.xlu2 %632 }
 0x341   :  { %v679_v11 = vsub.f32 %v614_v36, %v633_v9 }
 0x342   :  { %v557_v40 = vpop.f32.mrf.mxu3 }
 0x343   :  { %v695_v12 = vmul.f32 1.442695, %v679_v11  ;;  %v4604_v43 = vmul.f32 0.35355338, %v557_v40 }
 0x344   :  { %v609_v22 = vpop.f32.mrf.mxu1 }
 0x345   :  { %4070 = vpow2.f32 %v695_v12  ;;  %v4595_v36 = vmul.f32 0.35355338, %v609_v22  ;;  %v664_v44 = vsel %vm630_vm6, %v4604_v43, -inf }
 0x346   :  { %653 = vmax.xlane.f32.xlu1 %v652_v13 }
 0x348   :  { %v639_v14 = vpop.xlane.xlu2 %638  ;;  %v636_v16 = vpop.xlane.xlu0 %635 }
 0x349   :  { %v681_v18 = vsub.f32 %v616_v39, %v639_v14  ;;  %v680_v19 = vsub.f32 %v615_v41, %v636_v16  ;;  %v673_v41 = vsel %vm630_vm6, %v4595_v36, -inf }
 0x34b   :  { %v4575_v20 = vpop.eup %4070  ;;  %v699_v23 = vmul.f32 1.442695, %v681_v18  ;;  %v697_v24 = vmul.f32 1.442695, %v680_v19 }
 0x34c   :  { %v727_v25 = vsel %vm630_vm6, %v4575_v20, 0.0  ;;  %v611_v31 = vpop.f32.mrf.mxu1 }
 0x34d   :  { %4072 = vpow2.f32 %v699_v23  ;;  %728 = vadd.xlane.f32.xlu2 %v727_v25  ;;  %v4593_v34 = vmul.f32 0.35355338, %v611_v31 }
 0x34e   :  { %4074 = vpow2.f32 %v697_v24 }
 0x34f   :  { %v676_v39 = vsel %vm630_vm6, %v4593_v34, -inf }
 0x350   :  { %v642_v35 = vpop.xlane.xlu0 %641 }
 0x351   :  { %v682_v37 = vsub.f32 %v4543_v45, %v642_v35 }
 0x353   :  { %v4581_v21 = vpop.eup %4072  ;;  %v701_v42 = vmul.f32 1.442695, %v682_v37 }
 0x354   :  { %v4583_v27 = vpop.eup %4074  ;;  %v733_v29 = vsel %vm630_vm6, %v4581_v21, 0.0 }
 0x355   :  { %647 = vmax.xlane.f32.xlu2 %v646_v28  ;;  %v730_v32 = vsel %vm630_vm6, %v4583_v27, 0.0  ;;  %734 = vadd.xlane.f32.xlu1 %v733_v29  ;;  %4076 = vpow2.f32 %v701_v42 }
 0x356   :  { %731 = vadd.xlane.f32.xlu0 %v730_v32 }
 0x35b   :  { %v4608_v45 = vpop.eup %4076 }
 0x35c   :  { %v736_v46 = vsel %vm630_vm6, %v4608_v45, 0.0 }
 0x35d   :  { %659 = vmax.xlane.f32.xlu2 %v658_v38  ;;  %677 = vmax.xlane.f32.xlu1 %v676_v39 }
 0x35e   :  { %674 = vmax.xlane.f32.xlu0 %v673_v41 }
 0x365   :  { %665 = vmax.xlane.f32.xlu2 %v664_v44 }
 0x36d   :  { %737 = vadd.xlane.f32.xlu2 %v736_v46 }
 0x372   :  { %903 = vrot.lane.b32.xlu0 %v4497_v1, %s4314_s29 }
 0x389   :  { %v645_v47 = vpop.xlane.xlu1 %644 }
 0x38a   :  { %v683_v49 = vsub.f32 %v4547_v48, %v645_v47 }
 0x38c   :  { %v703_v50 = vmul.f32 1.442695, %v683_v49 }
 0x38e   :  { %4078 = vpow2.f32 %v703_v50 }
 0x394   :  { %v4615_v52 = vpop.eup %4078 }
 0x395   :  { %v739_v53 = vsel %vm630_vm6, %v4615_v52, 0.0 }
 0x396   :  { %740 = vadd.xlane.f32.xlu1 %v739_v53 }
 0x39b   :  { %v669_v55 = vpop.xlane.xlu2 %668 }
 0x39c   :  { %v691_v58 = vsub.f32 %v4551_v51, %v669_v55 }
 0x39e   :  { %v719_v59 = vmul.f32 1.442695, %v691_v58 }
 0x3a0   :  { %4080 = vpow2.f32 %v719_v59 }
 0x3a3   :  { %v672_v61 = vpop.xlane.xlu0 %671 }
 0x3a4   :  { %v692_v63 = vsub.f32 %v4555_v54, %v672_v61 }
 0x3a6   :  { %v4621_v1 = vpop.eup %4080  ;;  %v721_v2 = vmul.f32 1.442695, %v692_v63 }
 0x3a7   :  { %v763_v48 = vsel %vm630_vm6, %v4621_v1, 0.0 }
 0x3a8   :  { %4082 = vpow2.f32 %v721_v2  ;;  %764 = vadd.xlane.f32.xlu2 %v763_v48 }
 0x3a9   :  { %v657_v5 = vpop.xlane.xlu1 %656 }
 0x3aa   :  { %v687_v7 = vsub.f32 %v4559_v60, %v657_v5 }
 0x3ab   :  { %v651_v8 = vpop.xlane.xlu0 %650 }
 0x3ac   :  { %v711_v9 = vmul.f32 1.442695, %v687_v7  ;;  %v685_v51 = vsub.f32 %v4561_v62, %v651_v8 }
 0x3ae   :  { %v4627_v11 = vpop.eup %4082  ;;  %4084 = vpow2.f32 %v711_v9  ;;  %v707_v12 = vmul.f32 1.442695, %v685_v51 }
 0x3af   :  { %v766_v54 = vsel %vm630_vm6, %v4627_v11, 0.0 }
 0x3b0   :  { %4086 = vpow2.f32 %v707_v12  ;;  %767 = vadd.xlane.f32.xlu2 %v766_v54 }
 0x3b1   :  { %v663_v13 = vpop.xlane.xlu1 %662 }
 0x3b2   :  { %v689_v14 = vsub.f32 %v4567_v6, %v663_v13 }
 0x3b4   :  { %v4632_v16 = vpop.eup %4084  ;;  %v715_v18 = vmul.f32 1.442695, %v689_v14 }
 0x3b5   :  { %v751_v60 = vsel %vm630_vm6, %v4632_v16, 0.0 }
 0x3b6   :  { %v4636_v19 = vpop.eup %4086  ;;  %4088 = vpow2.f32 %v715_v18  ;;  %752 = vadd.xlane.f32.xlu1 %v751_v60 }
 0x3b7   :  { %v745_v62 = vsel %vm630_vm6, %v4636_v19, 0.0 }
 0x3b8   :  { %746 = vadd.xlane.f32.xlu0 %v745_v62 }
 0x3b9   :  { %v654_v24 = vpop.xlane.xlu1 %653 }
 0x3bc   :  { %v4640_v22 = vpop.eup %4088 }
 0x3bd   :  { %v757_v23 = vsel %vm630_vm6, %v4640_v22, 0.0 }
 0x3be   :  { %758 = vadd.xlane.f32.xlu1 %v757_v23 }
 0x3c0   :  { %v729_v6 = vpop.xlane.xlu2 %728 }
 0x3c1   :  { %4090 = vrcp.f32 %v729_v6 }
 0x3c7   :  { %v4091_v30 = vpop.eup %4090 }
 0x3c8   :  { %v648_v25 = vpop.xlane.xlu2 %647  ;;  %v791_v32 = vmul.f32 %v4091_v30, %v4575_v20  ;;  %v735_v35 = vpop.xlane.xlu1 %734 }
 0x3c9   :  { %v684_v28 = vsub.f32 %v4579_v26, %v648_v25  ;;  %v732_v29 = vpop.xlane.xlu0 %731  ;;  %v686_v26 = vsub.f32 %v4571_v10, %v654_v24 }
 0x3ca   :  { %4092 = vrcp.f32 %v732_v29  ;;  %v807_v39 = vpack.c.bf16 %v791_v32, %v791_v32 }
 0x3cb   :  { %v705_v31 = vmul.f32 1.442695, %v684_v28 }
 0x3cc   :  { %v825_v49 = vunpack.c.l.b16 %v807_v39 }
 0x3cd   :  { %4094 = vpow2.f32 %v705_v31 }
 0x3d0   :  { %v4093_v37 = vpop.eup %4092  ;;  %v660_v38 = vpop.xlane.xlu2 %659 }
 0x3d1   :  { %v792_v40 = vmul.f32 %v4093_v37, %v4583_v27  ;;  %v688_v41 = vsub.f32 %v4591_v33, %v660_v38  ;;  %v709_v27 = vmul.f32 1.442695, %v686_v26  ;;  %v678_v53 = vpop.xlane.xlu1 %677  ;;  %v675_v61 = vpop.xlane.xlu0 %674 }
 0x3d2   :  { %v694_v10 = vsub.f32 %v4593_v34, %v678_v53  ;;  %v693_v62 = vsub.f32 %v4595_v36, %v675_v61 }
 0x3d3   :  { %v4648_v42 = vpop.eup %4094  ;;  %v808_v44 = vpack.c.bf16 %v792_v40, %v792_v40  ;;  %v713_v46 = vmul.f32 1.442695, %v688_v41 }
 0x3d4   :  { %v742_v47 = vsel %vm630_vm6, %v4648_v42, 0.0  ;;  %v723_v23 = vmul.f32 1.442695, %v693_v62 }
 0x3d5   :  { %v826_v20 = vunpack.c.l.b16 %v808_v44  ;;  %4096 = vpow2.f32 %v713_v46  ;;  %743 = vadd.xlane.f32.xlu2 %v742_v47 }
 0x3d6   :  { %4098 = vrcp.f32 %v735_v35 }
 0x3d7   :  { %v827_v50 = vpack.c.b16 %v826_v20, %v825_v49  ;;  %953 = vrot.lane.b32.xlu1 %v4495_v0, %s4314_s29  ;;  %4100 = vpow2.f32 %v709_v27  ;;  %v725_v0 = vmul.f32 1.442695, %v694_v10 }
 0x3d8   :  { %v666_v33 = vpop.xlane.xlu2 %665 }
 0x3d9   :  { %v690_v55 = vsub.f32 %v4604_v43, %v666_v33  ;;  %3652 = vmatmul.msk.bf16.vlgmr.msrb.gmra.mxu2 %vm630_vm6, %v827_v50 }
 0x3db   :  { %v4657_v58 = vpop.eup %4096  ;;  %v717_v59 = vmul.f32 1.442695, %v690_v55 }
 0x3dc   :  { %v754_v63 = vsel %vm630_vm6, %v4657_v58, 0.0  ;;  %v4099_v2 = vpop.eup %4098 }
 0x3dd   :  { %4102 = vpow2.f32 %v717_v59  ;;  %755 = vadd.xlane.f32.xlu2 %v754_v63  ;;  %v4664_v48 = vpop.eup %4100  ;;  %v793_v34 = vmul.f32 %v4099_v2, %v4581_v21 }
 0x3de   :  { %v748_v9 = vsel %vm630_vm6, %v4664_v48, 0.0 }
 0x3df   :  { %1003 = vrot.lane.b32.xlu1 %v4507_v17, %s4314_s29  ;;  %v809_v51 = vpack.c.bf16 %v793_v34, %v793_v34 }
 0x3e0   :  { %v738_v43 = vpop.xlane.xlu2 %737 }
 0x3e1   :  { %4104 = vrcp.f32 %v738_v43  ;;  %v850_v14 = vunpack.c.l.b16 %v809_v51 }
 0x3e2   :  { %4106 = vpow2.f32 %v725_v0 }
 0x3e3   :  { %v4666_v5 = vpop.eup %4102  ;;  %4108 = vpow2.f32 %v723_v23 }
 0x3e4   :  { %v904_v7 = vpop.permute.xlu0 %903  ;;  %v760_v8 = vsel %vm630_vm6, %v4666_v5, 0.0 }
 0x3e5   :  { %916 = vmatpush.bf16.msra.mxu1 %v904_v7  ;;  %761 = vadd.xlane.f32.xlu0 %v760_v8 }
 0x3e6   :  { %749 = vadd.xlane.f32.xlu2 %v748_v9 }
 0x3e7   :  { %v4105_v17 = vpop.eup %4104 }
 0x3e8   :  { %v794_v12 = vmul.f32 %v4105_v17, %v4608_v45  ;;  %v4674_v54 = vpop.eup %4106 }
 0x3e9   :  { %v772_v21 = vsel %vm630_vm6, %v4674_v54, 0.0  ;;  %v4682_v45 = vpop.eup %4108 }
 0x3ea   :  { %v810_v13 = vpack.c.bf16 %v794_v12, %v794_v12  ;;  %v769_v6 = vsel %vm630_vm6, %v4682_v45, 0.0 }
 0x3ec   :  { %v851_v18 = vunpack.c.l.b16 %v810_v13 }
 0x3ed   :  { %773 = vadd.xlane.f32.xlu0 %v772_v21 }
 0x3ee   :  { %v852_v60 = vpack.c.b16 %v851_v18, %v850_v14 }
 0x3f0   :  { %3653 = vmatmul.msk.bf16.vlgmr.msrb.gmra.mxu3 %vm630_vm6, %v852_v60 }
 0x3fe   :  { %978 = vrot.lane.b32.xlu2 %v4505_v15, %s4314_s29 }
 0x409   :  { %v741_v24 = vpop.xlane.xlu1 %740 }
 0x40a   :  { %4110 = vrcp.f32 %v741_v24 }
 0x410   :  { %v4111_v32 = vpop.eup %4110 }
 0x411   :  { %v795_v36 = vmul.f32 %v4111_v32, %v4615_v52 }
 0x413   :  { %v811_v37 = vpack.c.bf16 %v795_v36, %v795_v36 }
 0x415   :  { %v875_v26 = vunpack.c.l.b16 %v811_v37 }
 0x41b   :  { %v765_v25 = vpop.xlane.xlu2 %764 }
 0x423   :  { %v768_v29 = vpop.xlane.xlu2 %767 }
 0x427   :  { %770 = vadd.xlane.f32.xlu2 %v769_v6 }
 0x429   :  { %v753_v28 = vpop.xlane.xlu1 %752 }
 0x42b   :  { %v747_v38 = vpop.xlane.xlu0 %746 }
 0x431   :  { %v759_v30 = vpop.xlane.xlu1 %758 }
 0x448   :  { %v744_v31 = vpop.xlane.xlu2 %743 }
 0x449   :  { %4112 = vrcp.f32 %v744_v31  ;;  %v954_v15 = vpop.permute.xlu1 %953 }
 0x44a   :  { %966 = vmatpush.bf16.msra.mxu3 %v954_v15  ;;  %4114 = vrcp.f32 %v753_v28 }
 0x44b   :  { %4116 = vrcp.f32 %v768_v29 }
 0x44f   :  { %v4113_v35 = vpop.eup %4112 }
 0x450   :  { %v796_v39 = vmul.f32 %v4113_v35, %v4648_v42  ;;  %v756_v40 = vpop.xlane.xlu2 %755  ;;  %v4115_v41 = vpop.eup %4114 }
 0x451   :  { %4118 = vrcp.f32 %v756_v40  ;;  %v1004_v44 = vpop.permute.xlu1 %1003  ;;  %v799_v47 = vmul.f32 %v4115_v41, %v4632_v16  ;;  %v4117_v52 = vpop.eup %4116 }
 0x452   :  { %4120 = vrcp.f32 %v765_v25  ;;  %v812_v46 = vpack.c.bf16 %v796_v39, %v796_v39  ;;  %1016 = vmatpush.bf16.msrb.mxu1 %v1004_v44  ;;  %v804_v61 = vmul.f32 %v4117_v52, %v4627_v11 }
 0x453   :  { %4122 = vrcp.f32 %v759_v30  ;;  %v815_v53 = vpack.c.bf16 %v799_v47, %v799_v47 }
 0x454   :  { %4124 = vrcp.f32 %v747_v38  ;;  %v876_v49 = vunpack.c.l.b16 %v812_v46 }
 0x455   :  { %v925_v0 = vunpack.c.l.b16 %v815_v53 }
 0x456   :  { %v877_v20 = vpack.c.b16 %v876_v49, %v875_v26 }
 0x457   :  { %v4119_v50 = vpop.eup %4118 }
 0x458   :  { %v4121_v27 = vpop.eup %4120  ;;  %v800_v42 = vmul.f32 %v4119_v50, %v4657_v58  ;;  %v762_v33 = vpop.xlane.xlu0 %761  ;;  %3654 = vmatmul.msk.bf16.vlgmr.msrb.gmra.mxu0 %vm630_vm6, %v877_v20  ;;  %v820_v58 = vpack.c.bf16 %v804_v61, %v804_v61 }
 0x459   :  { %v4123_v55 = vpop.eup %4122  ;;  %4126 = vrcp.f32 %v762_v33  ;;  %v750_v10 = vpop.xlane.xlu2 %749  ;;  %v803_v16 = vmul.f32 %v4121_v27, %v4621_v1 }
 0x45a   :  { %v4125_v59 = vpop.eup %4124  ;;  %v816_v63 = vpack.c.bf16 %v800_v42, %v800_v42  ;;  %4128 = vrcp.f32 %v750_v10  ;;  %v801_v43 = vmul.f32 %v4123_v55, %v4640_v22  ;;  %v976_v14 = vunpack.c.l.b16 %v820_v58 }
 0x45b   :  { %v797_v34 = vmul.f32 %v4125_v59, %v4636_v19  ;;  %v819_v17 = vpack.c.bf16 %v803_v16, %v803_v16  ;;  %v3884_v16 = vld [vmem:[%s5603_s6] sm:$0xff] }
 0x45c   :  { %v926_v2 = vunpack.c.l.b16 %v816_v63  ;;  %v817_v51 = vpack.c.bf16 %v801_v43, %v801_v43  ;;  %v843_v38 = vpop.f32.mrf.mxu2  ;;  %v3885_v63 = vld [vmem:[%s5603_s6 + $0x8] sm:$0xff] }
 0x45d   :  { %v813_v11 = vpack.c.bf16 %v797_v34, %v797_v34  ;;  %v975_v21 = vunpack.c.l.b16 %v819_v17  ;;  %1113 = vmatpush.bf16.msrb.mxu2 %v3885_v63 }
 0x45e   :  { %v927_v7 = vpack.c.b16 %v926_v2, %v925_v0  ;;  %v950_v19 = vunpack.c.l.b16 %v817_v51 }
 0x45f   :  { %v4127_v8 = vpop.eup %4126  ;;  %v900_v62 = vunpack.c.l.b16 %v813_v11  ;;  %v977_v6 = vpack.c.b16 %v976_v14, %v975_v21 }
 0x460   :  { %v4129_v9 = vpop.eup %4128  ;;  %v802_v12 = vmul.f32 %v4127_v8, %v4666_v5  ;;  %3656 = vmatmul.msk.bf16.vlgmr.msra.gmra.mxu2 %vm630_vm6, %v927_v7 }
 0x461   :  { %v798_v13 = vmul.f32 %v4129_v9, %v4664_v48  ;;  %v979_v1 = vpop.permute.xlu2 %978  ;;  %v774_v48 = vpop.xlane.xlu0 %773  ;;  %1114 = vmatpush.bf16.msrb.mxu2 %v3884_v16 }
 0x462   :  { %v818_v18 = vpack.c.bf16 %v802_v12, %v802_v12  ;;  %991 = vmatpush.bf16.msra.mxu0 %v979_v1  ;;  %4130 = vrcp.f32 %v774_v48 }
 0x463   :  { %v814_v22 = vpack.c.bf16 %v798_v13, %v798_v13 }
 0x464   :  { %v951_v60 = vunpack.c.l.b16 %v818_v18  ;;  %v845_v40 = vpop.f32.mrf.mxu2 }
 0x465   :  { %v901_v23 = vunpack.c.l.b16 %v814_v22 }
 0x466   :  { %v952_v24 = vpack.c.b16 %v951_v60, %v950_v19 }
 0x467   :  { %v902_v25 = vpack.c.b16 %v901_v23, %v900_v62 }
 0x468   :  { %3657 = vmatmul.msk.bf16.vlgmr.msra.gmra.mxu3 %vm630_vm6, %v952_v24  ;;  %3658 = vmatmul.msk.bf16.vlgmr.msra.gmra.mxu0 %vm630_vm6, %v977_v6  ;;  %v4131_v28 = vpop.eup %4130 }
 0x469   :  { %3655 = vmatmul.msk.bf16.vlgmr.msra.gmra.mxu1 %vm630_vm6, %v902_v25  ;;  %v806_v29 = vmul.f32 %v4131_v28, %v4674_v54 }
 0x46b   :  { %v822_v31 = vpack.c.bf16 %v806_v29, %v806_v29 }
 0x46d   :  { %v1001_v36 = vunpack.c.l.b16 %v822_v31 }
 0x473   :  { %v868_v41 = vpop.f32.mrf.mxu3 }
 0x47b   :  { %v870_v47 = vpop.f32.mrf.mxu3 }
 0x49a   :  { %v771_v5 = vpop.xlane.xlu2 %770 }
 0x49b   :  { %4132 = vrcp.f32 %v771_v5 }
 0x4a1   :  { %v4133_v30 = vpop.eup %4132 }
 0x4a2   :  { %v805_v32 = vmul.f32 %v4133_v30, %v4682_v45 }
 0x4a4   :  { %v821_v15 = vpack.c.bf16 %v805_v32, %v805_v32 }
 0x4a6   :  { %v1000_v35 = vunpack.c.l.b16 %v821_v15  ;;  %v4059_v15 = vld [vmem:[%s5604_s7] ss:$0 sm:$0xff] }
 0x4a8   :  { %v1002_v37 = vpack.c.b16 %v1001_v36, %v1000_v35 }
 0x4aa   :  { %3659 = vmatmul.msk.bf16.vlgmr.msrb.gmra.mxu1 %vm630_vm6, %v1002_v37 }
 0x4d5   :  { %v893_v39 = vpop.f32.mrf.mxu0 }
 0x4dd   :  { %v895_v44 = vpop.f32.mrf.mxu0 }
 0x4de   :  { %v3953_v46 = vpack.i.bf16 %v895_v44, %v893_v39 }
 0x4e0   :  { %3954 = vrot.lane.b32.xlu2 %v3953_v46, %s4315_s30 }
 0x4e3   :  { %v943_v54 = vpop.f32.mrf.mxu2 }
 0x4e5   :  { %v993_v26 = vpop.f32.mrf.mxu0 }
 0x4e6   :  { %v918_v49 = vpop.f32.mrf.mxu1 }
 0x4eb   :  { %v945_v45 = vpop.f32.mrf.mxu2  ;;  %v968_v27 = vpop.f32.mrf.mxu3 }
 0x4ec   :  { %v3958_v52 = vpack.i.bf16 %v945_v45, %v943_v54 }
 0x4ed   :  { %v995_v20 = vpop.f32.mrf.mxu0 }
 0x4ee   :  { %v3963_v50 = vpack.i.bf16 %v995_v20, %v993_v26  ;;  %3959 = vrot.lane.b32.xlu1 %v3958_v52, %s4316_s15  ;;  %v920_v53 = vpop.f32.mrf.mxu1  ;;  %v4318_v20 = vmov 32.0  }
 0x4ef   :  { %v3968_v42 = vpack.i.bf16 %v920_v53, %v918_v49  ;;  %4134 = vrcp.f32 %v4318_v20 }
 0x4f0   :  { %3964 = vrot.lane.b32.xlu0 %v3963_v50, %s4317_s16 }
 0x4f3   :  { %v970_v33 = vpop.f32.mrf.mxu3 }
 0x4f4   :  { %v3973_v55 = vpack.i.bf16 %v970_v33, %v968_v27 }
 0x4f5   :  { %v4135_v50 = vpop.eup %4134 }
 0x4f6   :  { %3969 = vrot.lane.b32.xlu1 %v3968_v42, %s4315_s30  ;;  %v1143_v27 = vmul.f32 32.0, %v4135_v50  ;;  %vm1147_vm8 = vweird.f32 %v4135_v50 }
 0x4f8   :  { %v1144_v53 = vsub.f32 1.0, %v1143_v27 }
 0x4fa   :  { %v1145_v42 = vmul.f32 %v4135_v50, %v1144_v53 }
 0x4fc   :  { %v1146_v33 = vadd.f32 %v4135_v50, %v1145_v42 }
 0x4fe   :  { %3974 = vrot.lane.b32.xlu1 %v3973_v55, %s4316_s15  ;;  %v4741_v55 = vsel %vm1147_vm8, %v4135_v50, %v1146_v33 }
 0x527   :  { %v1018_v10 = vpop.f32.mrf.mxu1 }
 0x52f   :  { %v1020_v59 = vpop.f32.mrf.mxu1 }
 0x530   :  { %v3978_v61 = vpack.i.bf16 %v1020_v59, %v1018_v10 }
 0x532   :  { %3979 = vrot.lane.b32.xlu2 %v3978_v61, %s4317_s16 }
 0x53a   :  { %v3955_v0 = vpop.permute.xlu2 %3954 }
 0x53b   :  { %v3957_v43 = vunpack.i.h.bf16 %v3955_v0  ;;  %v3956_v2 = vunpack.i.l.bf16 %v3955_v0 }
 0x53d   :  { %v1072_v8 = vsel %vm404_vm5, %v845_v40, %v3957_v43  ;;  %v1071_v9 = vsel %vm404_vm5, %v843_v38, %v3956_v2 }
 0x560   :  { %v3960_v34 = vpop.permute.xlu1 %3959 }
 0x561   :  { %v3962_v58 = vunpack.i.h.bf16 %v3960_v34  ;;  %v3961_v7 = vunpack.i.l.bf16 %v3960_v34 }
 0x562   :  { %v3965_v17 = vpop.permute.xlu0 %3964 }
 0x563   :  { %v1076_v51 = vsel %vm630_vm6, %v1072_v8, %v3962_v58  ;;  %v1075_v12 = vsel %vm630_vm6, %v1071_v9, %v3961_v7  ;;  %v3967_v11 = vunpack.i.h.bf16 %v3965_v17  ;;  %v3966_v13 = vunpack.i.l.bf16 %v3965_v17 }
 0x565   :  { %v1080_v1 = vsel %vm1079_vm7, %v1075_v12, %v3966_v13  ;;  %v1081_v14 = vsel %vm1079_vm7, %v1076_v51, %v3967_v11 }
 0x566   :  { %v1084_v18 = vpack.c.bf16 %v1081_v14, %v1080_v1 }
 0x568   :  { %3668 = vmatmul.msk.bf16.vlgmr.msrb.gmra.mxu2 %vm163_vm2, %v1084_v18  ;;  %v3970_v22 = vpop.permute.xlu1 %3969  ;;  %v3887_v18 = vld [vmem:[%s5605_s8 + $0x8] sm:$0xff] }
 0x569   :  { %v3972_v19 = vunpack.i.h.bf16 %v3970_v22  ;;  %v3971_v60 = vunpack.i.l.bf16 %v3970_v22  ;;  %1264 = vmatpush.bf16.msrb.mxu3 %v3887_v18  ;;  %v3888_v18 = vld [vmem:[%s5607_s10] sm:$0xff] }
 0x56b   :  { %v1074_v24 = vsel %vm404_vm5, %v870_v47, %v3972_v19  ;;  %v1073_v25 = vsel %vm404_vm5, %v868_v41, %v3971_v60 }
 0x570   :  { %v3975_v21 = vpop.permute.xlu1 %3974 }
 0x571   :  { %v3977_v62 = vunpack.i.h.bf16 %v3975_v21  ;;  %v3976_v23 = vunpack.i.l.bf16 %v3975_v21  ;;  %v3886_v21 = vld [vmem:[%s5605_s8] sm:$0xff] }
 0x572   :  { %1265 = vmatpush.bf16.msrb.mxu3 %v3886_v21  ;;  %v4060_v21 = vld [vmem:[%s5606_s9] ss:$0 sm:$0xff] }
 0x573   :  { %v1077_v28 = vsel %vm630_vm6, %v1073_v25, %v3976_v23  ;;  %v1078_v29 = vsel %vm630_vm6, %v1074_v24, %v3977_v62 }
 0x58c   :  { %v3980_v6 = vpop.permute.xlu2 %3979 }
 0x58d   :  { %v3982_v48 = vunpack.i.h.bf16 %v3980_v6  ;;  %v3981_v5 = vunpack.i.l.bf16 %v3980_v6 }
 0x58f   :  { %v1082_v30 = vsel %vm1079_vm7, %v1077_v28, %v3981_v5  ;;  %v1083_v31 = vsel %vm1079_vm7, %v1078_v29, %v3982_v48 }
 0x590   :  { %v1085_v32 = vpack.c.bf16 %v1083_v31, %v1082_v30 }
 0x592   :  { %3669 = vmatmul.msk.bf16.gmra.mxu2 %vm163_vm2, %v1085_v32  ;;  %v4770_v32 = vld [vmem:[%s5609_s12] sm:$0xf] }
 0x5eb   :  { %v1116_v36 = vpop.f32.mrf.mxu2 }
 0x5ec   :  { %v1117_v35 = vadd.f32 %v4059_v15, %v1116_v36 }
 0x5ee   :  { %v1126_v37 = vadd.f32 %v1117_v35, %v4458_v56 }
 0x5f0   :  { %v1130_v38 = vsel %vm163_vm2, %v1126_v37, 0.0 }
 0x5f1   :  { %1131 = vadd.xlane.f32.xlu1 %v1130_v38 }
 0x5f3   :  { %v1118_v39 = vpop.f32.mrf.mxu2 }
 0x5f4   :  { %v1119_v40 = vadd.f32 %v4059_v15, %v1118_v39 }
 0x5f6   :  { %v1127_v41 = vadd.f32 %v1119_v40, %v4460_v57 }
 0x5f8   :  { %v1133_v44 = vsel %vm163_vm2, %v1127_v41, 0.0 }
 0x5f9   :  { %1134 = vadd.xlane.f32.xlu0 %v1133_v44 }
 0x615   :  { %v1121_v46 = vpop.f32.mrf.mxu2 }
 0x616   :  { %v1122_v54 = vadd.f32 %v4059_v15, %v1121_v46  ;;  %v1230_v46 = vperm.slane %v4770_v32, 1 }
 0x618   :  { %v1128_v26 = vadd.f32 %v1122_v54, %v4465_v3 }
 0x61a   :  { %v1136_v47 = vsel %vm163_vm2, %v1128_v26, 0.0 }
 0x61b   :  { %1137 = vadd.xlane.f32.xlu2 %v1136_v47 }
 0x61d   :  { %v1123_v49 = vpop.f32.mrf.mxu2 }
 0x61e   :  { %v1124_v45 = vadd.f32 %v4059_v15, %v1123_v49 }
 0x620   :  { %v1129_v56 = vadd.f32 %v1124_v45, %v4467_v4 }
 0x622   :  { %v1139_v52 = vsel %vm163_vm2, %v1129_v56, 0.0 }
 0x623   :  { %1140 = vadd.xlane.f32.xlu1 %v1139_v52 }
 0x664   :  { %v1132_v3 = vpop.xlane.xlu1 %1131 }
 0x665   :  { %v1149_v10 = vmul.f32 %v4741_v55, %v1132_v3 }
 0x667   :  { %v1153_v59 = vsub.f32 %v1126_v37, %v1149_v10  ;;  %v1225_v37 = vperm.slane %v4770_v32, 0 }
 0x669   :  { %v1157_v61 = vmul.f32 %v1153_v59, %v1153_v59 }
 0x66b   :  { %v1161_v63 = vsel %vm163_vm2, %v1157_v61, 0.0 }
 0x66c   :  { %v1135_v16 = vpop.xlane.xlu0 %1134  ;;  %1162 = vadd.xlane.f32.xlu2 %v1161_v63 }
 0x66d   :  { %v1150_v0 = vmul.f32 %v4741_v55, %v1135_v16 }
 0x66f   :  { %v1154_v43 = vsub.f32 %v1127_v41, %v1150_v0 }
 0x671   :  { %v1158_v2 = vmul.f32 %v1154_v43, %v1154_v43 }
 0x673   :  { %v1164_v34 = vsel %vm163_vm2, %v1158_v2, 0.0 }
 0x674   :  { %1165 = vadd.xlane.f32.xlu0 %v1164_v34 }
 0x68e   :  { %v1138_v58 = vpop.xlane.xlu2 %1137 }
 0x68f   :  { %v1151_v7 = vmul.f32 %v4741_v55, %v1138_v58 }
 0x691   :  { %v4748_v8 = vsub.f32 %v1128_v26, %v1151_v7 }
 0x693   :  { %v1159_v9 = vmul.f32 %v4748_v8, %v4748_v8 }
 0x695   :  { %v1167_v17 = vsel %vm163_vm2, %v1159_v9, 0.0 }
 0x696   :  { %1168 = vadd.xlane.f32.xlu1 %v1167_v17  ;;  %v1141_v51 = vpop.xlane.xlu1 %1140 }
 0x697   :  { %v1152_v12 = vmul.f32 %v4741_v55, %v1141_v51 }
 0x699   :  { %v4754_v11 = vsub.f32 %v1129_v56, %v1152_v12 }
 0x69b   :  { %v1160_v13 = vmul.f32 %v4754_v11, %v4754_v11 }
 0x69d   :  { %v1170_v1 = vsel %vm163_vm2, %v1160_v13, 0.0 }
 0x69e   :  { %1171 = vadd.xlane.f32.xlu2 %v1170_v1 }
 0x6df   :  { %v1163_v14 = vpop.xlane.xlu2 %1162 }
 0x6e0   :  { %v1173_v22 = vmul.f32 %v1163_v14, %v4741_v55  ;;  %v3891_v14 = vld [vmem:[%s5607_s10 + $0x18] sm:$0xff] }
 0x6e1   :  { %1321 = vmatpush.bf16.msrb.mxu0 %v3891_v14  ;;  %v3892_v14 = vld [vmem:[%s5601_s4 + $0x10] sm:$0xff] }
 0x6e2   :  { %v1177_v19 = vadd.f32 1e-05, %v1173_v22 }
 0x6e4   :  { %4136 = vrsqrt.f32 %v1177_v19  ;;  %vm1187_vm10 = vweird.f32 %v1177_v19 }
 0x6e7   :  { %v1166_v60 = vpop.xlane.xlu0 %1165 }
 0x6e8   :  { %v1174_v62 = vmul.f32 %v1166_v60, %v4741_v55 }
 0x6ea   :  { %v4137_v23 = vpop.eup %4136  ;;  %v1178_v6 = vadd.f32 1e-05, %v1174_v62 }
 0x6eb   :  { %v1182_v24 = vmul.f32 %v4137_v23, %v1177_v19  ;;  %vm1188_vm9 = vweird.f32 %v4137_v23 }
 0x6ec   :  { %4138 = vrsqrt.f32 %v1178_v6  ;;  %vm1189_vm11 = vmor %vm1187_vm10, %vm1188_vm9  ;;  %vm1197_vm13 = vweird.f32 %v1178_v6  ;;  %vm1310_vm9 = vcmask 523264  }
 0x6ed   :  { %v1183_v25 = vmul.f32 %v4137_v23, %v1182_v24 }
 0x6ef   :  { %v1184_v48 = vmul.f32 0.5, %v1183_v25 }
 0x6f1   :  { %v1185_v5 = vsub.f32 1.5, %v1184_v48 }
 0x6f2   :  { %v4139_v28 = vpop.eup %4138 }
 0x6f3   :  { %v1186_v29 = vmul.f32 %v4137_v23, %v1185_v5  ;;  %v1192_v30 = vmul.f32 %v4139_v28, %v1178_v6  ;;  %vm1198_vm12 = vweird.f32 %v4139_v28 }
 0x6f4   :  { %vm1199_vm14 = vmor %vm1197_vm13, %vm1198_vm12 }
 0x6f5   :  { %v1193_v31 = vmul.f32 %v4139_v28, %v1192_v30  ;;  %v1190_v15 = vsel %vm1189_vm11, %v4137_v23, %v1186_v29 }
 0x6f6   :  { %v1221_v38 = vmul.f32 %v1190_v15, %v1153_v59  ;;  %v4061_v15 = vld [vmem:[%s5608_s11] ss:$0 sm:$0xff] }
 0x6f7   :  { %v1194_v36 = vmul.f32 0.5, %v1193_v31 }
 0x6f8   :  { %v1226_v41 = vmul.f32 %v1225_v37, %v1221_v38 }
 0x6f9   :  { %v1195_v35 = vsub.f32 1.5, %v1194_v36 }
 0x6fa   :  { %v4774_v26 = vadd.f32 %v1230_v46, %v1226_v41 }
 0x6fb   :  { %v1196_v39 = vmul.f32 %v4139_v28, %v1195_v35 }
 0x6fd   :  { %v1200_v40 = vsel %vm1199_vm14, %v4139_v28, %v1196_v39 }
 0x6fe   :  { %v1222_v44 = vmul.f32 %v1200_v40, %v1154_v43 }
 0x700   :  { %v1227_v54 = vmul.f32 %v1225_v37, %v1222_v44 }
 0x702   :  { %v4776_v47 = vadd.f32 %v1230_v46, %v1227_v54 }
 0x704   :  { %v1235_v49 = vpack.c.bf16 %v4776_v47, %v4774_v26 }
 0x706   :  { %3678 = vmatmul.msk.bf16.vlgmr.msrb.gmra.mxu3 %vm163_vm2, %v1235_v49 }
 0x709   :  { %v1169_v45 = vpop.xlane.xlu1 %1168 }
 0x70a   :  { %v1175_v56 = vmul.f32 %v1169_v45, %v4741_v55 }
 0x70c   :  { %v1179_v52 = vadd.f32 1e-05, %v1175_v56 }
 0x70e   :  { %4140 = vrsqrt.f32 %v1179_v52  ;;  %vm1207_vm0 = vweird.f32 %v1179_v52 }
 0x711   :  { %v1172_v20 = vpop.xlane.xlu2 %1171 }
 0x712   :  { %v1176_v50 = vmul.f32 %v1172_v20, %v4741_v55 }
 0x714   :  { %v4141_v27 = vpop.eup %4140  ;;  %v1180_v53 = vadd.f32 1e-05, %v1176_v50 }
 0x715   :  { %v1202_v42 = vmul.f32 %v4141_v27, %v1179_v52  ;;  %vm1208_vm15 = vweird.f32 %v4141_v27 }
 0x716   :  { %4142 = vrsqrt.f32 %v1180_v53  ;;  %vm1209_vm1 = vmor %vm1207_vm0, %vm1208_vm15  ;;  %vm1217_vm4 = vweird.f32 %v1180_v53 }
 0x717   :  { %v1203_v33 = vmul.f32 %v4141_v27, %v1202_v42 }
 0x719   :  { %v1204_v3 = vmul.f32 0.5, %v1203_v33 }
 0x71b   :  { %v1205_v10 = vsub.f32 1.5, %v1204_v3 }
 0x71c   :  { %v4143_v59 = vpop.eup %4142 }
 0x71d   :  { %v1206_v61 = vmul.f32 %v4141_v27, %v1205_v10  ;;  %v1212_v63 = vmul.f32 %v4143_v59, %v1180_v53  ;;  %vm1218_vm3 = vweird.f32 %v4143_v59 }
 0x71e   :  { %vm1219_vm8 = vmor %vm1217_vm4, %vm1218_vm3 }
 0x71f   :  { %v1213_v16 = vmul.f32 %v4143_v59, %v1212_v63  ;;  %v1210_v0 = vsel %vm1209_vm1, %v4141_v27, %v1206_v61 }
 0x720   :  { %v1223_v34 = vmul.f32 %v1210_v0, %v4748_v8  ;;  %v3890_v8 = vld [vmem:[%s5607_s10 + $0x10] sm:$0xff] }
 0x721   :  { %v1214_v43 = vmul.f32 0.5, %v1213_v16  ;;  %1322 = vmatpush.bf16.msrb.mxu0 %v3890_v8 }
 0x722   :  { %v1228_v17 = vmul.f32 %v1225_v37, %v1223_v34 }
 0x723   :  { %v1215_v2 = vsub.f32 1.5, %v1214_v43 }
 0x724   :  { %v1233_v12 = vadd.f32 %v1230_v46, %v1228_v17 }
 0x725   :  { %v1216_v58 = vmul.f32 %v4143_v59, %v1215_v2 }
 0x727   :  { %v1220_v7 = vsel %vm1219_vm8, %v4143_v59, %v1216_v58 }
 0x728   :  { %v1224_v9 = vmul.f32 %v1220_v7, %v4754_v11  ;;  %v3889_v11 = vld [vmem:[%s5607_s10 + $0x8] sm:$0xff] }
 0x729   :  { %1323 = vmatpush.bf16.msrb.mxu0 %v3889_v11 }
 0x72a   :  { %v1229_v51 = vmul.f32 %v1225_v37, %v1224_v9 }
 0x72c   :  { %v1234_v13 = vadd.f32 %v1230_v46, %v1229_v51 }
 0x72d   :  { %1324 = vmatpush.bf16.msrb.mxu0 %v3888_v18 }
 0x72e   :  { %v1236_v1 = vpack.c.bf16 %v1234_v13, %v1233_v12 }
 0x730   :  { %3679 = vmatmul.msk.bf16.gmra.mxu3 %vm163_vm2, %v1236_v1 }
 0x789   :  { %v1267_v22 = vpop.f32.mrf.mxu3 }
 0x78a   :  { %v1268_v19 = vadd.f32 %v4060_v21, %v1267_v22 }
 0x78c   :  { %v1277_v23 = vmax.f32 %v1268_v19, 0.0 }
 0x791   :  { %v1269_v60 = vpop.f32.mrf.mxu3 }
 0x792   :  { %v1270_v62 = vadd.f32 %v4060_v21, %v1269_v60 }
 0x794   :  { %v1278_v6 = vmax.f32 %v1270_v62, 0.0 }
 0x796   :  { %v1281_v24 = vpack.c.bf16 %v1278_v6, %v1277_v23 }
 0x798   :  { %3696 = vmatmul.msk.bf16.vlgmr.msrb.gmra.mxu0 %vm1310_vm9, %v1281_v24 }
 0x7b3   :  { %v1272_v25 = vpop.f32.mrf.mxu3 }
 0x7b4   :  { %v1273_v48 = vadd.f32 %v4060_v21, %v1272_v25 }
 0x7b6   :  { %v1279_v29 = vmax.f32 %v1273_v48, 0.0 }
 0x7bb   :  { %v1274_v5 = vpop.f32.mrf.mxu3 }
 0x7bc   :  { %v1275_v28 = vadd.f32 %v4060_v21, %v1274_v5 }
 0x7be   :  { %v1280_v30 = vmax.f32 %v1275_v28, 0.0 }
 0x7c0   :  { %v1282_v31 = vpack.c.bf16 %v1280_v30, %v1279_v29  ;;  %v1428_v29 = vperm.slane %v4770_v32, 2 }
 0x7c2   :  { %3697 = vmatmul.msk.bf16.gmra.mxu0 %vm1310_vm9, %v1282_v31 }
 0x815   :  { %v1326_v36 = vpop.f32.mrf.mxu0 }
 0x816   :  { %v1327_v35 = vadd.f32 %v4061_v15, %v1326_v36  ;;  %v1433_v36 = vperm.slane %v4770_v32, 3 }
 0x818   :  { %v1336_v37 = vadd.f32 %v1327_v35, %v4774_v26 }
 0x81a   :  { %v1340_v38 = vsel %vm163_vm2, %v1336_v37, 0.0 }
 0x81b   :  { %1341 = vadd.xlane.f32.xlu0 %v1340_v38 }
 0x81d   :  { %v1328_v39 = vpop.f32.mrf.mxu0 }
 0x81e   :  { %v1329_v40 = vadd.f32 %v4061_v15, %v1328_v39 }
 0x820   :  { %v1337_v41 = vadd.f32 %v1329_v40, %v4776_v47 }
 0x822   :  { %v1343_v44 = vsel %vm163_vm2, %v1337_v41, 0.0 }
 0x823   :  { %1344 = vadd.xlane.f32.xlu1 %v1343_v44 }
 0x83f   :  { %v1331_v46 = vpop.f32.mrf.mxu0 }
 0x840   :  { %v1332_v54 = vadd.f32 %v4061_v15, %v1331_v46 }
 0x842   :  { %v1338_v49 = vadd.f32 %v1332_v54, %v1233_v12  ;;  %v3893_v12 = vld [vmem:[%s5601_s4 + $0x18] sm:$0xff] }
 0x843   :  { %1501 = vmatpush.bf16.msra.mxu1 %v3893_v12 }
 0x844   :  { %v1346_v45 = vsel %vm163_vm2, %v1338_v49, 0.0 }
 0x845   :  { %1347 = vadd.xlane.f32.xlu2 %v1346_v45 }
 0x847   :  { %v1333_v56 = vpop.f32.mrf.mxu0  ;;  %1502 = vmatpush.bf16.msra.mxu1 %v3892_v14 }
 0x848   :  { %v1334_v52 = vadd.f32 %v4061_v15, %v1333_v56 }
 0x84a   :  { %v1339_v20 = vadd.f32 %v1334_v52, %v1234_v13 }
 0x84c   :  { %v1349_v26 = vsel %vm163_vm2, %v1339_v20, 0.0 }
 0x84d   :  { %1350 = vadd.xlane.f32.xlu0 %v1349_v26 }
 0x88e   :  { %v1342_v50 = vpop.xlane.xlu0 %1341 }
 0x88f   :  { %v1352_v27 = vmul.f32 %v1342_v50, %v4741_v55 }
 0x891   :  { %v1356_v53 = vsub.f32 %v1336_v37, %v1352_v27 }
 0x893   :  { %v1360_v47 = vmul.f32 %v1356_v53, %v1356_v53 }
 0x895   :  { %v1364_v42 = vsel %vm163_vm2, %v1360_v47, 0.0 }
 0x896   :  { %1365 = vadd.xlane.f32.xlu1 %v1364_v42  ;;  %v1345_v33 = vpop.xlane.xlu1 %1344 }
 0x897   :  { %v1353_v3 = vmul.f32 %v1345_v33, %v4741_v55 }
 0x899   :  { %v1357_v10 = vsub.f32 %v1337_v41, %v1353_v3 }
 0x89b   :  { %v1361_v59 = vmul.f32 %v1357_v10, %v1357_v10 }
 0x89d   :  { %v1367_v61 = vsel %vm163_vm2, %v1361_v59, 0.0 }
 0x89e   :  { %1368 = vadd.xlane.f32.xlu2 %v1367_v61 }
 0x8b8   :  { %v1348_v63 = vpop.xlane.xlu2 %1347 }
 0x8b9   :  { %v1354_v16 = vmul.f32 %v1348_v63, %v4741_v55 }
 0x8bb   :  { %v4817_v0 = vsub.f32 %v1338_v49, %v1354_v16 }
 0x8bd   :  { %v1362_v43 = vmul.f32 %v4817_v0, %v4817_v0 }
 0x8bf   :  { %v1370_v2 = vsel %vm163_vm2, %v1362_v43, 0.0 }
 0x8c0   :  { %v1351_v34 = vpop.xlane.xlu0 %1350  ;;  %1371 = vadd.xlane.f32.xlu0 %v1370_v2 }
 0x8c1   :  { %v1355_v58 = vmul.f32 %v1351_v34, %v4741_v55 }
 0x8c3   :  { %v4823_v7 = vsub.f32 %v1339_v20, %v1355_v58 }
 0x8c5   :  { %v1363_v9 = vmul.f32 %v4823_v7, %v4823_v7 }
 0x8c7   :  { %v1373_v17 = vsel %vm163_vm2, %v1363_v9, 0.0 }
 0x8c8   :  { %1374 = vadd.xlane.f32.xlu1 %v1373_v17 }
 0x909   :  { %v1366_v51 = vpop.xlane.xlu1 %1365 }
 0x90a   :  { %v1376_v13 = vmul.f32 %v1366_v51, %v4741_v55 }
 0x90c   :  { %v1380_v1 = vadd.f32 1e-05, %v1376_v13 }
 0x90e   :  { %4144 = vrsqrt.f32 %v1380_v1  ;;  %vm1390_vm11 = vweird.f32 %v1380_v1 }
 0x911   :  { %v1369_v8 = vpop.xlane.xlu2 %1368 }
 0x912   :  { %v1377_v11 = vmul.f32 %v1369_v8, %v4741_v55 }
 0x914   :  { %v4145_v18 = vpop.eup %4144  ;;  %v1381_v22 = vadd.f32 1e-05, %v1377_v11 }
 0x915   :  { %v1385_v21 = vmul.f32 %v4145_v18, %v1380_v1  ;;  %vm1391_vm10 = vweird.f32 %v4145_v18 }
 0x916   :  { %4146 = vrsqrt.f32 %v1381_v22  ;;  %vm1392_vm12 = vmor %vm1390_vm11, %vm1391_vm10  ;;  %vm1400_vm14 = vweird.f32 %v1381_v22 }
 0x917   :  { %v1386_v19 = vmul.f32 %v4145_v18, %v1385_v21 }
 0x919   :  { %v1387_v60 = vmul.f32 0.5, %v1386_v19 }
 0x91b   :  { %v1388_v62 = vsub.f32 1.5, %v1387_v60 }
 0x91c   :  { %v4147_v23 = vpop.eup %4146 }
 0x91d   :  { %v1389_v6 = vmul.f32 %v4145_v18, %v1388_v62  ;;  %v1395_v24 = vmul.f32 %v4147_v23, %v1381_v22  ;;  %vm1401_vm13 = vweird.f32 %v4147_v23 }
 0x91e   :  { %vm1402_vm15 = vmor %vm1400_vm14, %vm1401_vm13 }
 0x91f   :  { %v1396_v25 = vmul.f32 %v4147_v23, %v1395_v24  ;;  %v1393_v48 = vsel %vm1392_vm12, %v4145_v18, %v1389_v6 }
 0x920   :  { %v1424_v30 = vmul.f32 %v1393_v48, %v1356_v53 }
 0x921   :  { %v1397_v5 = vmul.f32 0.5, %v1396_v25 }
 0x922   :  { %v1429_v35 = vmul.f32 %v1428_v29, %v1424_v30 }
 0x923   :  { %v1398_v28 = vsub.f32 1.5, %v1397_v5 }
 0x924   :  { %v4838_v39 = vadd.f32 %v1433_v36, %v1429_v35 }
 0x925   :  { %v1399_v31 = vmul.f32 %v4147_v23, %v1398_v28 }
 0x927   :  { %v1403_v15 = vsel %vm1402_vm15, %v4147_v23, %v1399_v31 }
 0x928   :  { %v1425_v37 = vmul.f32 %v1403_v15, %v1357_v10 }
 0x92a   :  { %v1430_v38 = vmul.f32 %v1428_v29, %v1425_v37 }
 0x92c   :  { %v4840_v40 = vadd.f32 %v1433_v36, %v1430_v38 }
 0x92e   :  { %v1472_v41 = vpack.c.bf16 %v4840_v40, %v4838_v39 }
 0x930   :  { %3731 = vmatmul.msk.bf16.vlgmr.msra.gmra.mxu1 %vm163_vm2, %v1472_v41 }
 0x933   :  { %v1372_v44 = vpop.xlane.xlu0 %1371 }
 0x934   :  { %v1378_v46 = vmul.f32 %v1372_v44, %v4741_v55 }
 0x936   :  { %v1382_v54 = vadd.f32 1e-05, %v1378_v46 }
 0x938   :  { %4148 = vrsqrt.f32 %v1382_v54  ;;  %vm1410_vm1 = vweird.f32 %v1382_v54 }
 0x93b   :  { %v1375_v49 = vpop.xlane.xlu1 %1374 }
 0x93c   :  { %v1379_v32 = vmul.f32 %v1375_v49, %v4741_v55 }
 0x93e   :  { %v4149_v45 = vpop.eup %4148  ;;  %v1383_v56 = vadd.f32 1e-05, %v1379_v32 }
 0x93f   :  { %v1405_v52 = vmul.f32 %v4149_v45, %v1382_v54  ;;  %vm1411_vm0 = vweird.f32 %v4149_v45 }
 0x940   :  { %4150 = vrsqrt.f32 %v1383_v56  ;;  %vm1412_vm3 = vmor %vm1410_vm1, %vm1411_vm0  ;;  %vm1420_vm8 = vweird.f32 %v1383_v56 }
 0x941   :  { %v1406_v20 = vmul.f32 %v4149_v45, %v1405_v52 }
 0x943   :  { %v1407_v26 = vmul.f32 0.5, %v1406_v20 }
 0x945   :  { %v1408_v50 = vsub.f32 1.5, %v1407_v26 }
 0x946   :  { %v4151_v27 = vpop.eup %4150 }
 0x947   :  { %v1409_v53 = vmul.f32 %v4149_v45, %v1408_v50  ;;  %v1415_v47 = vmul.f32 %v4151_v27, %v1383_v56  ;;  %vm1421_vm4 = vweird.f32 %v4151_v27 }
 0x948   :  { %vm1422_vm10 = vmor %vm1420_vm8, %vm1421_vm4 }
 0x949   :  { %v1416_v42 = vmul.f32 %v4151_v27, %v1415_v47  ;;  %v1413_v33 = vsel %vm1412_vm3, %v4149_v45, %v1409_v53 }
 0x94a   :  { %v1426_v59 = vmul.f32 %v1413_v33, %v4817_v0  ;;  %v4062_v0 = vld [vmem:[%s5602_s5 + $0x1] ss:$0 sm:$0xff] }
 0x94b   :  { %v1417_v3 = vmul.f32 0.5, %v1416_v42 }
 0x94c   :  { %v1431_v43 = vmul.f32 %v1428_v29, %v1426_v59 }
 0x94d   :  { %v1418_v10 = vsub.f32 1.5, %v1417_v3 }
 0x94e   :  { %v4849_v34 = vadd.f32 %v1433_v36, %v1431_v43 }
 0x94f   :  { %v1419_v61 = vmul.f32 %v4151_v27, %v1418_v10 }
 0x951   :  { %v1423_v63 = vsel %vm1422_vm10, %v4151_v27, %v1419_v61 }
 0x952   :  { %v1427_v16 = vmul.f32 %v1423_v63, %v4823_v7 }
 0x954   :  { %v1432_v2 = vmul.f32 %v1428_v29, %v1427_v16 }
 0x956   :  { %v4851_v58 = vadd.f32 %v1433_v36, %v1432_v2 }
 0x958   :  { %v1473_v9 = vpack.c.bf16 %v4851_v58, %v4849_v34 }
 0x95a   :  { %3732 = vmatmul.msk.bf16.gmra.mxu1 %vm163_vm2, %v1473_v9 }
 0x9ad   :  { %v1504_v17 = vpop.f32.mrf.mxu1 }
 0x9ae   :  { %v1505_v12 = vadd.f32 %v4062_v0, %v1504_v17 }
 0x9b0   :  { %v1554_v60 = vpack.c.bf16 %v1505_v12, %v1505_v12 }
 0x9b2   :  { %v1572_v24 = vunpack.c.l.b16 %v1554_v60 }
 0x9b5   :  { %v1506_v51 = vpop.f32.mrf.mxu1 }
 0x9b6   :  { %v1507_v13 = vadd.f32 %v4062_v0, %v1506_v51 }
 0x9b8   :  { %v3988_v7 = vpack.i.bf16 %v1507_v13, %v1505_v12  ;;  %v1555_v21 = vpack.c.bf16 %v1507_v13, %v1507_v13 }
 0x9ba   :  { %3989 = vrot.lane.b32.xlu0 %v3988_v7, %s4311_s27  ;;  %3984 = vrot.lane.b32.xlu2 %v3988_v7, %s4310_s26  ;;  %v1573_v23 = vunpack.c.l.b16 %v1555_v21 }
 0x9bc   :  { %v4867_v48 = vpack.c.b16 %v1573_v23, %v1572_v24 }
 0x9c2   :  { %3999 = vrot.lane.b32.xlu0 %v3988_v7, %s4313_s28 }
 0x9d7   :  { %v1509_v1 = vpop.f32.mrf.mxu1 }
 0x9d8   :  { %v1510_v8 = vadd.f32 %v4062_v0, %v1509_v1 }
 0x9da   :  { %v1556_v19 = vpack.c.bf16 %v1510_v8, %v1510_v8 }
 0x9dc   :  { %v1599_v6 = vunpack.c.l.b16 %v1556_v19 }
 0x9df   :  { %v1511_v14 = vpop.f32.mrf.mxu1 }
 0x9e0   :  { %v1512_v11 = vadd.f32 %v4062_v0, %v1511_v14 }
 0x9e2   :  { %v4008_v18 = vpack.i.bf16 %v1512_v11, %v1510_v8  ;;  %v1557_v22 = vpack.c.bf16 %v1512_v11, %v1512_v11 }
 0x9e4   :  { %4009 = vrot.lane.b32.xlu0 %v4008_v18, %s4313_s28  ;;  %4004 = vrot.lane.b32.xlu2 %v4008_v18, %s4311_s27  ;;  %v1600_v62 = vunpack.c.l.b16 %v1557_v22 }
 0x9e5   :  { %3994 = vrot.lane.b32.xlu1 %v4008_v18, %s4310_s26 }
 0x9e6   :  { %v4865_v25 = vpack.c.b16 %v1600_v62, %v1599_v6 }
 0x9ec   :  { %1602 = vrot.lane.b32.xlu0 %v4865_v25, %s4312_s0 }
 0x9ed   :  { %1575 = vrot.lane.b32.xlu1 %v4867_v48, %s4312_s0 }
 0xa14   :  { %v3985_v5 = vpop.permute.xlu2 %3984 }
 0xa15   :  { %v3987_v28 = vunpack.i.h.bf16 %v3985_v5  ;;  %v3986_v29 = vunpack.i.l.bf16 %v3985_v5 }
 0xa17   :  { %v1559_v30 = vpack.c.bf16 %v3987_v28, %v3987_v28  ;;  %v1558_v31 = vpack.c.bf16 %v3986_v29, %v3986_v29 }
 0xa19   :  { %v1627_v15 = vunpack.c.l.b16 %v1559_v30  ;;  %v1626_v36 = vunpack.c.l.b16 %v1558_v31 }
 0xa1b   :  { %v1628_v35 = vpack.c.b16 %v1627_v15, %v1626_v36 }
 0xa1d   :  { %1629 = vrot.lane.b32.xlu2 %v1628_v35, %s4312_s0 }
 0xa2c   :  { %v3990_v37 = vpop.permute.xlu0 %3989 }
 0xa2d   :  { %v3992_v38 = vunpack.i.h.bf16 %v3990_v37  ;;  %v3991_v41 = vunpack.i.l.bf16 %v3990_v37 }
 0xa2f   :  { %v1563_v44 = vpack.c.bf16 %v3992_v38, %v3992_v38  ;;  %v1562_v46 = vpack.c.bf16 %v3991_v41, %v3991_v41 }
 0xa31   :  { %v1681_v54 = vunpack.c.l.b16 %v1563_v44  ;;  %v1680_v49 = vunpack.c.l.b16 %v1562_v46 }
 0xa33   :  { %v1682_v32 = vpack.c.b16 %v1681_v54, %v1680_v49 }
 0xa34   :  { %v4000_v45 = vpop.permute.xlu0 %3999 }
 0xa35   :  { %v4002_v56 = vunpack.i.h.bf16 %v4000_v45  ;;  %v4001_v52 = vunpack.i.l.bf16 %v4000_v45  ;;  %1683 = vrot.lane.b32.xlu1 %v1682_v32, %s4312_s0 }
 0xa37   :  { %v1567_v20 = vpack.c.bf16 %v4002_v56, %v4002_v56  ;;  %v1566_v26 = vpack.c.bf16 %v4001_v52, %v4001_v52 }
 0xa39   :  { %v1735_v50 = vunpack.c.l.b16 %v1567_v20  ;;  %v1734_v27 = vunpack.c.l.b16 %v1566_v26 }
 0xa3b   :  { %v4875_v53 = vpack.c.b16 %v1735_v50, %v1734_v27 }
 0xa3d   :  { %1737 = vrot.lane.b32.xlu0 %v4875_v53, %s4312_s0 }
 0xa3e   :  { %v4005_v47 = vpop.permute.xlu2 %4004 }
 0xa3f   :  { %v4007_v42 = vunpack.i.h.bf16 %v4005_v47  ;;  %v4006_v33 = vunpack.i.l.bf16 %v4005_v47 }
 0xa41   :  { %v1565_v3 = vpack.c.bf16 %v4007_v42, %v4007_v42  ;;  %v1564_v10 = vpack.c.bf16 %v4006_v33, %v4006_v33 }
 0xa43   :  { %v1708_v59 = vunpack.c.l.b16 %v1565_v3  ;;  %v1707_v61 = vunpack.c.l.b16 %v1564_v10 }
 0xa45   :  { %2049 = vrot.lane.b32.xlu0 %v1628_v35, %s4314_s29  ;;  %v4880_v63 = vpack.c.b16 %v1708_v59, %v1707_v61 }
 0xa47   :  { %1710 = vrot.lane.b32.xlu1 %v4880_v63, %s4312_s0 }
 0xa4d   :  { %2024 = vrot.lane.b32.xlu0 %v4865_v25, %s4314_s29 }
 0xa4f   :  { %2099 = vrot.lane.b32.xlu1 %v1682_v32, %s4314_s29 }
 0xa56   :  { %v4010_v16 = vpop.permute.xlu0 %4009 }
 0xa57   :  { %v3995_v43 = vpop.permute.xlu1 %3994  ;;  %v4012_v17 = vunpack.i.h.bf16 %v4010_v16  ;;  %v4011_v0 = vunpack.i.l.bf16 %v4010_v16 }
 0xa58   :  { %v3997_v2 = vunpack.i.h.bf16 %v3995_v43  ;;  %v3996_v9 = vunpack.i.l.bf16 %v3995_v43 }
 0xa59   :  { %v1569_v1 = vpack.c.bf16 %v4012_v17, %v4012_v17  ;;  %v1568_v14 = vpack.c.bf16 %v4011_v0, %v4011_v0 }
 0xa5a   :  { %v1561_v51 = vpack.c.bf16 %v3997_v2, %v3997_v2  ;;  %v1560_v12 = vpack.c.bf16 %v3996_v9, %v3996_v9 }
 0xa5b   :  { %v1762_v19 = vunpack.c.l.b16 %v1569_v1  ;;  %v1761_v60 = vunpack.c.l.b16 %v1568_v14 }
 0xa5c   :  { %v1654_v13 = vunpack.c.l.b16 %v1561_v51  ;;  %v1653_v7 = vunpack.c.l.b16 %v1560_v12 }
 0xa5d   :  { %v4893_v62 = vpack.c.b16 %v1762_v19, %v1761_v60 }
 0xa5e   :  { %v1603_v8 = vpop.permute.xlu0 %1602  ;;  %v4887_v11 = vpack.c.b16 %v1654_v13, %v1653_v7 }
 0xa5f   :  { %v1576_v18 = vpop.permute.xlu1 %1575  ;;  %v1608_v22 = vsel %vm404_vm5, %v1603_v8, 0 }
 0xa60   :  { %v1581_v21 = vsel %vm404_vm5, %v1576_v18, 0  ;;  %1656 = vrot.lane.b32.xlu2 %v4887_v11, %s4312_s0  ;;  %1617 = vmatpush.bf16.xpose.msra.mxu3 %v1608_v22 }
 0xa61   :  { %1590 = vmatpush.bf16.xpose.msra.mxu2 %v1581_v21 }
 0xa67   :  { %3734 = vmatmul.msk.bf16.vlgmr.msra.gmra.mxu3 %vm404_vm5, %v4865_v25 }
 0xa68   :  { %3733 = vmatmul.msk.bf16.vlgmr.msra.gmra.mxu2 %vm404_vm5, %v4867_v48  ;;  %1764 = vrot.lane.b32.xlu2 %v4893_v62, %s4312_s0 }
 0xa70   :  { %1999 = vrot.lane.b32.xlu2 %v4867_v48, %s4314_s29 }
 0xa77   :  { %v1630_v23 = vpop.permute.xlu2 %1629 }
 0xa78   :  { %v1635_v6 = vsel %vm404_vm5, %v1630_v23, 0 }
 0xa79   :  { %1644 = vmatpush.bf16.xpose.msra.mxu0 %v1635_v6 }
 0xa80   :  { %3735 = vmatmul.msk.bf16.vlgmr.msra.gmra.mxu0 %vm404_vm5, %v1628_v35 }
 0xaa7   :  { %v1684_v24 = vpop.permute.xlu1 %1683 }
 0xaa8   :  { %v1689_v5 = vsel %vm404_vm5, %v1684_v24, 0 }
 0xaa9   :  { %1698 = vmatpush.bf16.xpose.msrb.mxu2 %v1689_v5 }
 0xaaf   :  { %v1738_v25 = vpop.permute.xlu0 %1737 }
 0xab0   :  { %v1743_v28 = vsel %vm404_vm5, %v1738_v25, 0  ;;  %3737 = vmatmul.msk.bf16.vlgmr.msrb.gmra.mxu2 %vm404_vm5, %v1682_v32 }
 0xab1   :  { %1752 = vmatpush.bf16.xpose.msrb.mxu0 %v1743_v28 }
 0xab7   :  { %v2050_v29 = vpop.permute.xlu0 %2049 }
 0xab8   :  { %3739 = vmatmul.msk.bf16.vlgmr.msrb.gmra.mxu0 %vm404_vm5, %v4875_v53 }
 0xab9   :  { %v1711_v48 = vpop.permute.xlu1 %1710  ;;  %2062 = vmatpush.bf16.msra.mxu0 %v2050_v29 }
 0xaba   :  { %v1716_v30 = vsel %vm404_vm5, %v1711_v48, 0  ;;  %v1657_v31 = vpop.permute.xlu2 %1656 }
 0xabb   :  { %v1662_v15 = vsel %vm404_vm5, %v1657_v31, 0  ;;  %1725 = vmatpush.bf16.xpose.msrb.mxu3 %v1716_v30 }
 0xabc   :  { %1671 = vmatpush.bf16.xpose.msrb.mxu1 %v1662_v15 }
 0xabf   :  { %v2025_v36 = vpop.permute.xlu0 %2024 }
 0xac1   :  { %v2100_v41 = vpop.permute.xlu1 %2099 }
 0xac2   :  { %v1765_v35 = vpop.permute.xlu2 %1764  ;;  %3738 = vmatmul.msk.bf16.vlgmr.msrb.gmra.mxu3 %vm404_vm5, %v4880_v63 }
 0xac3   :  { %2037 = vmatpush.bf16.msra.mxu3 %v2025_v36  ;;  %v1770_v37 = vsel %vm404_vm5, %v1765_v35, 0  ;;  %3736 = vmatmul.msk.bf16.vlgmr.msrb.gmra.mxu1 %vm404_vm5, %v4887_v11 }
 0xac4   :  { %1779 = vmatpush.bf16.xpose.msra.mxu1 %v1770_v37 }
 0xaca   :  { %v2000_v38 = vpop.permute.xlu2 %1999 }
 0xacb   :  { %2012 = vmatpush.bf16.msra.mxu2 %v2000_v38 }
 0xacf   :  { %2112 = vmatpush.bf16.msrb.mxu2 %v2100_v41 }
 0xad3   :  { %3740 = vmatmul.msk.bf16.vlgmr.msra.gmra.mxu1 %vm404_vm5, %v4893_v62 }
 0xaea   :  { %v1619_v44 = vpop.f32.mrf.mxu3 }
 0xaeb   :  { %v1592_v46 = vpop.f32.mrf.mxu2  ;;  %v1788_v50 = vmul.f32 0.35355338, %v1619_v44 }
 0xaec   :  { %v1786_v54 = vmul.f32 0.35355338, %v1592_v46 }
 0xaed   :  { %v1808_v42 = vsel %vm630_vm6, %v1788_v50, -inf }
 0xaee   :  { %v1802_v49 = vsel %vm630_vm6, %v1786_v54, -inf }
 0xaef   :  { %1803 = vmax.xlane.f32.xlu0 %v1802_v49 }
 0xaf2   :  { %v1621_v32 = vpop.f32.mrf.mxu3 }
 0xaf3   :  { %v1594_v45 = vpop.f32.mrf.mxu2  ;;  %v1789_v56 = vmul.f32 0.35355338, %v1621_v32 }
 0xaf4   :  { %v1787_v52 = vmul.f32 0.35355338, %v1594_v45 }
 0xaf5   :  { %v1811_v20 = vsel %vm630_vm6, %v1789_v56, -inf }
 0xaf6   :  { %v1805_v26 = vsel %vm630_vm6, %v1787_v52, -inf  ;;  %1812 = vmax.xlane.f32.xlu2 %v1811_v20 }
 0xaf7   :  { %1806 = vmax.xlane.f32.xlu1 %v1805_v26 }
 0xafd   :  { %v1646_v27 = vpop.f32.mrf.mxu0 }
 0xafe   :  { %v4922_v47 = vmul.f32 0.35355338, %v1646_v27 }
 0xaff   :  { %1809 = vmax.xlane.f32.xlu1 %v1808_v42 }
 0xb00   :  { %v1814_v33 = vsel %vm630_vm6, %v4922_v47, -inf }
 0xb01   :  { %1815 = vmax.xlane.f32.xlu2 %v1814_v33 }
 0xb05   :  { %v1648_v3 = vpop.f32.mrf.mxu0 }
 0xb06   :  { %v4931_v16 = vmul.f32 0.35355338, %v1648_v3 }
 0xb08   :  { %v1817_v17 = vsel %vm630_vm6, %v4931_v16, -inf }
 0xb33   :  { %v1700_v10 = vpop.f32.mrf.mxu2 }
 0xb34   :  { %v4927_v59 = vmul.f32 0.35355338, %v1700_v10 }
 0xb35   :  { %v1754_v43 = vpop.f32.mrf.mxu0 }
 0xb36   :  { %v1826_v61 = vsel %vm630_vm6, %v4927_v59, -inf  ;;  %v4941_v13 = vmul.f32 0.35355338, %v1754_v43 }
 0xb37   :  { %1827 = vmax.xlane.f32.xlu0 %v1826_v61 }
 0xb38   :  { %v1838_v18 = vsel %vm630_vm6, %v4941_v13, -inf }
 0xb3b   :  { %v1702_v2 = vpop.f32.mrf.mxu2 }
 0xb3c   :  { %v4933_v9 = vmul.f32 0.35355338, %v1702_v2 }
 0xb3d   :  { %v1756_v1 = vpop.f32.mrf.mxu0 }
 0xb3e   :  { %v1829_v0 = vsel %vm630_vm6, %v4933_v9, -inf  ;;  %v4949_v22 = vmul.f32 0.35355338, %v1756_v1 }
 0xb3f   :  { %1818 = vmax.xlane.f32.xlu0 %v1817_v17  ;;  %1830 = vmax.xlane.f32.xlu1 %v1829_v0 }
 0xb40   :  { %v1673_v51 = vpop.f32.mrf.mxu1  ;;  %v1841_v60 = vsel %vm630_vm6, %v4949_v22, -inf }
 0xb41   :  { %v4939_v12 = vmul.f32 0.35355338, %v1673_v51 }
 0xb43   :  { %v1820_v7 = vsel %vm630_vm6, %v4939_v12, -inf }
 0xb44   :  { %1821 = vmax.xlane.f32.xlu2 %v1820_v7 }
 0xb45   :  { %v1727_v14 = vpop.f32.mrf.mxu3 }
 0xb46   :  { %v4945_v8 = vmul.f32 0.35355338, %v1727_v14 }
 0xb47   :  { %1839 = vmax.xlane.f32.xlu1 %v1838_v18 }
 0xb48   :  { %v1832_v21 = vsel %vm630_vm6, %v4945_v8, -inf  ;;  %v1675_v19 = vpop.f32.mrf.mxu1 }
 0xb49   :  { %1833 = vmax.xlane.f32.xlu0 %v1832_v21  ;;  %v4955_v23 = vmul.f32 0.35355338, %v1675_v19 }
 0xb4b   :  { %v1823_v6 = vsel %vm630_vm6, %v4955_v23, -inf }
 0xb4c   :  { %1842 = vmax.xlane.f32.xlu2 %v1841_v60 }
 0xb4d   :  { %v1729_v35 = vpop.f32.mrf.mxu3 }
 0xb4e   :  { %v4963_v37 = vmul.f32 0.35355338, %v1729_v35 }
 0xb50   :  { %v1835_v45 = vsel %vm630_vm6, %v4963_v37, -inf }
 0xb51   :  { %1824 = vmax.xlane.f32.xlu0 %v1823_v6 }
 0xb62   :  { %v1804_v24 = vpop.xlane.xlu0 %1803 }
 0xb63   :  { %v1850_v5 = vsub.f32 %v1786_v54, %v1804_v24  ;;  %v1781_v54 = vpop.f32.mrf.mxu1 }
 0xb65   :  { %v1866_v25 = vmul.f32 1.442695, %v1850_v5 }
 0xb67   :  { %4152 = vpow2.f32 %v1866_v25 }
 0xb69   :  { %v1813_v48 = vpop.xlane.xlu2 %1812 }
 0xb6a   :  { %v1807_v28 = vpop.xlane.xlu1 %1806  ;;  %v1853_v15 = vsub.f32 %v1789_v56, %v1813_v48  ;;  %v4971_v56 = vmul.f32 0.35355338, %v1781_v54 }
 0xb6b   :  { %v1851_v29 = vsub.f32 %v1787_v52, %v1807_v28  ;;  %v1783_v33 = vpop.f32.mrf.mxu1 }
 0xb6c   :  { %v1872_v38 = vmul.f32 1.442695, %v1853_v15  ;;  %v1844_v42 = vsel %vm630_vm6, %v4971_v56, -inf  ;;  %v4984_v61 = vmul.f32 0.35355338, %v1783_v33 }
 0xb6d   :  { %v4959_v30 = vpop.eup %4152  ;;  %v1868_v31 = vmul.f32 1.442695, %v1851_v29 }
 0xb6e   :  { %v1898_v36 = vsel %vm630_vm6, %v4959_v30, 0.0 }
 0xb6f   :  { %4154 = vpow2.f32 %v1868_v31  ;;  %1899 = vadd.xlane.f32.xlu1 %v1898_v36 }
 0xb70   :  { %4156 = vpow2.f32 %v1872_v38 }
 0xb72   :  { %v1810_v41 = vpop.xlane.xlu1 %1809 }
 0xb73   :  { %v1852_v44 = vsub.f32 %v1788_v50, %v1810_v41 }
 0xb74   :  { %v1816_v52 = vpop.xlane.xlu2 %1815 }
 0xb75   :  { %v4965_v46 = vpop.eup %4154  ;;  %v1870_v49 = vmul.f32 1.442695, %v1852_v44  ;;  %v1854_v50 = vsub.f32 %v4922_v47, %v1816_v52  ;;  %v1847_v47 = vsel %vm630_vm6, %v4984_v61, -inf }
 0xb76   :  { %v1901_v32 = vsel %vm630_vm6, %v4965_v46, 0.0  ;;  %v4973_v20 = vpop.eup %4156 }
 0xb77   :  { %4158 = vpow2.f32 %v1870_v49  ;;  %1902 = vadd.xlane.f32.xlu2 %v1901_v32  ;;  %1836 = vmax.xlane.f32.xlu1 %v1835_v45  ;;  %v1907_v3 = vsel %vm630_vm6, %v4973_v20, 0.0  ;;  %v1874_v10 = vmul.f32 1.442695, %v1854_v50 }
 0xb79   :  { %4160 = vpow2.f32 %v1874_v10 }
 0xb7d   :  { %v4975_v26 = vpop.eup %4158 }
 0xb7e   :  { %v1904_v27 = vsel %vm630_vm6, %v4975_v26, 0.0 }
 0xb7f   :  { %1905 = vadd.xlane.f32.xlu0 %v1904_v27  ;;  %1845 = vmax.xlane.f32.xlu2 %v1844_v42  ;;  %v4988_v43 = vpop.eup %4160 }
 0xb80   :  { %1908 = vadd.xlane.f32.xlu1 %v1907_v3  ;;  %v1910_v2 = vsel %vm630_vm6, %v4988_v43, 0.0 }
 0xb87   :  { %1848 = vmax.xlane.f32.xlu0 %v1847_v47 }
 0xb8f   :  { %1911 = vadd.xlane.f32.xlu0 %v1910_v2 }
 0xbaa   :  { %v1828_v17 = vpop.xlane.xlu0 %1827 }
 0xbab   :  { %v1858_v0 = vsub.f32 %v4927_v59, %v1828_v17 }
 0xbad   :  { %v1882_v51 = vmul.f32 1.442695, %v1858_v0 }
 0xbaf   :  { %4162 = vpow2.f32 %v1882_v51 }
 0xbb2   :  { %v1819_v7 = vpop.xlane.xlu0 %1818  ;;  %v1831_v1 = vpop.xlane.xlu1 %1830 }
 0xbb3   :  { %v1855_v14 = vsub.f32 %v4931_v16, %v1819_v7  ;;  %v1859_v19 = vsub.f32 %v4933_v9, %v1831_v1 }
 0xbb5   :  { %v4994_v18 = vpop.eup %4162  ;;  %v1876_v21 = vmul.f32 1.442695, %v1855_v14  ;;  %v1884_v6 = vmul.f32 1.442695, %v1859_v19 }
 0xbb6   :  { %v1922_v60 = vsel %vm630_vm6, %v4994_v18, 0.0 }
 0xbb7   :  { %1923 = vadd.xlane.f32.xlu0 %v1922_v60  ;;  %4164 = vpow2.f32 %v1876_v21  ;;  %v1822_v24 = vpop.xlane.xlu2 %1821 }
 0xbb8   :  { %4166 = vpow2.f32 %v1884_v6  ;;  %v1856_v16 = vsub.f32 %v4939_v12, %v1822_v24 }
 0xbba   :  { %v1878_v9 = vmul.f32 1.442695, %v1856_v16  ;;  %v1840_v48 = vpop.xlane.xlu1 %1839 }
 0xbbc   :  { %v1834_v5 = vpop.xlane.xlu0 %1833 }
 0xbbd   :  { %v1860_v59 = vsub.f32 %v4945_v8, %v1834_v5  ;;  %v5000_v25 = vpop.eup %4164  ;;  %v1862_v8 = vsub.f32 %v4941_v13, %v1840_v48 }
 0xbbe   :  { %v1913_v29 = vsel %vm630_vm6, %v5000_v25, 0.0  ;;  %v5005_v31 = vpop.eup %4166 }
 0xbbf   :  { %v1886_v28 = vmul.f32 1.442695, %v1860_v59  ;;  %1914 = vadd.xlane.f32.xlu1 %v1913_v29  ;;  %v1925_v12 = vsel %vm630_vm6, %v5005_v31, 0.0  ;;  %v1890_v44 = vmul.f32 1.442695, %v1862_v8  ;;  %v1843_v54 = vpop.xlane.xlu2 %1842 }
 0xbc1   :  { %4168 = vpow2.f32 %v1886_v28 }
 0xbc2   :  { %4170 = vpow2.f32 %v1878_v9 }
 0xbc4   :  { %v1825_v15 = vpop.xlane.xlu0 %1824 }
 0xbc5   :  { %v1857_v36 = vsub.f32 %v4955_v23, %v1825_v15  ;;  %v1863_v23 = vsub.f32 %v4949_v22, %v1843_v54 }
 0xbc7   :  { %v5009_v35 = vpop.eup %4168  ;;  %v1880_v38 = vmul.f32 1.442695, %v1857_v36  ;;  %1926 = vadd.xlane.f32.xlu1 %v1925_v12  ;;  %v1892_v52 = vmul.f32 1.442695, %v1863_v23 }
 0xbc8   :  { %v1928_v41 = vsel %vm630_vm6, %v5009_v35, 0.0  ;;  %v5015_v49 = vpop.eup %4170 }
 0xbc9   :  { %4172 = vpow2.f32 %v1880_v38  ;;  %1929 = vadd.xlane.f32.xlu0 %v1928_v41  ;;  %v1916_v32 = vsel %vm630_vm6, %v5015_v49, 0.0 }
 0xbca   :  { %4174 = vpow2.f32 %v1890_v44 }
 0xbcb   :  { %4176 = vpow2.f32 %v1892_v52 }
 0xbcf   :  { %v5018_v13 = vpop.eup %4172  ;;  %1917 = vadd.xlane.f32.xlu1 %v1916_v32 }
 0xbd0   :  { %v1919_v45 = vsel %vm630_vm6, %v5018_v13, 0.0  ;;  %v5024_v50 = vpop.eup %4174 }
 0xbd1   :  { %1920 = vadd.xlane.f32.xlu2 %v1919_v45  ;;  %v1934_v27 = vsel %vm630_vm6, %v5024_v50, 0.0  ;;  %v5028_v42 = vpop.eup %4176 }
 0xbd2   :  { %v1937_v22 = vsel %vm630_vm6, %v5028_v42, 0.0 }
 0xbd7   :  { %1935 = vadd.xlane.f32.xlu1 %v1934_v27 }
 0xbdf   :  { %1938 = vadd.xlane.f32.xlu1 %v1937_v22 }
 0xbe2   :  { %v1900_v33 = vpop.xlane.xlu1 %1899 }
 0xbe3   :  { %4178 = vrcp.f32 %v1900_v33 }
 0xbe9   :  { %2149 = vrot.lane.b32.xlu2 %v4875_v53, %s4314_s29  ;;  %v4179_v47 = vpop.eup %4178 }
 0xbea   :  { %v1903_v3 = vpop.xlane.xlu2 %1902  ;;  %v1837_v10 = vpop.xlane.xlu1 %1836  ;;  %v1962_v2 = vmul.f32 %v4179_v47, %v4959_v30 }
 0xbeb   :  { %4180 = vrcp.f32 %v1903_v3  ;;  %v1861_v48 = vsub.f32 %v4963_v37, %v1837_v10 }
 0xbec   :  { %v1978_v0 = vpack.c.bf16 %v1962_v2, %v1962_v2 }
 0xbee   :  { %v1996_v21 = vunpack.c.l.b16 %v1978_v0 }
 0xbf1   :  { %v4181_v17 = vpop.eup %4180 }
 0xbf2   :  { %v1963_v51 = vmul.f32 %v4181_v17, %v4965_v46  ;;  %v1906_v7 = vpop.xlane.xlu0 %1905 }
 0xbf3   :  { %v1909_v1 = vpop.xlane.xlu1 %1908  ;;  %4182 = vrcp.f32 %v1906_v7 }
 0xbf4   :  { %v1979_v14 = vpack.c.bf16 %v1963_v51, %v1963_v51  ;;  %4184 = vrcp.f32 %v1909_v1 }
 0xbf6   :  { %v1997_v19 = vunpack.c.l.b16 %v1979_v14 }
 0xbf8   :  { %v1998_v60 = vpack.c.b16 %v1997_v19, %v1996_v21  ;;  %2074 = vrot.lane.b32.xlu1 %v4887_v11, %s4314_s29  ;;  %v1888_v11 = vmul.f32 1.442695, %v1861_v48 }
 0xbf9   :  { %v4183_v6 = vpop.eup %4182 }
 0xbfa   :  { %v4185_v53 = vpop.eup %4184  ;;  %v1964_v24 = vmul.f32 %v4183_v6, %v4975_v26  ;;  %3741 = vmatmul.msk.bf16.vlgmr.msra.gmra.mxu2 %vm630_vm6, %v1998_v60  ;;  %v1849_v30 = vpop.xlane.xlu0 %1848 }
 0xbfb   :  { %v1965_v46 = vmul.f32 %v4185_v53, %v4973_v20  ;;  %v1865_v5 = vsub.f32 %v4984_v61, %v1849_v30  ;;  %v1846_v61 = vpop.xlane.xlu2 %1845 }
 0xbfc   :  { %v1980_v59 = vpack.c.bf16 %v1964_v24, %v1964_v24  ;;  %v1864_v8 = vsub.f32 %v4971_v56, %v1846_v61 }
 0xbfd   :  { %v1981_v16 = vpack.c.bf16 %v1965_v46, %v1965_v46  ;;  %v1896_v28 = vmul.f32 1.442695, %v1865_v5 }
 0xbfe   :  { %v2021_v29 = vunpack.c.l.b16 %v1980_v59  ;;  %v1894_v37 = vmul.f32 1.442695, %v1864_v8 }
 0xbff   :  { %v2022_v9 = vunpack.c.l.b16 %v1981_v16  ;;  %4186 = vpow2.f32 %v1896_v28 }
 0xc00   :  { %4188 = vpow2.f32 %v1888_v11 }
 0xc01   :  { %v2023_v15 = vpack.c.b16 %v2022_v9, %v2021_v29  ;;  %4190 = vpow2.f32 %v1894_v37 }
 0xc02   :  { %v1912_v44 = vpop.xlane.xlu0 %1911 }
 0xc03   :  { %3742 = vmatmul.msk.bf16.vlgmr.msra.gmra.mxu3 %vm630_vm6, %v2023_v15  ;;  %4192 = vrcp.f32 %v1912_v44 }
 0xc05   :  { %v5044_v26 = vpop.eup %4186 }
 0xc06   :  { %v1943_v36 = vsel %vm630_vm6, %v5044_v26, 0.0  ;;  %v5048_v20 = vpop.eup %4188 }
 0xc07   :  { %1944 = vadd.xlane.f32.xlu0 %v1943_v36  ;;  %v1931_v38 = vsel %vm630_vm6, %v5048_v20, 0.0  ;;  %v5055_v12 = vpop.eup %4190 }
 0xc08   :  { %v1940_v41 = vsel %vm630_vm6, %v5055_v12, 0.0 }
 0xc09   :  { %v4193_v23 = vpop.eup %4192 }
 0xc0a   :  { %v1966_v32 = vmul.f32 %v4193_v23, %v4988_v43 }
 0xc12   :  { %1932 = vadd.xlane.f32.xlu2 %v1931_v38 }
 0xc1b   :  { %2174 = vrot.lane.b32.xlu0 %v4893_v62, %s4314_s29  ;;  %v1982_v62 = vpack.c.bf16 %v1966_v32, %v1966_v32 }
 0xc1d   :  { %v2046_v3 = vunpack.c.l.b16 %v1982_v62 }
 0xc22   :  { %1941 = vadd.xlane.f32.xlu1 %v1940_v41 }
 0xc2a   :  { %2124 = vrot.lane.b32.xlu2 %v4880_v63, %s4314_s29  ;;  %v1924_v56 = vpop.xlane.xlu0 %1923 }
 0xc32   :  { %v1915_v54 = vpop.xlane.xlu1 %1914 }
 0xc33   :  { %4194 = vrcp.f32 %v1915_v54 }
 0xc34   :  { %4196 = vrcp.f32 %v1924_v56 }
 0xc39   :  { %v4195_v45 = vpop.eup %4194 }
 0xc3a   :  { %v1967_v52 = vmul.f32 %v4195_v45, %v5000_v25  ;;  %v1927_v27 = vpop.xlane.xlu1 %1926  ;;  %v4197_v22 = vpop.eup %4196  ;;  %v3902_v45 = vld [vmem:[%s5601_s4 + $0x20] sm:$0xff] }
 0xc3b   :  { %4198 = vrcp.f32 %v1927_v27  ;;  %v1970_v63 = vmul.f32 %v4197_v22, %v4994_v18 }
 0xc3c   :  { %v1983_v33 = vpack.c.bf16 %v1967_v52, %v1967_v52 }
 0xc3d   :  { %v1986_v17 = vpack.c.bf16 %v1970_v63, %v1970_v63 }
 0xc3e   :  { %v2047_v10 = vunpack.c.l.b16 %v1983_v33 }
 0xc3f   :  { %v2096_v1 = vunpack.c.l.b16 %v1986_v17 }
 0xc40   :  { %v2048_v47 = vpack.c.b16 %v2047_v10, %v2046_v3 }
 0xc41   :  { %v4199_v2 = vpop.eup %4198 }
 0xc42   :  { %v1971_v0 = vmul.f32 %v4199_v2, %v5005_v31  ;;  %v1918_v51 = vpop.xlane.xlu1 %1917  ;;  %3743 = vmatmul.msk.bf16.vlgmr.msra.gmra.mxu0 %vm630_vm6, %v2048_v47 }
 0xc44   :  { %v1921_v43 = vpop.xlane.xlu2 %1920  ;;  %v1987_v7 = vpack.c.bf16 %v1971_v0, %v1971_v0  ;;  %v2733_v0 = vpack.c.bf16 %v4467_v4, %v4460_v57 }
 0xc46   :  { %v2097_v25 = vunpack.c.l.b16 %v1987_v7 }
 0xc48   :  { %v2098_v14 = vpack.c.b16 %v2097_v25, %v2096_v1 }
 0xc4a   :  { %v1936_v21 = vpop.xlane.xlu1 %1935  ;;  %3745 = vmatmul.msk.bf16.vlgmr.msrb.gmra.mxu2 %vm630_vm6, %v2098_v14 }
 0xc4b   :  { %4200 = vrcp.f32 %v1936_v21 }
 0xc4c   :  { %v2150_v19 = vpop.permute.xlu2 %2149 }
 0xc4d   :  { %2162 = vmatpush.bf16.msrb.mxu0 %v2150_v19 }
 0xc51   :  { %v4201_v60 = vpop.eup %4200 }
 0xc52   :  { %v1939_v18 = vpop.xlane.xlu1 %1938  ;;  %v1974_v31 = vmul.f32 %v4201_v60, %v5024_v50 }
 0xc53   :  { %4202 = vrcp.f32 %v1939_v18 }
 0xc54   :  { %4204 = vrcp.f32 %v1918_v51  ;;  %v1990_v53 = vpack.c.bf16 %v1974_v31, %v1974_v31 }
 0xc55   :  { %4206 = vrcp.f32 %v1921_v43 }
 0xc56   :  { %v2146_v59 = vunpack.c.l.b16 %v1990_v53 }
 0xc59   :  { %v4203_v6 = vpop.eup %4202 }
 0xc5a   :  { %v1975_v24 = vmul.f32 %v4203_v6, %v5028_v42  ;;  %v4205_v30 = vpop.eup %4204  ;;  %v1930_v42 = vpop.xlane.xlu0 %1929 }
 0xc5b   :  { %v4207_v5 = vpop.eup %4206  ;;  %v1968_v28 = vmul.f32 %v4205_v30, %v5015_v49  ;;  %4208 = vrcp.f32 %v1930_v42 }
 0xc5c   :  { %v1991_v46 = vpack.c.bf16 %v1975_v24, %v1975_v24  ;;  %v1969_v29 = vmul.f32 %v4207_v5, %v5018_v13  ;;  %v3903_v13 = vld [vmem:[%s5601_s4 + $0x28] sm:$0xff] }
 0xc5d   :  { %v1984_v48 = vpack.c.bf16 %v1968_v28, %v1968_v28 }
 0xc5e   :  { %v2147_v16 = vunpack.c.l.b16 %v1991_v46  ;;  %v1985_v15 = vpack.c.bf16 %v1969_v29, %v1969_v29  ;;  %v3895_v29 = vld [vmem:[%s5603_s6 + $0x18] sm:$0xff] }
 0xc5f   :  { %v2071_v50 = vunpack.c.l.b16 %v1984_v48  ;;  %2283 = vmatpush.bf16.msra.mxu2 %v3895_v29 }
 0xc60   :  { %v2148_v9 = vpack.c.b16 %v2147_v16, %v2146_v59  ;;  %v2072_v11 = vunpack.c.l.b16 %v1985_v15 }
 0xc61   :  { %v4209_v37 = vpop.eup %4208 }
 0xc62   :  { %3747 = vmatmul.msk.bf16.vlgmr.msrb.gmra.mxu0 %vm630_vm6, %v2148_v9  ;;  %v2073_v61 = vpack.c.b16 %v2072_v11, %v2071_v50  ;;  %v1972_v49 = vmul.f32 %v4209_v37, %v5009_v35  ;;  %v3894_v9 = vld [vmem:[%s5603_s6 + $0x10] sm:$0xff] }
 0xc63   :  { %2284 = vmatpush.bf16.msra.mxu2 %v3894_v9 }
 0xc64   :  { %v1988_v44 = vpack.c.bf16 %v1972_v49, %v1972_v49 }
 0xc66   :  { %v2121_v62 = vunpack.c.l.b16 %v1988_v44 }
 0xc6a   :  { %v2075_v36 = vpop.permute.xlu1 %2074 }
 0xc6b   :  { %2087 = vmatpush.bf16.msrb.mxu1 %v2075_v36 }
 0xc6e   :  { %3744 = vmatmul.msk.bf16.vlgmr.msrb.gmra.mxu1 %vm630_vm6, %v2073_v61 }
 0xc7a   :  { %v1945_v8 = vpop.xlane.xlu0 %1944 }
 0xc7d   :  { %v2014_v51 = vpop.f32.mrf.mxu2 }
 0xc85   :  { %v1933_v38 = vpop.xlane.xlu2 %1932  ;;  %v2016_v7 = vpop.f32.mrf.mxu2 }
 0xc86   :  { %4210 = vrcp.f32 %v1933_v38  ;;  %v2039_v53 = vpop.f32.mrf.mxu3 }
 0xc87   :  { %4212 = vrcp.f32 %v1945_v8 }
 0xc8c   :  { %v4211_v41 = vpop.eup %4210 }
 0xc8d   :  { %v1973_v56 = vmul.f32 %v4211_v41, %v5048_v20  ;;  %v2175_v54 = vpop.permute.xlu0 %2174  ;;  %v2125_v23 = vpop.permute.xlu2 %2124 }
 0xc8e   :  { %2187 = vmatpush.bf16.msra.mxu1 %v2175_v54  ;;  %2137 = vmatpush.bf16.msrb.mxu3 %v2125_v23  ;;  %v4213_v22 = vpop.eup %4212  ;;  %v2041_v24 = vpop.f32.mrf.mxu3 }
 0xc8f   :  { %v1989_v32 = vpack.c.bf16 %v1973_v56, %v1973_v56  ;;  %v1977_v20 = vmul.f32 %v4213_v22, %v5044_v26 }
 0xc91   :  { %v2122_v35 = vunpack.c.l.b16 %v1989_v32  ;;  %v1993_v3 = vpack.c.bf16 %v1977_v20, %v1977_v20 }
 0xc92   :  { %2758 = vmatpush.bf16.msrb.mxu1 %v3903_v13 }
 0xc93   :  { %v2123_v52 = vpack.c.b16 %v2122_v35, %v2121_v62  ;;  %v2172_v47 = vunpack.c.l.b16 %v1993_v3 }
 0xc95   :  { %3746 = vmatmul.msk.bf16.vlgmr.msrb.gmra.mxu3 %vm630_vm6, %v2123_v52  ;;  %v1942_v27 = vpop.xlane.xlu1 %1941 }
 0xc96   :  { %2759 = vmatpush.bf16.msrb.mxu1 %v3902_v45  ;;  %4214 = vrcp.f32 %v1942_v27 }
 0xc9c   :  { %v4215_v33 = vpop.eup %4214 }
 0xc9d   :  { %v1976_v63 = vmul.f32 %v4215_v33, %v5055_v12 }
 0xc9f   :  { %v1992_v10 = vpack.c.bf16 %v1976_v63, %v1976_v63 }
 0xca1   :  { %v2171_v2 = vunpack.c.l.b16 %v1992_v10 }
 0xca3   :  { %v2173_v17 = vpack.c.b16 %v2172_v47, %v2171_v2 }
 0xca5   :  { %3748 = vmatmul.msk.bf16.vlgmr.msra.gmra.mxu1 %vm630_vm6, %v2173_v17 }
 0xcb5   :  { %3820 = vmatmul.msk.bf16.vlgmr.msrb.gmra.mxu1 %vm163_vm2, %v2733_v0  ;;  %v4064_v0 = vld [vmem:[%s5604_s7 + $0x1] ss:$0 sm:$0xff] }
 0xcbf   :  { %v2064_v43 = vpop.f32.mrf.mxu0 }
 0xcc7   :  { %v2066_v1 = vpop.f32.mrf.mxu0 }
 0xcc8   :  { %v4013_v26 = vpack.i.bf16 %v2066_v1, %v2064_v43 }
 0xcca   :  { %4014 = vrot.lane.b32.xlu2 %v4013_v26, %s4315_s30 }
 0xccd   :  { %v2114_v25 = vpop.f32.mrf.mxu2 }
 0xcd5   :  { %v2116_v12 = vpop.f32.mrf.mxu2 }
 0xcd6   :  { %v4018_v14 = vpack.i.bf16 %v2116_v12, %v2114_v25 }
 0xcd8   :  { %4019 = vrot.lane.b32.xlu2 %v4018_v14, %s4316_s15 }
 0xcdf   :  { %v2164_v21 = vpop.f32.mrf.mxu0 }
 0xce7   :  { %v2166_v19 = vpop.f32.mrf.mxu0 }
 0xce8   :  { %v4023_v18 = vpack.i.bf16 %v2166_v19, %v2164_v21 }
 0xcea   :  { %4024 = vrot.lane.b32.xlu0 %v4023_v18, %s4317_s16 }
 0xceb   :  { %v2089_v60 = vpop.f32.mrf.mxu1 }
 0xcf3   :  { %v2091_v31 = vpop.f32.mrf.mxu1 }
 0xcf4   :  { %v4028_v6 = vpack.i.bf16 %v2091_v31, %v2089_v60 }
 0xcf6   :  { %4029 = vrot.lane.b32.xlu2 %v4028_v6, %s4315_s30 }
 0xd18   :  { %v2139_v30 = vpop.f32.mrf.mxu3 }
 0xd20   :  { %v2141_v46 = vpop.f32.mrf.mxu3 }
 0xd21   :  { %v4033_v5 = vpack.i.bf16 %v2141_v46, %v2139_v30 }
 0xd22   :  { %v2189_v59 = vpop.f32.mrf.mxu1 }
 0xd23   :  { %4034 = vrot.lane.b32.xlu1 %v4033_v5, %s4316_s15 }
 0xd24   :  { %v4015_v48 = vpop.permute.xlu2 %4014 }
 0xd25   :  { %v4017_v50 = vunpack.i.h.bf16 %v4015_v48  ;;  %v4016_v11 = vunpack.i.l.bf16 %v4015_v48 }
 0xd27   :  { %v2243_v8 = vsel %vm404_vm5, %v2016_v7, %v4017_v50  ;;  %v2242_v38 = vsel %vm404_vm5, %v2014_v51, %v4016_v11 }
 0xd2a   :  { %v2191_v16 = vpop.f32.mrf.mxu1 }
 0xd2b   :  { %v4038_v28 = vpack.i.bf16 %v2191_v16, %v2189_v59 }
 0xd2d   :  { %4039 = vrot.lane.b32.xlu0 %v4038_v28, %s4317_s16 }
 0xd32   :  { %v4020_v15 = vpop.permute.xlu2 %4019 }
 0xd33   :  { %v4022_v36 = vunpack.i.h.bf16 %v4020_v15  ;;  %v4021_v61 = vunpack.i.l.bf16 %v4020_v15 }
 0xd35   :  { %v2247_v13 = vsel %vm630_vm6, %v2243_v8, %v4022_v36  ;;  %v2246_v41 = vsel %vm630_vm6, %v2242_v38, %v4021_v61 }
 0xd50   :  { %v4030_v23 = vpop.permute.xlu2 %4029 }
 0xd51   :  { %v4032_v45 = vunpack.i.h.bf16 %v4030_v23  ;;  %v4031_v62 = vunpack.i.l.bf16 %v4030_v23 }
 0xd53   :  { %v2245_v22 = vsel %vm404_vm5, %v2041_v24, %v4032_v45  ;;  %v2244_v20 = vsel %vm404_vm5, %v2039_v53, %v4031_v62  ;;  %v2761_v24 = vpop.f32.mrf.mxu1 }
 0xd5c   :  { %v4025_v42 = vpop.permute.xlu0 %4024 }
 0xd5d   :  { %v4027_v37 = vunpack.i.h.bf16 %v4025_v42  ;;  %v4026_v49 = vunpack.i.l.bf16 %v4025_v42 }
 0xd5f   :  { %v2251_v44 = vsel %vm1079_vm7, %v2247_v13, %v4027_v37  ;;  %v2250_v56 = vsel %vm1079_vm7, %v2246_v41, %v4026_v49  ;;  %v2763_v13 = vpop.f32.mrf.mxu1 }
 0xd60   :  { %v2254_v54 = vpack.c.bf16 %v2251_v44, %v2250_v56 }
 0xd62   :  { %3757 = vmatmul.msk.bf16.vlgmr.msra.gmra.mxu2 %vm163_vm2, %v2254_v54 }
 0xd95   :  { %v4035_v32 = vpop.permute.xlu1 %4034 }
 0xd96   :  { %v4037_v35 = vunpack.i.h.bf16 %v4035_v32  ;;  %v4036_v52 = vunpack.i.l.bf16 %v4035_v32 }
 0xd98   :  { %v2249_v63 = vsel %vm630_vm6, %v2245_v22, %v4037_v35  ;;  %v2248_v10 = vsel %vm630_vm6, %v2244_v20, %v4036_v52  ;;  %v3897_v20 = vld [vmem:[%s5605_s8 + $0x18] sm:$0xff] }
 0xd99   :  { %2427 = vmatpush.bf16.msra.mxu3 %v3897_v20 }
 0xd9f   :  { %v4040_v27 = vpop.permute.xlu0 %4039 }
 0xda0   :  { %v4042_v33 = vunpack.i.h.bf16 %v4040_v27  ;;  %v4041_v3 = vunpack.i.l.bf16 %v4040_v27 }
 0xda2   :  { %v2253_v47 = vsel %vm1079_vm7, %v2249_v63, %v4042_v33  ;;  %v2252_v2 = vsel %vm1079_vm7, %v2248_v10, %v4041_v3  ;;  %v3896_v63 = vld [vmem:[%s5605_s8 + $0x10] sm:$0xff] }
 0xda3   :  { %v2255_v17 = vpack.c.bf16 %v2253_v47, %v2252_v2  ;;  %2428 = vmatpush.bf16.msra.mxu3 %v3896_v63 }
 0xda5   :  { %3758 = vmatmul.msk.bf16.gmra.mxu2 %vm163_vm2, %v2255_v17 }
 0xde5   :  { %v2286_v51 = vpop.f32.mrf.mxu2 }
 0xde6   :  { %v2287_v43 = vadd.f32 %v4064_v0, %v2286_v51 }
 0xde8   :  { %v2296_v7 = vadd.f32 %v2287_v43, %v4838_v39 }
 0xdea   :  { %v2300_v1 = vsel %vm163_vm2, %v2296_v7, 0.0 }
 0xdeb   :  { %2301 = vadd.xlane.f32.xlu2 %v2300_v1 }
 0xded   :  { %v2288_v26 = vpop.f32.mrf.mxu2 }
 0xdee   :  { %v2289_v25 = vadd.f32 %v4064_v0, %v2288_v26 }
 0xdf0   :  { %v2297_v12 = vadd.f32 %v2289_v25, %v4840_v40  ;;  %v4063_v40 = vld [vmem:[%s5602_s5 + $0x2] ss:$0 sm:$0xff] }
 0xdf1   :  { %v2762_v30 = vadd.f32 %v4063_v40, %v2761_v24  ;;  %v2764_v56 = vadd.f32 %v4063_v40, %v2763_v13 }
 0xdf2   :  { %v2303_v14 = vsel %vm163_vm2, %v2297_v12, 0.0 }
 0xdf3   :  { %2304 = vadd.xlane.f32.xlu0 %v2303_v14  ;;  %v5162_v32 = vpack.c.bf16 %v2764_v56, %v2764_v56  ;;  %v5171_v35 = vpack.c.bf16 %v2762_v30, %v2762_v30  ;;  %v5190_v14 = vld [vmem:[%s5609_s12 + $0x4] sm:$0xf] }
 0xdf5   :  { %v2819_v45 = vunpack.c.l.b16 %v5162_v32  ;;  %v2795_v52 = vunpack.c.l.b16 %v5171_v35 }
 0xdf7   :  { %v5167_v62 = vpack.c.b16 %v2819_v45, %v2819_v45  ;;  %v5175_v27 = vpack.c.b16 %v2795_v52, %v2795_v52 }
 0xe28   :  { %v2291_v21 = vpop.f32.mrf.mxu2 }
 0xe29   :  { %v2292_v19 = vadd.f32 %v4064_v0, %v2291_v21 }
 0xe2b   :  { %v2298_v18 = vadd.f32 %v2292_v19, %v4849_v34 }
 0xe2d   :  { %v2306_v60 = vsel %vm163_vm2, %v2298_v18, 0.0 }
 0xe2e   :  { %2307 = vadd.xlane.f32.xlu1 %v2306_v60  ;;  %v5193_v60 = vperm.slane %v5190_v14, 0 }
 0xe30   :  { %v2293_v31 = vpop.f32.mrf.mxu2 }
 0xe31   :  { %v2294_v6 = vadd.f32 %v4064_v0, %v2293_v31 }
 0xe33   :  { %v2299_v39 = vadd.f32 %v2294_v6, %v4851_v58 }
 0xe35   :  { %v2309_v53 = vsel %vm163_vm2, %v2299_v39, 0.0 }
 0xe36   :  { %2310 = vadd.xlane.f32.xlu2 %v2309_v53  ;;  %v5197_v53 = vperm.slane %v5190_v14, 1 }
 0xe47   :  { %2768 = vrot.lane.b32.xlu1 %v2762_v30, %s4310_s26 }
 0xe4f   :  { %2774 = vrot.lane.b32.xlu1 %v2762_v30, %s4311_s27 }
 0xe5e   :  { %v2302_v34 = vpop.xlane.xlu2 %2301 }
 0xe5f   :  { %v2312_v46 = vmul.f32 %v2302_v34, %v4741_v55 }
 0xe61   :  { %v5131_v5 = vsub.f32 %v2296_v7, %v2312_v46 }
 0xe63   :  { %v2320_v58 = vmul.f32 %v5131_v5, %v5131_v5 }
 0xe65   :  { %v2324_v59 = vsel %vm163_vm2, %v2320_v58, 0.0 }
 0xe66   :  { %v2305_v16 = vpop.xlane.xlu0 %2304  ;;  %2325 = vadd.xlane.f32.xlu0 %v2324_v59 }
 0xe67   :  { %v2313_v28 = vmul.f32 %v2305_v16, %v4741_v55 }
 0xe69   :  { %v5137_v29 = vsub.f32 %v2297_v12, %v2313_v28 }
 0xe6b   :  { %v2321_v9 = vmul.f32 %v5137_v29, %v5137_v29 }
 0xe6d   :  { %v2327_v48 = vsel %vm163_vm2, %v2321_v9, 0.0 }
 0xe6e   :  { %2328 = vadd.xlane.f32.xlu2 %v2327_v48 }
 0xea1   :  { %v2308_v15 = vpop.xlane.xlu1 %2307 }
 0xea2   :  { %v2314_v50 = vmul.f32 %v2308_v15, %v4741_v55 }
 0xea4   :  { %v5143_v11 = vsub.f32 %v2298_v18, %v2314_v50 }
 0xea6   :  { %v2322_v36 = vmul.f32 %v5143_v11, %v5143_v11 }
 0xea8   :  { %v2330_v61 = vsel %vm163_vm2, %v2322_v36, 0.0 }
 0xea9   :  { %2331 = vadd.xlane.f32.xlu0 %v2330_v61  ;;  %v2311_v42 = vpop.xlane.xlu2 %2310 }
 0xeaa   :  { %v2315_v8 = vmul.f32 %v2311_v42, %v4741_v55 }
 0xeac   :  { %v5149_v38 = vsub.f32 %v2299_v39, %v2315_v8 }
 0xeae   :  { %v2323_v37 = vmul.f32 %v5149_v38, %v5149_v38 }
 0xeb0   :  { %v2333_v49 = vsel %vm163_vm2, %v2323_v37, 0.0 }
 0xeb1   :  { %2334 = vadd.xlane.f32.xlu2 %v2333_v49 }
 0xeb9   :  { %v2769_v41 = vpop.permute.xlu1 %2768 }
 0xeba   :  { %v5154_v44 = vpack.c.bf16 %v2769_v41, %v2769_v41 }
 0xebc   :  { %v2843_v54 = vunpack.c.l.b16 %v5154_v44 }
 0xebd   :  { %2770 = vrot.lane.b32.xlu0 %v2764_v56, %s4310_s26 }
 0xebe   :  { %v5158_v23 = vpack.c.b16 %v2843_v54, %v2843_v54 }
 0xec0   :  { %2845 = vrot.lane.b32.xlu1 %v5158_v23, %s4312_s0 }
 0xec1   :  { %v2775_v50 = vpop.permute.xlu1 %2774 }
 0xec2   :  { %v5224_v63 = vpack.c.bf16 %v2775_v50, %v2775_v50 }
 0xec5   :  { %2780 = vrot.lane.b32.xlu0 %v2762_v30, %s4313_s28 }
 0xec9   :  { %2776 = vrot.lane.b32.xlu2 %v2764_v56, %s4311_s27 }
 0xecd   :  { %2821 = vrot.lane.b32.xlu0 %v5167_v62, %s4312_s0 }
 0xed1   :  { %2782 = vrot.lane.b32.xlu2 %v2764_v56, %s4313_s28 }
 0xed9   :  { %v2326_v22 = vpop.xlane.xlu0 %2325  ;;  %2797 = vrot.lane.b32.xlu2 %v5175_v27, %s4312_s0 }
 0xeda   :  { %v2336_v33 = vmul.f32 %v2326_v22, %v4741_v55 }
 0xedc   :  { %v2340_v3 = vadd.f32 1e-05, %v2336_v33 }
 0xede   :  { %4216 = vrsqrt.f32 %v2340_v3  ;;  %vm2350_vm12 = vweird.f32 %v2340_v3 }
 0xee1   :  { %v2329_v10 = vpop.xlane.xlu2 %2328 }
 0xee2   :  { %v2337_v47 = vmul.f32 %v2329_v10, %v4741_v55 }
 0xee4   :  { %v4217_v2 = vpop.eup %4216  ;;  %v2341_v17 = vadd.f32 1e-05, %v2337_v47 }
 0xee5   :  { %v2345_v0 = vmul.f32 %v4217_v2, %v2340_v3  ;;  %vm2351_vm11 = vweird.f32 %v4217_v2 }
 0xee6   :  { %4218 = vrsqrt.f32 %v2341_v17  ;;  %vm2352_vm13 = vmor %vm2350_vm12, %vm2351_vm11  ;;  %vm2360_vm15 = vweird.f32 %v2341_v17  ;;  %vm3095_vm12 = vcmask 1043456  }
 0xee7   :  { %v2346_v51 = vmul.f32 %v4217_v2, %v2345_v0 }
 0xee9   :  { %v2347_v43 = vmul.f32 0.5, %v2346_v51 }
 0xeeb   :  { %v2348_v7 = vsub.f32 1.5, %v2347_v43 }
 0xeec   :  { %v4219_v1 = vpop.eup %4218 }
 0xeed   :  { %v2349_v26 = vmul.f32 %v4217_v2, %v2348_v7  ;;  %v2355_v25 = vmul.f32 %v4219_v1, %v2341_v17  ;;  %vm2361_vm14 = vweird.f32 %v4219_v1 }
 0xeee   :  { %vm2362_vm0 = vmor %vm2360_vm15, %vm2361_vm14 }
 0xeef   :  { %v2356_v12 = vmul.f32 %v4219_v1, %v2355_v25  ;;  %v2353_v21 = vsel %vm2352_vm13, %v4217_v2, %v2349_v26  ;;  %v2891_v26 = vunpack.c.l.b16 %v5224_v63 }
 0xef0   :  { %v2384_v31 = vmul.f32 %v2353_v21, %v5131_v5 }
 0xef1   :  { %v2357_v19 = vmul.f32 0.5, %v2356_v12 }
 0xef2   :  { %v2389_v40 = vmul.f32 %v5193_v60, %v2384_v31 }
 0xef3   :  { %v2358_v18 = vsub.f32 1.5, %v2357_v19 }
 0xef4   :  { %v5203_v34 = vadd.f32 %v5197_v53, %v2389_v40 }
 0xef5   :  { %v2359_v6 = vmul.f32 %v4219_v1, %v2358_v18 }
 0xef7   :  { %v2363_v39 = vsel %vm2362_vm0, %v4219_v1, %v2359_v6  ;;  %v5241_v6 = vpack.c.b16 %v2891_v26, %v2891_v26 }
 0xef8   :  { %v2385_v24 = vmul.f32 %v2363_v39, %v5137_v29 }
 0xefa   :  { %v2390_v30 = vmul.f32 %v5193_v60, %v2385_v24 }
 0xefc   :  { %v5206_v46 = vadd.f32 %v5197_v53, %v2390_v30 }
 0xefe   :  { %v2398_v5 = vpack.c.bf16 %v5206_v46, %v5203_v34 }
 0xf00   :  { %3767 = vmatmul.msk.bf16.vlgmr.msra.gmra.mxu3 %vm163_vm2, %v2398_v5 }
 0xf1c   :  { %v2332_v58 = vpop.xlane.xlu0 %2331 }
 0xf1d   :  { %v2338_v59 = vmul.f32 %v2332_v58, %v4741_v55 }
 0xf1f   :  { %v2342_v16 = vadd.f32 1e-05, %v2338_v59 }
 0xf21   :  { %4220 = vrsqrt.f32 %v2342_v16  ;;  %vm2370_vm3 = vweird.f32 %v2342_v16 }
 0xf24   :  { %v2335_v28 = vpop.xlane.xlu2 %2334 }
 0xf25   :  { %v2339_v29 = vmul.f32 %v2335_v28, %v4741_v55 }
 0xf27   :  { %v4221_v9 = vpop.eup %4220  ;;  %v2343_v48 = vadd.f32 1e-05, %v2339_v29 }
 0xf28   :  { %v2365_v15 = vmul.f32 %v4221_v9, %v2342_v16  ;;  %vm2371_vm1 = vweird.f32 %v4221_v9  ;;  %v3900_v16 = vld [vmem:[%s5607_s10 + $0x30] sm:$0xff] }
 0xf29   :  { %4222 = vrsqrt.f32 %v2343_v48  ;;  %vm2372_vm4 = vmor %vm2370_vm3, %vm2371_vm1  ;;  %vm2380_vm10 = vweird.f32 %v2343_v48 }
 0xf2a   :  { %v2366_v36 = vmul.f32 %v4221_v9, %v2365_v15 }
 0xf2c   :  { %v2367_v61 = vmul.f32 0.5, %v2366_v36  ;;  %v2777_v42 = vpop.permute.xlu2 %2776 }
 0xf2d   :  { %v5213_v8 = vpack.c.bf16 %v2777_v42, %v2777_v42 }
 0xf2e   :  { %v2368_v37 = vsub.f32 1.5, %v2367_v61 }
 0xf2f   :  { %v4223_v49 = vpop.eup %4222  ;;  %v2915_v13 = vunpack.c.l.b16 %v5213_v8  ;;  %v2771_v41 = vpop.permute.xlu0 %2770 }
 0xf30   :  { %v2369_v56 = vmul.f32 %v4221_v9, %v2368_v37  ;;  %v2375_v54 = vmul.f32 %v4223_v49, %v2343_v48  ;;  %v5216_v45 = vpack.c.bf16 %v2771_v41, %v2771_v41  ;;  %vm2381_vm8 = vweird.f32 %v4223_v49 }
 0xf31   :  { %v5218_v52 = vpack.c.b16 %v2915_v13, %v2915_v13  ;;  %vm2382_vm11 = vmor %vm2380_vm10, %vm2381_vm8 }
 0xf32   :  { %v2376_v22 = vmul.f32 %v4223_v49, %v2375_v54  ;;  %v2867_v20 = vunpack.c.l.b16 %v5216_v45  ;;  %v2846_v33 = vpop.permute.xlu1 %2845  ;;  %v2373_v10 = vsel %vm2372_vm4, %v4221_v9, %v2369_v56 }
 0xf33   :  { %v2851_v3 = vsel %vm404_vm5, %v2846_v33, 0  ;;  %2917 = vrot.lane.b32.xlu1 %v5218_v52, %s4312_s0  ;;  %v2386_v43 = vmul.f32 %v2373_v10, %v5143_v11 }
 0xf34   :  { %v2377_v47 = vmul.f32 0.5, %v2376_v22  ;;  %v5226_v2 = vpack.c.b16 %v2867_v20, %v2867_v20  ;;  %2860 = vmatpush.bf16.xpose.msrb.mxu3 %v2851_v3  ;;  %v2783_v17 = vpop.permute.xlu2 %2782 }
 0xf35   :  { %v5228_v0 = vpack.c.bf16 %v2783_v17, %v2783_v17  ;;  %v2391_v11 = vmul.f32 %v5193_v60, %v2386_v43 }
 0xf36   :  { %v2378_v51 = vsub.f32 1.5, %v2377_v47  ;;  %2869 = vrot.lane.b32.xlu0 %v5226_v2, %s4312_s0 }
 0xf37   :  { %v2963_v7 = vunpack.c.l.b16 %v5228_v0  ;;  %v2781_v1 = vpop.permute.xlu0 %2780  ;;  %v5252_v5 = vadd.f32 %v5197_v53, %v2391_v11 }
 0xf38   :  { %v2379_v25 = vmul.f32 %v4223_v49, %v2378_v51  ;;  %v2792_v12 = vpack.c.bf16 %v2781_v1, %v2781_v1 }
 0xf39   :  { %v5235_v21 = vpack.c.b16 %v2963_v7, %v2963_v7 }
 0xf3a   :  { %v2383_v19 = vsel %vm2382_vm11, %v4223_v49, %v2379_v25  ;;  %v2939_v18 = vunpack.c.l.b16 %v2792_v12 }
 0xf3b   :  { %v2387_v31 = vmul.f32 %v2383_v19, %v5149_v38  ;;  %2965 = vrot.lane.b32.xlu1 %v5235_v21, %s4312_s0 }
 0xf3c   :  { %v5243_v39 = vpack.c.b16 %v2939_v18, %v2939_v18  ;;  %v2798_v40 = vpop.permute.xlu2 %2797 }
 0xf3d   :  { %v2803_v24 = vsel %vm404_vm5, %v2798_v40, 0  ;;  %v2392_v30 = vmul.f32 %v5193_v60, %v2387_v31 }
 0xf3e   :  { %2893 = vrot.lane.b32.xlu0 %v5241_v6, %s4312_s0  ;;  %2941 = vrot.lane.b32.xlu2 %v5243_v39, %s4312_s0 }
 0xf3f   :  { %2812 = vmatpush.bf16.xpose.msra.mxu1 %v2803_v24  ;;  %v2822_v38 = vpop.permute.xlu0 %2821  ;;  %v5255_v58 = vadd.f32 %v5197_v53, %v2392_v30  ;;  %v3901_v53 = vld [vmem:[%s5607_s10 + $0x38] sm:$0xff] }
 0xf40   :  { %v2827_v59 = vsel %vm404_vm5, %v2822_v38, 0  ;;  %2483 = vmatpush.bf16.msra.mxu0 %v3901_v53 }
 0xf41   :  { %2836 = vmatpush.bf16.xpose.msrb.mxu2 %v2827_v59  ;;  %v2399_v60 = vpack.c.bf16 %v5255_v58, %v5252_v5 }
 0xf43   :  { %3768 = vmatmul.msk.bf16.gmra.mxu3 %vm163_vm2, %v2399_v60 }
 0xf44   :  { %2484 = vmatpush.bf16.msra.mxu0 %v3900_v16 }
 0xf46   :  { %3821 = vmatmul.msk.bf16.vlgmr.msra.gmra.mxu1 %vm404_vm5, %v5171_v35  ;;  %3133 = vrot.lane.b32.xlu0 %v5158_v23, %s4314_s29  ;;  %v3899_v23 = vld [vmem:[%s5607_s10 + $0x28] sm:$0xff]  ;;  %v4065_v35 = vld [vmem:[%s5606_s9 + $0x1] ss:$0 sm:$0xff] }
 0xf48   :  { %3822 = vmatmul.msk.bf16.vlgmr.msrb.gmra.mxu2 %vm404_vm5, %v5162_v32  ;;  %2485 = vmatpush.bf16.msra.mxu0 %v3899_v23  ;;  %v3898_v32 = vld [vmem:[%s5607_s10 + $0x20] sm:$0xff] }
 0xf4c   :  { %2486 = vmatpush.bf16.msra.mxu0 %v3898_v32 }
 0xf53   :  { %3823 = vmatmul.msk.bf16.vlgmr.msrb.gmra.mxu3 %vm404_vm5, %v5154_v44 }
 0xf83   :  { %v2430_v44 = vpop.f32.mrf.mxu3 }
 0xf84   :  { %v2431_v28 = vadd.f32 %v4065_v35, %v2430_v44 }
 0xf86   :  { %v2440_v48 = vmax.f32 %v2431_v28, 0.0 }
 0xf8b   :  { %v2432_v29 = vpop.f32.mrf.mxu3 }
 0xf8c   :  { %v2433_v9 = vadd.f32 %v4065_v35, %v2432_v29 }
 0xf8e   :  { %v2441_v15 = vmax.f32 %v2433_v9, 0.0 }
 0xf90   :  { %v2444_v50 = vpack.c.bf16 %v2441_v15, %v2440_v48 }
 0xf92   :  { %3785 = vmatmul.msk.bf16.vlgmr.msra.gmra.mxu0 %vm1310_vm9, %v2444_v50 }
 0xf98   :  { %v2942_v36 = vpop.permute.xlu2 %2941 }
 0xf99   :  { %v2947_v61 = vsel %vm404_vm5, %v2942_v36, 0 }
 0xf9a   :  { %2956 = vmatpush.bf16.xpose.msra.mxu3 %v2947_v61 }
 0xfa1   :  { %3827 = vmatmul.msk.bf16.vlgmr.msra.gmra.mxu3 %vm404_vm5, %v2792_v12 }
 0xfa5   :  { %v2918_v42 = vpop.permute.xlu1 %2917 }
 0xfa6   :  { %v2923_v37 = vsel %vm404_vm5, %v2918_v42, 0 }
 0xfa7   :  { %2932 = vmatpush.bf16.xpose.msra.mxu2 %v2923_v37 }
 0xfa8   :  { %v2870_v49 = vpop.permute.xlu0 %2869 }
 0xfa9   :  { %v2875_v13 = vsel %vm404_vm5, %v2870_v49, 0 }
 0xfaa   :  { %2884 = vmatpush.bf16.xpose.msrb.mxu0 %v2875_v13 }
 0xfad   :  { %v2966_v41 = vpop.permute.xlu1 %2965 }
 0xfae   :  { %v2971_v56 = vsel %vm404_vm5, %v2966_v41, 0  ;;  %3826 = vmatmul.msk.bf16.vlgmr.msra.gmra.mxu2 %vm404_vm5, %v5213_v8 }
 0xfb0   :  { %v2894_v54 = vpop.permute.xlu0 %2893 }
 0xfb1   :  { %v2899_v22 = vsel %vm404_vm5, %v2894_v54, 0 }
 0xfb2   :  { %2980 = vmatpush.bf16.xpose.msra.mxu0 %v2971_v56  ;;  %2908 = vmatpush.bf16.xpose.msrb.mxu1 %v2899_v22 }
 0xfb8   :  { %v3134_v20 = vpop.permute.xlu0 %3133 }
 0xfb9   :  { %v3139_v33 = vsel %vm3095_vm12, %v3134_v20, 0  ;;  %3825 = vmatmul.msk.bf16.vlgmr.msrb.gmra.mxu1 %vm404_vm5, %v5224_v63 }
 0xfba   :  { %3148 = vmatpush.bf16.msrb.mxu3 %v3139_v33 }
 0xfc3   :  { %v2814_v3 = vpop.f32.mrf.mxu1 }
 0xfc4   :  { %v2986_v10 = vmul.f32 0.35355338, %v2814_v3 }
 0xfc6   :  { %v2435_v47 = vpop.f32.mrf.mxu3  ;;  %v2994_v17 = vsel %vm404_vm5, %v2986_v10, -inf }
 0xfc7   :  { %2995 = vmax.xlane.f32.xlu1 %v2994_v17  ;;  %v2436_v7 = vadd.f32 %v4065_v35, %v2435_v47 }
 0xfc9   :  { %v2442_v12 = vmax.f32 %v2436_v7, 0.0 }
 0xfcb   :  { %v2816_v8 = vpop.f32.mrf.mxu1  ;;  %v2838_v51 = vpop.f32.mrf.mxu2 }
 0xfcc   :  { %v2987_v43 = vmul.f32 0.35355338, %v2838_v51 }
 0xfce   :  { %v2437_v1 = vpop.f32.mrf.mxu3  ;;  %v2997_v26 = vsel %vm404_vm5, %v2987_v43, -inf }
 0xfcf   :  { %v2438_v25 = vadd.f32 %v4065_v35, %v2437_v1  ;;  %2998 = vmax.xlane.f32.xlu2 %v2997_v26 }
 0xfd1   :  { %v2443_v19 = vmax.f32 %v2438_v25, 0.0 }
 0xfd3   :  { %v2445_v18 = vpack.c.bf16 %v2443_v19, %v2442_v12  ;;  %v2840_v63 = vpop.f32.mrf.mxu2 }
 0xfd5   :  { %3786 = vmatmul.msk.bf16.gmra.mxu0 %vm1310_vm9, %v2445_v18 }
 0xfd6   :  { %v2862_v31 = vpop.f32.mrf.mxu3 }
 0xfd7   :  { %v2988_v42 = vmul.f32 0.35355338, %v2862_v31 }
 0xfd9   :  { %v3000_v13 = vsel %vm404_vm5, %v2988_v42, -inf }
 0xfde   :  { %v2864_v11 = vpop.f32.mrf.mxu3 }
 0xfe5   :  { %3824 = vmatmul.msk.bf16.vlgmr.msrb.gmra.mxu0 %vm404_vm5, %v5216_v45 }
 0xff5   :  { %3828 = vmatmul.msk.bf16.vlgmr.msra.gmra.mxu0 %vm404_vm5, %v5228_v0 }
0x100f   :  { %v5307_v45 = vpop.f32.mrf.mxu0 }
0x1017   :  { %v5313_v48 = vpop.f32.mrf.mxu0 }
0x1024   :  { %v2958_v40 = vpop.f32.mrf.mxu3 }
0x1025   :  { %v2992_v37 = vmul.f32 0.35355338, %v2958_v40 }
0x1027   :  { %v3012_v41 = vsel %vm404_vm5, %v2992_v37, -inf }
0x102c   :  { %v2960_v24 = vpop.f32.mrf.mxu3 }
0x1031   :  { %v2934_v30 = vpop.f32.mrf.mxu2 }
0x1032   :  { %v2991_v15 = vmul.f32 0.35355338, %v2934_v30 }
0x1034   :  { %v3009_v36 = vsel %vm404_vm5, %v2991_v15, -inf }
0x1036   :  { %v2910_v38 = vpop.f32.mrf.mxu1 }
0x1037   :  { %v5303_v59 = vmul.f32 0.35355338, %v2910_v38 }
0x1039   :  { %v2936_v60 = vpop.f32.mrf.mxu2  ;;  %v3006_v53 = vsel %vm404_vm5, %v5303_v59, -inf }
0x103a   :  { %v2996_v16 = vpop.xlane.xlu1 %2995  ;;  %3007 = vmax.xlane.f32.xlu2 %v3006_v53 }
0x103b   :  { %v3018_v23 = vsub.f32 %v2986_v10, %v2996_v16 }
0x103d   :  { %v3026_v32 = vmul.f32 1.442695, %v3018_v23 }
0x103e   :  { %v2912_v44 = vpop.f32.mrf.mxu1 }
0x103f   :  { %4224 = vpow2.f32 %v3026_v32 }
0x1042   :  { %v2999_v35 = vpop.xlane.xlu2 %2998 }
0x1043   :  { %v3019_v0 = vsub.f32 %v2987_v43, %v2999_v35 }
0x1045   :  { %v5309_v28 = vpop.eup %4224  ;;  %v3028_v29 = vmul.f32 1.442695, %v3019_v0 }
0x1046   :  { %v3042_v9 = vsel %vm404_vm5, %v5309_v28, 0.0 }
0x1047   :  { %4226 = vpow2.f32 %v3028_v29  ;;  %3043 = vadd.xlane.f32.xlu0 %v3042_v9 }
0x104d   :  { %v4227_v50 = vpop.eup %4226 }
0x104e   :  { %v3045_v61 = vsel %vm404_vm5, %v4227_v50, 0.0 }
0x104f   :  { %3010 = vmax.xlane.f32.xlu0 %v3009_v36  ;;  %3046 = vadd.xlane.f32.xlu1 %v3045_v61 }
0x1052   :  { %v5317_v49 = vpop.f32.mrf.mxu0  ;;  %3112 = vrot.lane.b32.xlu2 %v5167_v62, %s4314_s29 }
0x1057   :  { %3001 = vmax.xlane.f32.xlu0 %v3000_v13  ;;  %3013 = vmax.xlane.f32.xlu1 %v3012_v41 }
0x105a   :  { %v5323_v56 = vpop.f32.mrf.mxu0 }
0x1062   :  { %v2886_v54 = vpop.f32.mrf.mxu0 }
0x1063   :  { %v2989_v16 = vmul.f32 0.35355338, %v2886_v54 }
0x1065   :  { %v3003_v32 = vsel %vm404_vm5, %v2989_v16, -inf }
0x106a   :  { %v2888_v22 = vpop.f32.mrf.mxu0 }
0x1070   :  { %3090 = vrot.lane.b32.xlu1 %v5175_v27, %s4314_s29 }
0x1072   :  { %v2982_v20 = vpop.f32.mrf.mxu0 }
0x1073   :  { %v2993_v40 = vmul.f32 0.35355338, %v2982_v20 }
0x1075   :  { %v3015_v38 = vsel %vm404_vm5, %v2993_v40, -inf }
0x107a   :  { %v2984_v33 = vpop.f32.mrf.mxu0 }
0x10ad   :  { %v3008_v3 = vpop.xlane.xlu2 %3007 }
0x10ae   :  { %v3022_v9 = vsub.f32 %v5303_v59, %v3008_v3 }
0x10b5   :  { %v3113_v10 = vpop.permute.xlu2 %3112 }
0x10b6   :  { %v3118_v47 = vsel %vm3095_vm12, %v3113_v10, 0 }
0x10b7   :  { %3127 = vmatpush.bf16.msrb.mxu2 %v3118_v47 }
0x10ba   :  { %v3044_v62 = vpop.xlane.xlu0 %3043 }
0x10c2   :  { %v3011_v17 = vpop.xlane.xlu0 %3010  ;;  %v3047_v8 = vpop.xlane.xlu1 %3046 }
0x10c3   :  { %v3023_v51 = vsub.f32 %v2991_v15, %v3011_v17  ;;  %4228 = vrcp.f32 %v3047_v8  ;;  %v3034_v15 = vmul.f32 1.442695, %v3022_v9 }
0x10c5   :  { %v3036_v43 = vmul.f32 1.442695, %v3023_v51 }
0x10c7   :  { %4230 = vpow2.f32 %v3036_v43 }
0x10c9   :  { %v4229_v7 = vpop.eup %4228 }
0x10ca   :  { %v3075_v1 = vmul.f32 %v4229_v7, %v4227_v50  ;;  %v3002_v26 = vpop.xlane.xlu0 %3001  ;;  %v3014_v25 = vpop.xlane.xlu1 %3013 }
0x10cb   :  { %v3020_v12 = vsub.f32 %v2988_v42, %v3002_v26  ;;  %v3024_v27 = vsub.f32 %v2992_v37, %v3014_v25 }
0x10cc   :  { %v3083_v19 = vpack.c.bf16 %v3075_v1, %v3075_v1 }
0x10cd   :  { %v5328_v18 = vpop.eup %4230  ;;  %v3030_v63 = vmul.f32 1.442695, %v3020_v12  ;;  %v3038_v31 = vmul.f32 1.442695, %v3024_v27 }
0x10ce   :  { %v3057_v11 = vsel %vm404_vm5, %v5328_v18, 0.0  ;;  %3830 = vmatmul.msk.bf16.vlgmr.msrb.gmra.mxu2 %vm404_vm5, %v3083_v19 }
0x10cf   :  { %4232 = vpow2.f32 %v3030_v63  ;;  %3058 = vadd.xlane.f32.xlu0 %v3057_v11 }
0x10d0   :  { %4234 = vpow2.f32 %v3038_v31 }
0x10d1   :  { %4236 = vrcp.f32 %v3044_v62 }
0x10d2   :  { %4238 = vpow2.f32 %v3034_v15 }
0x10d5   :  { %v4233_v24 = vpop.eup %4232 }
0x10d6   :  { %v5333_v30 = vpop.eup %4234  ;;  %v3048_v60 = vsel %vm404_vm5, %v4233_v24, 0.0 }
0x10d7   :  { %3016 = vmax.xlane.f32.xlu0 %v3015_v38  ;;  %3049 = vadd.xlane.f32.xlu2 %v3048_v60  ;;  %v3060_v53 = vsel %vm404_vm5, %v5333_v30, 0.0  ;;  %v4237_v23 = vpop.eup %4236 }
0x10d8   :  { %3061 = vadd.xlane.f32.xlu1 %v3060_v53  ;;  %v3074_v44 = vmul.f32 %v4237_v23, %v5309_v28  ;;  %v4239_v50 = vpop.eup %4238 }
0x10d9   :  { %v3054_v28 = vsel %vm404_vm5, %v4239_v50, 0.0 }
0x10da   :  { %v3082_v29 = vpack.c.bf16 %v3074_v44, %v3074_v44 }
0x10df   :  { %3004 = vmax.xlane.f32.xlu2 %v3003_v32 }
0x10e2   :  { %v3091_v35 = vpop.permute.xlu1 %3090 }
0x10e3   :  { %v3097_v0 = vsel %vm3095_vm12, %v3091_v35, 0 }
0x10e4   :  { %3106 = vmatpush.bf16.msra.mxu1 %v3097_v0 }
0x10e7   :  { %3829 = vmatmul.msk.bf16.vlgmr.msra.gmra.mxu1 %vm404_vm5, %v3082_v29 }
0x10eb   :  { %3175 = vrot.lane.b32.xlu0 %v5241_v6, %s4314_s29 }
0x10f7   :  { %3154 = vrot.lane.b32.xlu2 %v5226_v2, %s4314_s29 }
0x1120   :  { %3055 = vadd.xlane.f32.xlu2 %v3054_v28 }
0x1138   :  { %3217 = vrot.lane.b32.xlu2 %v5243_v39, %s4314_s29 }
0x1142   :  { %v3059_v36 = vpop.xlane.xlu0 %3058 }
0x114a   :  { %v3017_v61 = vpop.xlane.xlu0 %3016  ;;  %v3050_v42 = vpop.xlane.xlu2 %3049 }
0x114b   :  { %v3025_v37 = vsub.f32 %v2993_v40, %v3017_v61  ;;  %4240 = vrcp.f32 %v3050_v42  ;;  %v3062_v1 = vpop.xlane.xlu1 %3061 }
0x114d   :  { %v3040_v6 = vmul.f32 1.442695, %v3025_v37 }
0x114f   :  { %4242 = vpow2.f32 %v3040_v6 }
0x1151   :  { %v4241_v13 = vpop.eup %4240  ;;  %v5351_v2 = vpop.f32.mrf.mxu2 }
0x1152   :  { %v3076_v59 = vmul.f32 %v4241_v13, %v4233_v24  ;;  %v3005_v41 = vpop.xlane.xlu2 %3004 }
0x1153   :  { %v3021_v54 = vsub.f32 %v2989_v16, %v3005_v41 }
0x1154   :  { %v3084_v22 = vpack.c.bf16 %v3076_v59, %v3076_v59 }
0x1155   :  { %v4243_v20 = vpop.eup %4242  ;;  %v3032_v33 = vmul.f32 1.442695, %v3021_v54 }
0x1156   :  { %3831 = vmatmul.msk.bf16.vlgmr.msrb.gmra.mxu3 %vm404_vm5, %v3084_v22  ;;  %v3063_v39 = vsel %vm404_vm5, %v4243_v20, 0.0 }
0x1157   :  { %4244 = vpow2.f32 %v3032_v33  ;;  %3064 = vadd.xlane.f32.xlu0 %v3063_v39  ;;  %v3905_v33 = vld [vmem:[%s5603_s6 + $0x28] sm:$0xff]  ;;  %v3904_v39 = vld [vmem:[%s5603_s6 + $0x20] sm:$0xff] }
0x1158   :  { %4246 = vrcp.f32 %v3062_v1 }
0x1159   :  { %v3131_v3 = vpop.f32.mrf.mxu2 }
0x115a   :  { %v3155_v10 = vpop.permute.xlu2 %3154 }
0x115b   :  { %v3160_v47 = vsel %vm3095_vm12, %v3155_v10, 0 }
0x115c   :  { %3169 = vmatpush.bf16.msrb.mxu0 %v3160_v47 }
0x115d   :  { %v4245_v62 = vpop.eup %4244  ;;  %v3176_v17 = vpop.permute.xlu0 %3175 }
0x115e   :  { %v3181_v8 = vsel %vm3095_vm12, %v3176_v17, 0  ;;  %v3051_v51 = vsel %vm404_vm5, %v4245_v62, 0.0  ;;  %v4247_v25 = vpop.eup %4246 }
0x115f   :  { %3190 = vmatpush.bf16.msrb.mxu1 %v3181_v8  ;;  %3052 = vadd.xlane.f32.xlu1 %v3051_v51  ;;  %v3080_v27 = vmul.f32 %v4247_v25, %v5333_v30 }
0x1161   :  { %v3088_v40 = vpack.c.bf16 %v3080_v27, %v3080_v27 }
0x1163   :  { %3314 = vmatpush.bf16.msra.mxu1 %v3905_v33 }
0x1164   :  { %v5358_v43 = vpop.f32.mrf.mxu1 }
0x1167   :  { %3315 = vmatpush.bf16.msra.mxu1 %v3904_v39 }
0x116b   :  { %3238 = vrot.lane.b32.xlu0 %v5235_v21, %s4314_s29 }
0x116c   :  { %v3110_v7 = vpop.f32.mrf.mxu1 }
0x1178   :  { %3196 = vrot.lane.b32.xlu1 %v5218_v52, %s4314_s29 }
0x1193   :  { %v3056_v26 = vpop.xlane.xlu2 %3055 }
0x1194   :  { %4248 = vrcp.f32 %v3056_v26 }
0x119a   :  { %v4249_v12 = vpop.eup %4248 }
0x119b   :  { %v3078_v19 = vmul.f32 %v4249_v12, %v4239_v50  ;;  %v3218_v63 = vpop.permute.xlu2 %3217 }
0x119c   :  { %v3223_v31 = vsel %vm3095_vm12, %v3218_v63, 0 }
0x119d   :  { %v3086_v11 = vpack.c.bf16 %v3078_v19, %v3078_v19  ;;  %3232 = vmatpush.bf16.msra.mxu3 %v3223_v31 }
0x119f   :  { %3833 = vmatmul.msk.bf16.vlgmr.msrb.gmra.mxu1 %vm404_vm5, %v3086_v11  ;;  %v4066_v11 = vld [vmem:[%s5608_s11 + $0x1] ss:$0 sm:$0xff] }
0x11a0   :  { %3835 = vmatmul.msk.bf16.vlgmr.msra.gmra.mxu3 %vm404_vm5, %v3088_v40 }
0x11ca   :  { %v3065_v21 = vpop.xlane.xlu0 %3064 }
0x11d2   :  { %v3053_v52 = vpop.xlane.xlu1 %3052 }
0x11d3   :  { %4250 = vrcp.f32 %v3053_v52 }
0x11d4   :  { %4252 = vrcp.f32 %v3065_v21  ;;  %v2489_v21 = vadd.f32 %v4066_v11, %v5307_v45 }
0x11d5   :  { %4254 = vrcp.f32 %v3059_v36 }
0x11d9   :  { %v4251_v24 = vpop.eup %4250  ;;  %v3150_v38 = vpop.f32.mrf.mxu3 }
0x11da   :  { %v3077_v60 = vmul.f32 %v4251_v24, %v4245_v62  ;;  %v4253_v32 = vpop.eup %4252 }
0x11db   :  { %v4255_v44 = vpop.eup %4254  ;;  %v3081_v35 = vmul.f32 %v4253_v32, %v4243_v20 }
0x11dc   :  { %v3085_v53 = vpack.c.bf16 %v3077_v60, %v3077_v60  ;;  %v3079_v0 = vmul.f32 %v4255_v44, %v5328_v18  ;;  %v2498_v60 = vadd.f32 %v2489_v21, %v5203_v34 }
0x11dd   :  { %v3239_v16 = vpop.permute.xlu0 %3238  ;;  %v3089_v15 = vpack.c.bf16 %v3081_v35, %v3081_v35 }
0x11de   :  { %v3244_v30 = vsel %vm3095_vm12, %v3239_v16, 0  ;;  %3832 = vmatmul.msk.bf16.vlgmr.msrb.gmra.mxu0 %vm404_vm5, %v3085_v53  ;;  %v3087_v50 = vpack.c.bf16 %v3079_v0, %v3079_v0  ;;  %v2502_v32 = vsel %vm163_vm2, %v2498_v60, 0.0 }
0x11df   :  { %3253 = vmatpush.bf16.msra.mxu0 %v3244_v30  ;;  %v2496_v30 = vadd.f32 %v4066_v11, %v5323_v56  ;;  %v2491_v56 = vadd.f32 %v4066_v11, %v5313_v48 }
0x11e1   :  { %v3152_v23 = vpop.f32.mrf.mxu3 }
0x11ea   :  { %v3197_v29 = vpop.permute.xlu1 %3196 }
0x11eb   :  { %v3202_v9 = vsel %vm3095_vm12, %v3197_v29, 0 }
0x11ec   :  { %3211 = vmatpush.bf16.msra.mxu2 %v3202_v9 }
0x11ee   :  { %3836 = vmatmul.msk.bf16.vlgmr.msra.gmra.mxu0 %vm404_vm5, %v3089_v15 }
0x11ef   :  { %3834 = vmatmul.msk.bf16.vlgmr.msra.gmra.mxu2 %vm404_vm5, %v3087_v50  ;;  %v5418_v50 = vadd.f32 %v2491_v56, %v5206_v46 }
0x121c   :  { %v3192_v28 = vpop.f32.mrf.mxu1 }
0x1223   :  { %v3234_v61 = vpop.f32.mrf.mxu3 }
0x1224   :  { %v3194_v42 = vpop.f32.mrf.mxu1 }
0x122b   :  { %v3236_v36 = vpop.f32.mrf.mxu3 }
0x122c   :  { %v2494_v36 = vadd.f32 %v4066_v11, %v5317_v49 }
0x125b   :  { %v3171_v37 = vpop.f32.mrf.mxu0 }
0x125c   :  { %v4043_v6 = vpack.i.bf16 %v3171_v37, %v3150_v38 }
0x125e   :  { %4044 = vrot.lane.b32.xlu1 %v4043_v6, %s4315_s30  ;;  %v2505_v6 = vsel %vm163_vm2, %v5418_v50, 0.0 }
0x1263   :  { %v3173_v13 = vpop.f32.mrf.mxu0 }
0x126b   :  { %v3255_v18 = vpop.f32.mrf.mxu0 }
0x126c   :  { %v4053_v59 = vpack.i.bf16 %v3255_v18, %v3234_v61 }
0x126e   :  { %4054 = vrot.lane.b32.xlu0 %v4053_v59, %s4317_s16  ;;  %v5435_v59 = vadd.f32 %v2494_v36, %v5252_v5  ;;  %s4320_s16 = smov 128  }
0x1272   :  { %v3213_v41 = vpop.f32.mrf.mxu2 }
0x1273   :  { %v4048_v54 = vpack.i.bf16 %v3213_v41, %v3192_v28  ;;  %v3257_v22 = vpop.f32.mrf.mxu0 }
0x1275   :  { %4049 = vrot.lane.b32.xlu2 %v4048_v54, %s4316_s15  ;;  %v2508_v54 = vsel %vm163_vm2, %v5435_v59, 0.0  ;;  %s3570_s15 = sshll.u32 %s5611_s14, 4  ;;  %s3571_s15 = int_to_ptr.hbm [resolvable:$true] %s3570_s15 }
0x127a   :  { %v3215_v20 = vpop.f32.mrf.mxu2 }
0x127b   :  { %v3907_v20 = vld [vmem:[%s5605_s8 + $0x28] sm:$0xff] }
0x127c   :  { %3399 = vmatpush.bf16.msrb.mxu2 %v3907_v20 }
0x12cf   :  { %v4050_v62 = vpop.permute.xlu2 %4049 }
0x12d0   :  { %v4045_v3 = vpop.permute.xlu1 %4044  ;;  %v4052_v51 = vunpack.i.h.bf16 %v4050_v62  ;;  %v4051_v7 = vunpack.i.l.bf16 %v4050_v62 }
0x12d1   :  { %v4047_v10 = vunpack.i.h.bf16 %v4045_v3  ;;  %v4046_v47 = vunpack.i.l.bf16 %v4045_v3  ;;  %v3906_v3 = vld [vmem:[%s5605_s8 + $0x20] sm:$0xff] }
0x12d2   :  { %3400 = vmatpush.bf16.msrb.mxu2 %v3906_v3  ;;  %v3908_v3 = vld [vmem:[%s5607_s10 + $0x40] sm:$0xff] }
0x12d3   :  { %v3284_v17 = vsel %vm404_vm5, %v5351_v2, %v4047_v10  ;;  %v3283_v8 = vsel %vm404_vm5, %v5358_v43, %v4046_v47  ;;  %v4067_v2 = vld [vmem:[%s5604_s7 + $0x2] ss:$0 sm:$0xff] }
0x12d4   :  { %v3285_v12 = vsel %vm630_vm6, %v3283_v8, %v4051_v7  ;;  %v3286_v27 = vsel %vm630_vm6, %v3284_v17, %v4052_v51 }
0x12e0   :  { %v4055_v1 = vpop.permute.xlu0 %4054 }
0x12e1   :  { %v4057_v26 = vunpack.i.h.bf16 %v4055_v1  ;;  %v4056_v25 = vunpack.i.l.bf16 %v4055_v1 }
0x12e3   :  { %v3287_v19 = vsel %vm1079_vm7, %v3285_v12, %v4056_v25  ;;  %v3288_v63 = vsel %vm1079_vm7, %v3286_v27, %v4057_v26 }
0x12e4   :  { %v3289_v31 = vpack.c.bf16 %v3288_v63, %v3287_v19 }
0x12e6   :  { %3845 = vmatmul.msk.bf16.vlgmr.msra.gmra.mxu1 %vm163_vm2, %v3289_v31 }
0x1363   :  { %v3317_v43 = vpop.f32.mrf.mxu1 }
0x1364   :  { %v3318_v40 = vadd.f32 %v4067_v2, %v3317_v43 }
0x1366   :  { %v3322_v52 = vadd.f32 %v3318_v40, %v4460_v57  ;;  %v2501_v57 = vadd.f32 %v2496_v30, %v5255_v58 }
0x1368   :  { %v3324_v24 = vsel %vm163_vm2, %v3322_v52, 0.0  ;;  %v2511_v45 = vsel %vm163_vm2, %v2501_v57, 0.0 }
0x1369   :  { %3325 = vadd.xlane.f32.xlu1 %v3324_v24  ;;  %v5457_v24 = vld [vmem:[%s5609_s12 + $0x8] sm:$0xf] }
0x136a   :  { %v3368_v30 = vperm.slane %v5457_v24, 0 }
0x136b   :  { %v3319_v38 = vpop.f32.mrf.mxu1 }
0x136c   :  { %v3320_v53 = vadd.f32 %v4067_v2, %v3319_v38 }
0x136e   :  { %v3323_v16 = vadd.f32 %v3320_v53, %v4467_v4 }
0x1370   :  { %v3327_v23 = vsel %vm163_vm2, %v3323_v16, 0.0 }
0x1371   :  { %3328 = vadd.xlane.f32.xlu2 %v3327_v23  ;;  %2503 = vadd.xlane.f32.xlu1 %v2502_v32 }
0x1379   :  { %2512 = vadd.xlane.f32.xlu1 %v2511_v45 }
0x13dc   :  { %v3326_v44 = vpop.xlane.xlu1 %3325 }
0x13dd   :  { %v3330_v35 = vmul.f32 %v3326_v44, %v4741_v55 }
0x13df   :  { %v5409_v34 = vsub.f32 %v3322_v52, %v3330_v35 }
0x13e1   :  { %v3334_v4 = vmul.f32 %v5409_v34, %v5409_v34 }
0x13e3   :  { %v3336_v0 = vsel %vm163_vm2, %v3334_v4, 0.0  ;;  %v3371_v4 = vperm.slane %v5457_v24, 1 }
0x13e4   :  { %v3329_v29 = vpop.xlane.xlu2 %3328  ;;  %3337 = vadd.xlane.f32.xlu0 %v3336_v0  ;;  %v2504_v9 = vpop.xlane.xlu1 %2503  ;;  %v5463_v0 = vperm.slane %v5190_v14, 2 }
0x13e5   :  { %v3331_v58 = vmul.f32 %v3329_v29, %v4741_v55  ;;  %v2514_v15 = vmul.f32 %v2504_v9, %v4741_v55 }
0x13e7   :  { %v5420_v28 = vsub.f32 %v3323_v16, %v3331_v58  ;;  %v5422_v61 = vsub.f32 %v2498_v60, %v2514_v15 }
0x13e9   :  { %v3335_v42 = vmul.f32 %v5420_v28, %v5420_v28  ;;  %v2522_v48 = vmul.f32 %v5422_v61, %v5422_v61 }
0x13eb   :  { %v3339_v37 = vsel %vm163_vm2, %v3335_v42, 0.0  ;;  %v2526_v46 = vsel %vm163_vm2, %v2522_v48, 0.0  ;;  %v5468_v42 = vperm.slane %v5190_v14, 3 }
0x13ec   :  { %3340 = vadd.xlane.f32.xlu2 %v3339_v37  ;;  %2506 = vadd.xlane.f32.xlu0 %v2505_v6  ;;  %v2513_v13 = vpop.xlane.xlu1 %2512 }
0x13ed   :  { %2527 = vadd.xlane.f32.xlu1 %v2526_v46  ;;  %v2517_v18 = vmul.f32 %v2513_v13, %v4741_v55 }
0x13ef   :  { %v5437_v41 = vsub.f32 %v2501_v57, %v2517_v18 }
0x13f1   :  { %v2525_v49 = vmul.f32 %v5437_v41, %v5437_v41 }
0x13f3   :  { %v2535_v22 = vsel %vm163_vm2, %v2525_v49, 0.0 }
0x13f4   :  { %2509 = vadd.xlane.f32.xlu2 %v2508_v54 }
0x13f5   :  { %2536 = vadd.xlane.f32.xlu1 %v2535_v22 }
0x1457   :  { %v3338_v33 = vpop.xlane.xlu0 %3337 }
0x1458   :  { %v3342_v5 = vmul.f32 %v3338_v33, %v4741_v55 }
0x145a   :  { %v3344_v39 = vadd.f32 1e-05, %v3342_v5  ;;  %v3911_v5 = vld [vmem:[%s5607_s10 + $0x58] sm:$0xff] }
0x145b   :  { %3444 = vmatpush.bf16.msrb.mxu3 %v3911_v5 }
0x145c   :  { %4256 = vrsqrt.f32 %v3344_v39  ;;  %vm3352_vm6 = vweird.f32 %v3344_v39 }
0x145f   :  { %v3341_v10 = vpop.xlane.xlu2 %3340 }
0x1460   :  { %v3343_v47 = vmul.f32 %v3341_v10, %v4741_v55  ;;  %v2528_v62 = vpop.xlane.xlu1 %2527 }
0x1461   :  { %v2538_v17 = vmul.f32 %v2528_v62, %v4741_v55 }
0x1462   :  { %v4257_v8 = vpop.eup %4256  ;;  %v3345_v51 = vadd.f32 1e-05, %v3343_v47 }
0x1463   :  { %v3347_v7 = vmul.f32 %v4257_v8, %v3344_v39  ;;  %v2542_v1 = vadd.f32 1e-05, %v2538_v17  ;;  %vm3353_vm5 = vweird.f32 %v4257_v8  ;;  %v3910_v39 = vld [vmem:[%s5607_s10 + $0x50] sm:$0xff] }
0x1464   :  { %4258 = vrsqrt.f32 %v3345_v51  ;;  %vm3354_vm7 = vmor %vm3352_vm6, %vm3353_vm5  ;;  %vm3362_vm15 = vweird.f32 %v3345_v51  ;;  %3445 = vmatpush.bf16.msrb.mxu3 %v3910_v39 }
0x1465   :  { %v3348_v26 = vmul.f32 %v4257_v8, %v3347_v7  ;;  %4260 = vrsqrt.f32 %v2542_v1  ;;  %vm2552_vm1 = vweird.f32 %v2542_v1 }
0x1467   :  { %v3349_v25 = vmul.f32 0.5, %v3348_v26 }
0x1468   :  { %v2537_v12 = vpop.xlane.xlu1 %2536 }
0x1469   :  { %v3350_v27 = vsub.f32 1.5, %v3349_v25  ;;  %v2541_v19 = vmul.f32 %v2537_v12, %v4741_v55 }
0x146a   :  { %v4259_v63 = vpop.eup %4258 }
0x146b   :  { %v4261_v31 = vpop.eup %4260  ;;  %v3351_v2 = vmul.f32 %v4257_v8, %v3350_v27  ;;  %v3357_v43 = vmul.f32 %v4259_v63, %v3345_v51  ;;  %v2545_v11 = vadd.f32 1e-05, %v2541_v19  ;;  %vm3363_vm13 = vweird.f32 %v4259_v63  ;;  %v4068_v27 = vld [vmem:[%s5606_s9 + $0x2] ss:$0 sm:$0xff] }
0x146c   :  { %v2547_v40 = vmul.f32 %v4261_v31, %v2542_v1  ;;  %vm2553_vm14 = vweird.f32 %v4261_v31  ;;  %vm3364_vm0 = vmor %vm3362_vm15, %vm3363_vm13 }
0x146d   :  { %v3358_v52 = vmul.f32 %v4259_v63, %v3357_v43  ;;  %4262 = vrsqrt.f32 %v2545_v11  ;;  %v3355_v38 = vsel %vm3354_vm7, %v4257_v8, %v3351_v2  ;;  %vm2554_vm3 = vmor %vm2552_vm1, %vm2553_vm14  ;;  %vm2582_vm8 = vweird.f32 %v2545_v11 }
0x146e   :  { %v2548_v21 = vmul.f32 %v4261_v31, %v2547_v40  ;;  %v3366_v23 = vmul.f32 %v3355_v38, %v5409_v34 }
0x146f   :  { %v3359_v60 = vmul.f32 0.5, %v3358_v52 }
0x1470   :  { %v2549_v53 = vmul.f32 0.5, %v2548_v21  ;;  %v3369_v29 = vmul.f32 %v3368_v30, %v3366_v23 }
0x1471   :  { %v3360_v16 = vsub.f32 1.5, %v3359_v60 }
0x1472   :  { %v2550_v32 = vsub.f32 1.5, %v2549_v53  ;;  %v5471_v6 = vadd.f32 %v3371_v4, %v3369_v29 }
0x1473   :  { %v4263_v57 = vpop.eup %4262  ;;  %v3361_v45 = vmul.f32 %v4259_v63, %v3360_v16 }
0x1474   :  { %v2551_v44 = vmul.f32 %v4261_v31, %v2550_v32  ;;  %v2577_v35 = vmul.f32 %v4263_v57, %v2545_v11  ;;  %vm2583_vm4 = vweird.f32 %v4263_v57 }
0x1475   :  { %v3365_v56 = vsel %vm3364_vm0, %v4259_v63, %v3361_v45  ;;  %vm2584_vm10 = vmor %vm2582_vm8, %vm2583_vm4 }
0x1476   :  { %v3367_v9 = vmul.f32 %v3365_v56, %v5420_v28  ;;  %v2578_v34 = vmul.f32 %v4263_v57, %v2577_v35  ;;  %v2555_v58 = vsel %vm2554_vm3, %v4261_v31, %v2551_v44 }
0x1477   :  { %v2586_v15 = vmul.f32 %v2555_v58, %v5422_v61 }
0x1478   :  { %v3370_v48 = vmul.f32 %v3368_v30, %v3367_v9  ;;  %v2579_v36 = vmul.f32 0.5, %v2578_v34 }
0x1479   :  { %v2591_v37 = vmul.f32 %v5463_v0, %v2586_v15 }
0x147a   :  { %v5473_v46 = vadd.f32 %v3371_v4, %v3370_v48  ;;  %v2580_v13 = vsub.f32 1.5, %v2579_v36 }
0x147b   :  { %v2596_v18 = vadd.f32 %v5468_v42, %v2591_v37 }
0x147c   :  { %v3374_v28 = vpack.c.bf16 %v5473_v46, %v5471_v6  ;;  %v2581_v49 = vmul.f32 %v4263_v57, %v2580_v13 }
0x147d   :  { %v2601_v14 = vsel %vm163_vm2, %v2596_v18, 0.0 }
0x147e   :  { %2602 = vadd.xlane.f32.xlu1 %v2601_v14  ;;  %3854 = vmatmul.msk.bf16.vlgmr.msrb.gmra.mxu2 %vm163_vm2, %v3374_v28  ;;  %v2585_v61 = vsel %vm2584_vm10, %v4263_v57, %v2581_v49  ;;  %v2600_v57 = vld [vmem:[%s5610_s13] sm:$0x3] }
0x147f   :  { %v2589_v54 = vmul.f32 %v2585_v61, %v5437_v41  ;;  %v3909_v41 = vld [vmem:[%s5607_s10 + $0x48] sm:$0xff]  ;;  %v5509_v56 = vperm.slane %v2600_v57, 0  ;;  %v5511_v34 = vperm.slane %v2600_v57, 1  ;;  %v4069_v61 = vld [vmem:[%s5608_s11 + $0x2] ss:$0 sm:$0xff] }
0x1480   :  { %3446 = vmatpush.bf16.msrb.mxu3 %v3909_v41 }
0x1481   :  { %v2594_v22 = vmul.f32 %v5463_v0, %v2589_v54  ;;  %v2507_v54 = vpop.xlane.xlu0 %2506 }
0x1483   :  { %v2599_v20 = vadd.f32 %v5468_v42, %v2594_v22 }
0x1484   :  { %3447 = vmatpush.bf16.msrb.mxu3 %v3908_v3  ;;  %v2510_v3 = vpop.xlane.xlu2 %2509 }
0x1485   :  { %v2610_v33 = vsel %vm163_vm2, %v2599_v20, 0.0 }
0x1486   :  { %2611 = vadd.xlane.f32.xlu1 %v2610_v33 }
0x14f1   :  { %v2603_v10 = vpop.xlane.xlu1 %2602 }
0x14f2   :  { %v2613_v47 = vmul.f32 %v2603_v10, %v4741_v55 }
0x14f4   :  { %v2617_v62 = vsub.f32 %v2596_v18, %v2613_v47  ;;  %v2516_v47 = vmul.f32 %v2510_v3, %v4741_v55 }
0x14f6   :  { %v2621_v17 = vmul.f32 %v2617_v62, %v2617_v62 }
0x14f8   :  { %v2625_v8 = vsel %vm163_vm2, %v2621_v17, 0.0 }
0x14f9   :  { %2626 = vadd.xlane.f32.xlu1 %v2625_v8  ;;  %v2612_v51 = vpop.xlane.xlu1 %2611 }
0x14fa   :  { %v2616_v7 = vmul.f32 %v2612_v51, %v4741_v55  ;;  %v2520_v51 = vsub.f32 %v5435_v59, %v2516_v47 }
0x14fc   :  { %v2620_v1 = vsub.f32 %v2599_v20, %v2616_v7  ;;  %v2515_v20 = vmul.f32 %v2507_v54, %v4741_v55 }
0x14fe   :  { %v2624_v26 = vmul.f32 %v2620_v1, %v2620_v1  ;;  %v2519_v39 = vsub.f32 %v5418_v50, %v2515_v20  ;;  %v2524_v50 = vmul.f32 %v2520_v51, %v2520_v51 }
0x1500   :  { %v2634_v25 = vsel %vm163_vm2, %v2624_v26, 0.0  ;;  %v2523_v17 = vmul.f32 %v2519_v39, %v2519_v39 }
0x1501   :  { %2635 = vadd.xlane.f32.xlu1 %v2634_v25  ;;  %v3402_v12 = vpop.f32.mrf.mxu2 }
0x1502   :  { %v3403_v19 = vadd.f32 %v4068_v27, %v3402_v12 }
0x1504   :  { %v3407_v2 = vmax.f32 %v3403_v19, 0.0 }
0x1509   :  { %v3404_v63 = vpop.f32.mrf.mxu2 }
0x150a   :  { %v3405_v31 = vadd.f32 %v4068_v27, %v3404_v63 }
0x150c   :  { %v3408_v43 = vmax.f32 %v3405_v31, 0.0 }
0x150e   :  { %v3409_v11 = vpack.c.bf16 %v3408_v43, %v3407_v2 }
0x1510   :  { %3871 = vmatmul.msk.bf16.vlgmr.msrb.gmra.mxu3 %vm1310_vm9, %v3409_v11 }
0x156c   :  { %v2627_v40 = vpop.xlane.xlu1 %2626 }
0x156d   :  { %v2637_v52 = vmul.f32 %v2627_v40, %v4741_v55 }
0x156f   :  { %v2641_v21 = vadd.f32 1e-05, %v2637_v52 }
0x1571   :  { %4264 = vrsqrt.f32 %v2641_v21  ;;  %vm2651_vm11 = vweird.f32 %v2641_v21 }
0x1574   :  { %v2636_v38 = vpop.xlane.xlu1 %2635 }
0x1575   :  { %v2640_v60 = vmul.f32 %v2636_v38, %v4741_v55 }
0x1577   :  { %v4265_v53 = vpop.eup %4264  ;;  %v2644_v16 = vadd.f32 1e-05, %v2640_v60 }
0x1578   :  { %v2646_v30 = vmul.f32 %v4265_v53, %v2641_v21  ;;  %vm2652_vm9 = vweird.f32 %v4265_v53 }
0x1579   :  { %4266 = vrsqrt.f32 %v2644_v16  ;;  %vm2653_vm12 = vmor %vm2651_vm11, %vm2652_vm9  ;;  %vm2681_vm6 = vweird.f32 %v2644_v16 }
0x157a   :  { %v2647_v23 = vmul.f32 %v4265_v53, %v2646_v30 }
0x157c   :  { %v2648_v32 = vmul.f32 0.5, %v2647_v23 }
0x157e   :  { %v2649_v45 = vsub.f32 1.5, %v2648_v32 }
0x157f   :  { %v4267_v44 = vpop.eup %4266 }
0x1580   :  { %v2650_v35 = vmul.f32 %v4265_v53, %v2649_v45  ;;  %v2676_v4 = vmul.f32 %v4267_v44, %v2644_v16  ;;  %vm2682_vm5 = vweird.f32 %v4267_v44 }
0x1581   :  { %vm2683_vm7 = vmor %vm2681_vm6, %vm2682_vm5 }
0x1582   :  { %v2654_v29 = vsel %vm2653_vm12, %v4265_v53, %v2650_v35  ;;  %v2677_v9 = vmul.f32 %v4267_v44, %v2676_v4 }
0x1583   :  { %v2685_v58 = vmul.f32 %v2654_v29, %v2617_v62 }
0x1584   :  { %v2678_v15 = vmul.f32 0.5, %v2677_v9 }
0x1585   :  { %v2690_v48 = vmul.f32 %v5509_v56, %v2685_v58 }
0x1586   :  { %v2679_v36 = vsub.f32 1.5, %v2678_v15 }
0x1587   :  { %v2695_v37 = vadd.f32 %v5511_v34, %v2690_v48 }
0x1588   :  { %v2680_v13 = vmul.f32 %v4267_v44, %v2679_v36 }
0x1589   :  { %3558 = vst.msk [vmem:[#allocation2] sm:$0xff] %vm163_vm2, %v2695_v37 }
0x158a   :  { %v2684_v18 = vsel %vm2683_vm7, %v4267_v44, %v2680_v13 }
0x158b   :  { %v2688_v28 = vmul.f32 %v2684_v18, %v2620_v1  ;;  %v2529_v1 = vsel %vm163_vm2, %v2523_v17, 0.0 }
0x158d   :  { %v2693_v49 = vmul.f32 %v5509_v56, %v2688_v28 }
0x158f   :  { %v2698_v14 = vadd.f32 %v5511_v34, %v2693_v49 }
0x1591   :  { %3562 = vst.msk [vmem:[#allocation2 + $0x20] sm:$0xff] %vm163_vm2, %v2698_v14 }
0x1593   :  { %v3449_v22 = vpop.f32.mrf.mxu3 }
0x1594   :  { %v3450_v33 = vadd.f32 %v4069_v61, %v3449_v22 }
0x1596   :  { %v3454_v5 = vadd.f32 %v3450_v33, %v5471_v6  ;;  %v2532_v6 = vsel %vm163_vm2, %v2524_v50, 0.0 }
0x1598   :  { %v3456_v41 = vsel %vm163_vm2, %v3454_v5, 0.0 }
0x1599   :  { %3457 = vadd.xlane.f32.xlu0 %v3456_v41 }
0x159b   :  { %v3451_v10 = vpop.f32.mrf.mxu3 }
0x159c   :  { %v3452_v62 = vadd.f32 %v4069_v61, %v3451_v10 }
0x159e   :  { %v3455_v8 = vadd.f32 %v3452_v62, %v5473_v46  ;;  %v3500_v62 = vperm.slane %v5457_v24, 2 }
0x15a0   :  { %v3459_v7 = vsel %vm163_vm2, %v3455_v8, 0.0 }
0x15a1   :  { %3460 = vadd.xlane.f32.xlu2 %v3459_v7  ;;  %2530 = vadd.xlane.f32.xlu0 %v2529_v1  ;;  %v3503_v7 = vperm.slane %v5457_v24, 3 }
0x15a9   :  { %2533 = vadd.xlane.f32.xlu2 %v2532_v6 }
0x160c   :  { %v3458_v26 = vpop.xlane.xlu0 %3457 }
0x160d   :  { %v3462_v25 = vmul.f32 %v3458_v26, %v4741_v55 }
0x160f   :  { %v5533_v12 = vsub.f32 %v3454_v5, %v3462_v25 }
0x1611   :  { %v3466_v46 = vmul.f32 %v5533_v12, %v5533_v12 }
0x1613   :  { %v3468_v59 = vsel %vm163_vm2, %v3466_v46, 0.0 }
0x1614   :  { %v3461_v27 = vpop.xlane.xlu2 %3460  ;;  %3469 = vadd.xlane.f32.xlu0 %v3468_v59  ;;  %v2531_v19 = vpop.xlane.xlu0 %2530 }
0x1615   :  { %v3463_v63 = vmul.f32 %v3461_v27, %v4741_v55  ;;  %v2539_v31 = vmul.f32 %v2531_v19, %v4741_v55 }
0x1617   :  { %v5540_v2 = vsub.f32 %v3455_v8, %v3463_v63  ;;  %v2543_v43 = vadd.f32 1e-05, %v2539_v31 }
0x1619   :  { %4268 = vrsqrt.f32 %v2543_v43  ;;  %v3467_v11 = vmul.f32 %v5540_v2, %v5540_v2  ;;  %vm2562_vm14 = vweird.f32 %v2543_v43 }
0x161b   :  { %v3471_v40 = vsel %vm163_vm2, %v3467_v11, 0.0 }
0x161c   :  { %3472 = vadd.xlane.f32.xlu2 %v3471_v40  ;;  %v2534_v52 = vpop.xlane.xlu2 %2533 }
0x161d   :  { %v2540_v21 = vmul.f32 %v2534_v52, %v4741_v55 }
0x161f   :  { %v4269_v38 = vpop.eup %4268  ;;  %v2544_v60 = vadd.f32 1e-05, %v2540_v21 }
0x1620   :  { %v2557_v53 = vmul.f32 %v4269_v38, %v2543_v43  ;;  %vm2563_vm13 = vweird.f32 %v4269_v38 }
0x1621   :  { %4270 = vrsqrt.f32 %v2544_v60  ;;  %vm2564_vm15 = vmor %vm2562_vm14, %vm2563_vm13  ;;  %vm2572_vm1 = vweird.f32 %v2544_v60 }
0x1622   :  { %v2558_v16 = vmul.f32 %v4269_v38, %v2557_v53 }
0x1624   :  { %v2559_v30 = vmul.f32 0.5, %v2558_v16 }
0x1626   :  { %v2560_v23 = vsub.f32 1.5, %v2559_v30 }
0x1627   :  { %v4271_v32 = vpop.eup %4270 }
0x1628   :  { %v2561_v57 = vmul.f32 %v4269_v38, %v2560_v23  ;;  %v2567_v45 = vmul.f32 %v4271_v32, %v2544_v60  ;;  %vm2573_vm0 = vweird.f32 %v4271_v32 }
0x1629   :  { %vm2574_vm3 = vmor %vm2572_vm1, %vm2573_vm0 }
0x162a   :  { %v2568_v44 = vmul.f32 %v4271_v32, %v2567_v45  ;;  %v2565_v35 = vsel %vm2564_vm15, %v4269_v38, %v2561_v57 }
0x162b   :  { %v2587_v4 = vmul.f32 %v2565_v35, %v2519_v39 }
0x162c   :  { %v2569_v29 = vmul.f32 0.5, %v2568_v44 }
0x162d   :  { %v2592_v9 = vmul.f32 %v5463_v0, %v2587_v4 }
0x162e   :  { %v2570_v58 = vsub.f32 1.5, %v2569_v29 }
0x162f   :  { %v2597_v15 = vadd.f32 %v5468_v42, %v2592_v9 }
0x1630   :  { %v2571_v48 = vmul.f32 %v4271_v32, %v2570_v58 }
0x1631   :  { %v2604_v36 = vsel %vm163_vm2, %v2597_v15, 0.0 }
0x1632   :  { %2605 = vadd.xlane.f32.xlu0 %v2604_v36  ;;  %v2575_v37 = vsel %vm2574_vm3, %v4271_v32, %v2571_v48 }
0x1633   :  { %v2588_v13 = vmul.f32 %v2575_v37, %v2520_v51 }
0x1635   :  { %v2593_v18 = vmul.f32 %v5463_v0, %v2588_v13 }
0x1637   :  { %v2598_v28 = vadd.f32 %v5468_v42, %v2593_v18 }
0x1639   :  { %v2607_v49 = vsel %vm163_vm2, %v2598_v28, 0.0 }
0x163a   :  { %2608 = vadd.xlane.f32.xlu2 %v2607_v49 }
0x1687   :  { %v3470_v14 = vpop.xlane.xlu0 %3469 }
0x1688   :  { %v3474_v61 = vmul.f32 %v3470_v14, %v4741_v55 }
0x168a   :  { %v3476_v54 = vadd.f32 1e-05, %v3474_v61 }
0x168c   :  { %4272 = vrsqrt.f32 %v3476_v54  ;;  %vm3484_vm8 = vweird.f32 %v3476_v54 }
0x168f   :  { %v3473_v22 = vpop.xlane.xlu2 %3472 }
0x1690   :  { %v3475_v20 = vmul.f32 %v3473_v22, %v4741_v55 }
0x1692   :  { %v4273_v33 = vpop.eup %4272  ;;  %v3477_v5 = vadd.f32 1e-05, %v3475_v20 }
0x1693   :  { %v3479_v39 = vmul.f32 %v4273_v33, %v3476_v54  ;;  %vm3485_vm4 = vweird.f32 %v4273_v33 }
0x1694   :  { %4274 = vrsqrt.f32 %v3477_v5  ;;  %vm3486_vm10 = vmor %vm3484_vm8, %vm3485_vm4  ;;  %vm3494_vm11 = vweird.f32 %v3477_v5 }
0x1695   :  { %v3480_v41 = vmul.f32 %v4273_v33, %v3479_v39 }
0x1697   :  { %v3481_v3 = vmul.f32 0.5, %v3480_v41 }
0x1699   :  { %v3482_v0 = vsub.f32 1.5, %v3481_v3 }
0x169a   :  { %v4275_v42 = vpop.eup %4274 }
0x169b   :  { %v3483_v10 = vmul.f32 %v4273_v33, %v3482_v0  ;;  %v3489_v47 = vmul.f32 %v4275_v42, %v3477_v5  ;;  %vm3495_vm9 = vweird.f32 %v4275_v42 }
0x169c   :  { %vm3496_vm12 = vmor %vm3494_vm11, %vm3495_vm9 }
0x169d   :  { %v3490_v17 = vmul.f32 %v4275_v42, %v3489_v47  ;;  %v3487_v8 = vsel %vm3486_vm10, %v4273_v33, %v3483_v10 }
0x169e   :  { %v3498_v51 = vmul.f32 %v3487_v8, %v5533_v12 }
0x169f   :  { %v3491_v1 = vmul.f32 0.5, %v3490_v17 }
0x16a0   :  { %v3501_v50 = vmul.f32 %v3500_v62, %v3498_v51 }
0x16a1   :  { %v3492_v6 = vsub.f32 1.5, %v3491_v1 }
0x16a2   :  { %v3504_v26 = vadd.f32 %v3503_v7, %v3501_v50 }
0x16a3   :  { %v3493_v25 = vmul.f32 %v4275_v42, %v3492_v6 }
0x16a4   :  { %v3508_v46 = vsel %vm163_vm2, %v3504_v26, 0.0 }
0x16a5   :  { %3509 = vadd.xlane.f32.xlu0 %v3508_v46  ;;  %v2606_v59 = vpop.xlane.xlu0 %2605  ;;  %v3497_v27 = vsel %vm3496_vm12, %v4275_v42, %v3493_v25 }
0x16a6   :  { %v2614_v19 = vmul.f32 %v2606_v59, %v4741_v55  ;;  %v3499_v63 = vmul.f32 %v3497_v27, %v5540_v2 }
0x16a8   :  { %v2618_v12 = vsub.f32 %v2597_v15, %v2614_v19  ;;  %v3502_v31 = vmul.f32 %v3500_v62, %v3499_v63 }
0x16aa   :  { %v3505_v24 = vadd.f32 %v3503_v7, %v3502_v31  ;;  %v2622_v43 = vmul.f32 %v2618_v12, %v2618_v12 }
0x16ac   :  { %v3511_v11 = vsel %vm163_vm2, %v3505_v24, 0.0  ;;  %v2628_v40 = vsel %vm163_vm2, %v2622_v43, 0.0 }
0x16ad   :  { %3512 = vadd.xlane.f32.xlu2 %v3511_v11  ;;  %v2609_v52 = vpop.xlane.xlu2 %2608  ;;  %2629 = vadd.xlane.f32.xlu0 %v2628_v40 }
0x16ae   :  { %v2615_v21 = vmul.f32 %v2609_v52, %v4741_v55 }
0x16b0   :  { %v2619_v38 = vsub.f32 %v2598_v28, %v2615_v21 }
0x16b2   :  { %v2623_v60 = vmul.f32 %v2619_v38, %v2619_v38 }
0x16b4   :  { %v2631_v53 = vsel %vm163_vm2, %v2623_v60, 0.0 }
0x16b5   :  { %2632 = vadd.xlane.f32.xlu2 %v2631_v53 }
0x1718   :  { %v3510_v16 = vpop.xlane.xlu0 %3509 }
0x1719   :  { %v3514_v2 = vmul.f32 %v3510_v16, %v4741_v55 }
0x171b   :  { %v5565_v30 = vsub.f32 %v3504_v26, %v3514_v2 }
0x171d   :  { %v3518_v23 = vmul.f32 %v5565_v30, %v5565_v30 }
0x171f   :  { %v3520_v32 = vsel %vm163_vm2, %v3518_v23, 0.0 }
0x1720   :  { %v3513_v57 = vpop.xlane.xlu2 %3512  ;;  %3521 = vadd.xlane.f32.xlu0 %v3520_v32  ;;  %v2630_v45 = vpop.xlane.xlu0 %2629 }
0x1721   :  { %v3515_v44 = vmul.f32 %v3513_v57, %v4741_v55  ;;  %v2638_v35 = vmul.f32 %v2630_v45, %v4741_v55 }
0x1723   :  { %v5572_v4 = vsub.f32 %v3505_v24, %v3515_v44  ;;  %v2642_v29 = vadd.f32 1e-05, %v2638_v35 }
0x1725   :  { %4276 = vrsqrt.f32 %v2642_v29  ;;  %v3519_v9 = vmul.f32 %v5572_v4, %v5572_v4  ;;  %vm2661_vm6 = vweird.f32 %v2642_v29 }
0x1727   :  { %v3523_v58 = vsel %vm163_vm2, %v3519_v9, 0.0 }
0x1728   :  { %3524 = vadd.xlane.f32.xlu2 %v3523_v58  ;;  %v2633_v15 = vpop.xlane.xlu2 %2632 }
0x1729   :  { %v2639_v48 = vmul.f32 %v2633_v15, %v4741_v55 }
0x172b   :  { %v4277_v36 = vpop.eup %4276  ;;  %v2643_v37 = vadd.f32 1e-05, %v2639_v48 }
0x172c   :  { %v2656_v13 = vmul.f32 %v4277_v36, %v2642_v29  ;;  %vm2662_vm5 = vweird.f32 %v4277_v36 }
0x172d   :  { %4278 = vrsqrt.f32 %v2643_v37  ;;  %vm2663_vm7 = vmor %vm2661_vm6, %vm2662_vm5  ;;  %vm2671_vm14 = vweird.f32 %v2643_v37 }
0x172e   :  { %v2657_v18 = vmul.f32 %v4277_v36, %v2656_v13 }
0x1730   :  { %v2658_v28 = vmul.f32 0.5, %v2657_v18 }
0x1732   :  { %v2659_v49 = vsub.f32 1.5, %v2658_v28 }
0x1733   :  { %v4279_v14 = vpop.eup %4278 }
0x1734   :  { %v2660_v61 = vmul.f32 %v4277_v36, %v2659_v49  ;;  %v2666_v54 = vmul.f32 %v4279_v14, %v2643_v37  ;;  %vm2672_vm13 = vweird.f32 %v4279_v14 }
0x1735   :  { %vm2673_vm15 = vmor %vm2671_vm14, %vm2672_vm13 }
0x1736   :  { %v2664_v22 = vsel %vm2663_vm7, %v4277_v36, %v2660_v61  ;;  %v2667_v20 = vmul.f32 %v4279_v14, %v2666_v54 }
0x1737   :  { %v2686_v33 = vmul.f32 %v2664_v22, %v2618_v12 }
0x1738   :  { %v2668_v5 = vmul.f32 0.5, %v2667_v20 }
0x1739   :  { %v2691_v39 = vmul.f32 %v5509_v56, %v2686_v33 }
0x173a   :  { %v2669_v41 = vsub.f32 1.5, %v2668_v5 }
0x173b   :  { %v2696_v3 = vadd.f32 %v5511_v34, %v2691_v39 }
0x173c   :  { %v2670_v0 = vmul.f32 %v4279_v14, %v2669_v41 }
0x173d   :  { %3559 = vst.msk [vmem:[#allocation2 + $0x8] sm:$0xff] %vm163_vm2, %v2696_v3 }
0x173e   :  { %v2674_v42 = vsel %vm2673_vm15, %v4279_v14, %v2670_v0 }
0x173f   :  { %v2687_v10 = vmul.f32 %v2674_v42, %v2619_v38 }
0x1741   :  { %v2692_v47 = vmul.f32 %v5509_v56, %v2687_v10  ;;  %v3872_v56 = vld [vmem:[%s5610_s13 + $0x2] sm:$0x3]  ;;  %s4319_s13 = smov [#allocation2]  }
0x1742   :  { %v3552_v63 = vperm.slane %v3872_v56, 0  ;;  %v3555_v31 = vperm.slane %v3872_v56, 1  ;;  %s3568_s20 = sshll.u32 %s4319_s13, 4  ;;  %s3569_s20 = int_to_ptr.vmem [resolvable:$true] %s3568_s20 }
0x1743   :  { %v2697_v62 = vadd.f32 %v5511_v34, %v2692_v47 }
0x1745   :  { %3561 = vst.msk [vmem:[#allocation2 + $0x18] sm:$0xff] %vm163_vm2, %v2697_v62 }
0x1793   :  { %v3522_v17 = vpop.xlane.xlu0 %3521 }
0x1794   :  { %v3526_v8 = vmul.f32 %v3522_v17, %v4741_v55 }
0x1796   :  { %v3528_v51 = vadd.f32 1e-05, %v3526_v8 }
0x1798   :  { %4280 = vrsqrt.f32 %v3528_v51  ;;  %vm3536_vm1 = vweird.f32 %v3528_v51 }
0x179b   :  { %v3525_v7 = vpop.xlane.xlu2 %3524 }
0x179c   :  { %v3527_v1 = vmul.f32 %v3525_v7, %v4741_v55 }
0x179e   :  { %v4281_v50 = vpop.eup %4280  ;;  %v3529_v6 = vadd.f32 1e-05, %v3527_v1 }
0x179f   :  { %v3531_v26 = vmul.f32 %v4281_v50, %v3528_v51  ;;  %vm3537_vm0 = vweird.f32 %v4281_v50 }
0x17a0   :  { %4282 = vrsqrt.f32 %v3529_v6  ;;  %vm3538_vm3 = vmor %vm3536_vm1, %vm3537_vm0  ;;  %vm3546_vm8 = vweird.f32 %v3529_v6 }
0x17a1   :  { %v3532_v25 = vmul.f32 %v4281_v50, %v3531_v26 }
0x17a3   :  { %v3533_v46 = vmul.f32 0.5, %v3532_v25 }
0x17a5   :  { %v3534_v34 = vsub.f32 1.5, %v3533_v46 }
0x17a6   :  { %v4283_v59 = vpop.eup %4282 }
0x17a7   :  { %v3535_v27 = vmul.f32 %v4281_v50, %v3534_v34  ;;  %v3541_v19 = vmul.f32 %v4283_v59, %v3529_v6  ;;  %vm3547_vm4 = vweird.f32 %v4283_v59 }
0x17a8   :  { %vm3548_vm10 = vmor %vm3546_vm8, %vm3547_vm4 }
0x17a9   :  { %v3539_v12 = vsel %vm3538_vm3, %v4281_v50, %v3535_v27  ;;  %v3542_v55 = vmul.f32 %v4283_v59, %v3541_v19 }
0x17aa   :  { %v3550_v24 = vmul.f32 %v3539_v12, %v5565_v30 }
0x17ab   :  { %v3543_v43 = vmul.f32 0.5, %v3542_v55 }
0x17ac   :  { %v3553_v11 = vmul.f32 %v3552_v63, %v3550_v24 }
0x17ad   :  { %v3544_v40 = vsub.f32 1.5, %v3543_v43 }
0x17ae   :  { %v3556_v52 = vadd.f32 %v3555_v31, %v3553_v11 }
0x17af   :  { %v3545_v21 = vmul.f32 %v4283_v59, %v3544_v40 }
0x17b0   :  { %3560 = vst.msk [vmem:[#allocation2 + $0x10] sm:$0xff] %vm163_vm2, %v3556_v52 }
0x17b1   :  { %v3549_v38 = vsel %vm3548_vm10, %v4283_v59, %v3545_v21 }
0x17b2   :  { %v3551_v60 = vmul.f32 %v3549_v38, %v5572_v4 }
0x17b4   :  { %v3554_v53 = vmul.f32 %v3552_v63, %v3551_v60 }
0x17b6   :  { %v3557_v16 = vadd.f32 %v3555_v31, %v3554_v53 }
0x17b8   :  { %3563 = vst.msk [vmem:[#allocation2 + $0x28] sm:$0xff] %vm163_vm2, %v3557_v16 }
0x17b9   :  { %3576 = dma.vmem_to_hbm [thread:$0]  %s3569_s20, 768, %s3571_s15, [#allocation3], %s4320_s16, %s4320_s16, %s4315_s30  }
0x17ba   :  { %4308 = dma.done.wait [#allocation3], 768  }
0x17bb   :  { %4309 = vsyncadd [#allocation3], 4294966528 }
0x17bc   :  { %3581 = vsyncpa [#allocation3], 1 }

</bundles_post_ra>
